<compile_context>
chip_gen: v5e
topology: v5e:2x2
jax: 0.10.0
libtpu: 0.0.40
codegen_flags: <defaults>
</compile_context>

<pallas_src>
import jax
import jax.numpy as jnp
from jax import lax
from jax.experimental import pallas as pl
from jax.experimental.pallas import tpu as pltpu


# ----------------------------------------------------------------------------
# Pallas kernel: fused 3-layer LSTM recurrence + FC head + tanh + 1
# ----------------------------------------------------------------------------
def _lstm_net_kernel(gx0_ref,                        # (T, BT, 4Hp) f32 : x@W_ih0+b0 (precomputed)
                     w_hh0_ref,                      # (Hp, 4Hp) bf16
                     w_ih1_ref, w_hh1_ref, b1_ref,   # (Hp,4Hp) bf16, (Hp,4Hp) bf16, (1,4Hp) f32
                     w_ih2_ref, w_hh2_ref, b2_ref,   # (Hp,4Hp) bf16, (Hp,4Hp) bf16, (1,4Hp) f32
                     w_fc_ref, b_fc_ref,             # (Hp,Op) bf16, (1,Op) f32
                     out_ref,                        # (BT, Op) f32
                     seq_scr,                        # (T, BT, Hp)  f32  reused across layers
                     gx_scr):                        # (T, BT, 4Hp) f32  hoisted input projection
    T, BT, _ = gx0_ref.shape
    Hp = w_hh0_ref.shape[0]
    unroll = T if T <= 16 else 8

    def sigmoid(z):
        # sigmoid(z) = 0.5 * tanh(z/2) + 0.5 : one native EUP push instead of exp + recip.
        return 0.5 * jnp.tanh(0.5 * z) + 0.5

    def project(w_ih_ref, b_ref):
        # One large bf16 MXU matmul for the whole sequence: (T*BT, Hp) @ (Hp, 4Hp) + b
        flat = seq_scr[...].reshape(T * BT, Hp).astype(jnp.bfloat16)
        g = jnp.dot(flat, w_ih_ref[...], preferred_element_type=jnp.float32) + b_ref[...]
        gx_scr[...] = g.reshape(T, BT, 4 * Hp)

    def recur(gates_x_ref, w_hh_ref, write_seq):
        # W_hh is loaded once per layer (hoisted out of the unrolled step body).
        w_hh = w_hh_ref[...]                                    # (Hp, 4Hp) bf16
        # h, c live in the loop carry (vregs): no per-step h/c VMEM loads.
        def step(t, carry):
            h, c = carry
            gates = gates_x_ref[t] + jnp.dot(h.astype(jnp.bfloat16), w_hh,
                                             preferred_element_type=jnp.float32)  # (BT, 4Hp)
            # PyTorch gate order i, f, g, o; each gate on its own 128-lane tile.
            i_g = sigmoid(gates[:, 0 * Hp:1 * Hp])
            f_g = sigmoid(gates[:, 1 * Hp:2 * Hp])
            g_g = jnp.tanh(gates[:, 2 * Hp:3 * Hp])
            o_g = sigmoid(gates[:, 3 * Hp:4 * Hp])
            c = f_g * c + i_g * g_g
            h = o_g * jnp.tanh(c)
            if write_seq:
                seq_scr[t] = h
            return (h, c)

        init = (jnp.zeros((BT, Hp), jnp.float32),
                jnp.zeros((BT, Hp), jnp.float32))
        h_last, _ = lax.fori_loop(0, T, step, init, unroll=unroll)
        return h_last

    # layer 0: precomputed gx0 -> seq
    recur(gx0_ref, w_hh0_ref, write_seq=True)
    # layer 1: seq -> seq  (gx is computed from seq before seq is overwritten)
    project(w_ih1_ref, b1_ref)
    recur(gx_scr, w_hh1_ref, write_seq=True)
    # layer 2: seq -> last hidden only
    project(w_ih2_ref, b2_ref)
    h_last = recur(gx_scr, w_hh2_ref, write_seq=False)

    # fc on last timestep of top layer, then tanh + 1 (lane-dense padded output)
    logits = (jnp.dot(h_last.astype(jnp.bfloat16), w_fc_ref[...],
                      preferred_element_type=jnp.float32) + b_fc_ref[...])
    out_ref[...] = jnp.tanh(logits) + 1.0


# ----------------------------------------------------------------------------
# Padding helpers (zero padding keeps the LSTM math exact: padded gate
# pre-activations are 0 -> i=f=o=0.5, g=0 -> padded c and h stay 0 forever,
# and padded rows of W_hh / W_fc are zero so padded h columns contribute 0).
# ----------------------------------------------------------------------------
def _round_up(n, m):
    return ((n + m - 1) // m) * m


def _pad_gate_cols(w, H, Hp):
    """(..., 4H) -> (..., 4Hp): gate block k moves to columns [k*Hp, k*Hp+H)."""
    pads = [(0, 0)] * (w.ndim - 1)
    blocks = [jnp.pad(w[..., k * H:(k + 1) * H], pads + [(0, Hp - H)])
              for k in range(4)]
    return jnp.concatenate(blocks, axis=-1)


def _pad_dim0(w, n):
    return jnp.pad(w, [(0, n - w.shape[0])] + [(0, 0)] * (w.ndim - 1))


# ----------------------------------------------------------------------------
# Wrapper
# ----------------------------------------------------------------------------
def lstm_regression_aleatoric(x, params, *, batch_tile=None, lane=128):
    """x: (B, T, D) float32 -> (B, O) float32."""
    B, T, D = x.shape
    H = params["w_hh0"].shape[0]
    O = params["w_fc"].shape[1]

    Hp = _round_up(H, lane)
    Op = _round_up(O, lane)
    # Adaptive batch tile: fill MXU rows (128) on real batches, stay small on tiny ones.
    BT = batch_tile if batch_tile is not None else min(128, _round_up(B, 8))
    Bp = _round_up(B, BT)
    n_tiles = Bp // BT

    bf16 = jnp.bfloat16
    # Re-spread gate blocks onto lane-tile boundaries, zero-pad hidden dims,
    # and pre-cast all matmul operands to bf16 (biases stay f32).
    w_ih0 = _pad_gate_cols(params["w_ih0"], H, Hp)                              # (D,  4Hp) f32 (XLA)
    b0 = _pad_gate_cols(params["b0"], H, Hp)                                    # (1,  4Hp) f32 (XLA)
    w_hh0 = _pad_dim0(_pad_gate_cols(params["w_hh0"], H, Hp), Hp).astype(bf16)  # (Hp, 4Hp)
    w_ih1 = _pad_dim0(_pad_gate_cols(params["w_ih1"], H, Hp), Hp).astype(bf16)
    w_hh1 = _pad_dim0(_pad_gate_cols(params["w_hh1"], H, Hp), Hp).astype(bf16)
    b1 = _pad_gate_cols(params["b1"], H, Hp)
    w_ih2 = _pad_dim0(_pad_gate_cols(params["w_ih2"], H, Hp), Hp).astype(bf16)
    w_hh2 = _pad_dim0(_pad_gate_cols(params["w_hh2"], H, Hp), Hp).astype(bf16)
    b2 = _pad_gate_cols(params["b2"], H, Hp)
    w_fc = jnp.pad(params["w_fc"], [(0, Hp - H), (0, Op - O)]).astype(bf16)     # (Hp, Op)
    b_fc = jnp.pad(params["b_fc"], [(0, 0), (0, Op - O)])                       # (1,  Op)

    # Layer-0 input projection hoisted to plain XLA (one (T*Bp, D)@(D, 4Hp) matmul)
    # so the kernel never sees the lane-sparse D-wide input block.
    x_tm = jnp.transpose(x, (1, 0, 2))                          # (T, B, D)
    x_tm = jnp.pad(x_tm, [(0, 0), (0, Bp - B), (0, 0)])         # (T, Bp, D)
    gx0 = (jnp.einsum("tbd,dg->tbg", x_tm, w_ih0) + b0).astype(jnp.float32)  # (T, Bp, 4Hp)

    # Rough VMEM residency estimate -> vmem_limit_bytes (clamped for v7x's 64 MiB).
    scratch_b = 4 * (T * BT * Hp) + 4 * (T * BT * 4 * Hp)
    io_b = 2 * 4 * (T * BT * 4 * Hp) + 2 * 4 * (BT * Op)
    w_b = 2 * 2 * (5 * Hp * 4 * Hp + Hp * Op) + 2 * 4 * (2 * 4 * Hp + Op)
    vmem_limit = int(min(max(2 * (scratch_b + io_b + w_b), 32 << 20), 64 << 20))

    rep = lambda i: (0, 0)  # weights are replicated across batch tiles

    out = pl.pallas_call(
        _lstm_net_kernel,
        out_shape=jax.ShapeDtypeStruct((Bp, Op), jnp.float32),
        grid_spec=pltpu.PrefetchScalarGridSpec(
            num_scalar_prefetch=0,
            grid=(n_tiles,),
            in_specs=[
                pl.BlockSpec((T, BT, 4 * Hp), lambda i: (0, i, 0)),  # gx0
                pl.BlockSpec((Hp, 4 * Hp), rep),                     # w_hh0
                pl.BlockSpec((Hp, 4 * Hp), rep),                     # w_ih1
                pl.BlockSpec((Hp, 4 * Hp), rep),                     # w_hh1
                pl.BlockSpec((1, 4 * Hp), rep),                      # b1
                pl.BlockSpec((Hp, 4 * Hp), rep),                     # w_ih2
                pl.BlockSpec((Hp, 4 * Hp), rep),                     # w_hh2
                pl.BlockSpec((1, 4 * Hp), rep),                      # b2
                pl.BlockSpec((Hp, Op), rep),                         # w_fc
                pl.BlockSpec((1, Op), rep),                          # b_fc
            ],
            out_specs=pl.BlockSpec((BT, Op), lambda i: (i, 0)),
            scratch_shapes=[
                pltpu.VMEM((T, BT, Hp), jnp.float32),        # seq buffer (reused)
                pltpu.VMEM((T, BT, 4 * Hp), jnp.float32),    # hoisted input projection
            ],
        ),
        compiler_params=pltpu.CompilerParams(
            dimension_semantics=("parallel",),
            vmem_limit_bytes=vmem_limit),
    )(gx0,
      w_hh0,
      w_ih1, w_hh1, b1,
      w_ih2, w_hh2, b2,
      w_fc, b_fc)

    return out[:B, :O]


# ----------------------------------------------------------------------------
# Deterministic parameter init (shapes match nn.LSTM(D, H, 3) + nn.Linear(H, O))
# Weights stored pre-transposed for right-multiplication; biases fused.
# ----------------------------------------------------------------------------
def init_params(key, D, H, O):
    k = 1.0 / jnp.sqrt(jnp.float32(H))
    keys = jax.random.split(key, 14)

    def u(kk, shape):
        return jax.random.uniform(kk, shape, jnp.float32, -k, k)

    p = {}
    in_dims = [D, H, H]
    for layer in range(3):
        p[f"w_ih{layer}"] = u(keys[4 * layer + 0], (in_dims[layer], 4 * H))
        p[f"w_hh{layer}"] = u(keys[4 * layer + 1], (H, 4 * H))
        b_ih = u(keys[4 * layer + 2], (4 * H,))
        b_hh = u(keys[4 * layer + 3], (4 * H,))
        p[f"b{layer}"] = (b_ih + b_hh).reshape(1, 4 * H)
    p["w_fc"] = u(keys[12], (H, O))
    p["b_fc"] = u(keys[13], (1, O))
    return p


# ----------------------------------------------------------------------------
# Pure-JAX f32 reference (for correctness check)
# ----------------------------------------------------------------------------
def _lstm_layer_ref(x, w_ih, w_hh, b, H):
    B = x.shape[0]

    def step(carry, xt):
        h, c = carry
        gates = xt @ w_ih + h @ w_hh + b
        i = jax.nn.sigmoid(gates[:, 0 * H:1 * H])
        f = jax.nn.sigmoid(gates[:, 1 * H:2 * H])
        g = jnp.tanh(gates[:, 2 * H:3 * H])
        o = jax.nn.sigmoid(gates[:, 3 * H:4 * H])
        c = f * c + i * g
        h = o * jnp.tanh(c)
        return (h, c), h

    init = (jnp.zeros((B, H), jnp.float32), jnp.zeros((B, H), jnp.float32))
    _, ys = lax.scan(step, init, jnp.transpose(x, (1, 0, 2)))
    return jnp.transpose(ys, (1, 0, 2))


def reference(x, params):
    H = params["w_hh0"].shape[0]
    out = _lstm_layer_ref(x, params["w_ih0"], params["w_hh0"], params["b0"], H)
    out = _lstm_layer_ref(out, params["w_ih1"], params["w_hh1"], params["b1"], H)
    out = _lstm_layer_ref(out, params["w_ih2"], params["w_hh2"], params["b2"], H)
    out = out[:, -1, :] @ params["w_fc"] + params["b_fc"]
    return jnp.tanh(out) + 1.0


# ----------------------------------------------------------------------------
if __name__ == "__main__":
    B, T, D, H, O = 2, 8, 16, 32, 2  # batch, seq, num_input_features, LSTM_size, output_dim

    key = jax.random.PRNGKey(0)
    key_params, key_x = jax.random.split(key)
    params = init_params(key_params, D, H, O)
    x = jax.random.normal(key_x, (B, T, D), jnp.float32)

    out = lstm_regression_aleatoric(x, params)
    out = jax.block_until_ready(out)

    ref = reference(x, params)
    assert out.shape == (B, O)
    err = float(jnp.max(jnp.abs(out - ref)))
    # bf16 matmul operands (f32 accumulation) vs pure-f32 reference: loose tolerance.
    assert jnp.allclose(out, ref, atol=5e-2, rtol=5e-2), (err, out, ref)

    print("KERNEL_OK")
</pallas_src>

<mosaic_0001>
module attributes {stable_mosaic.version = 11 : i64} {
  func.func @_lstm_net_kernel(%arg0: i32, %arg1: memref<8x8x512xf32, #tpu.memory_space<vmem>>, %arg2: memref<128x512xbf16, #tpu.memory_space<vmem>>, %arg3: memref<128x512xbf16, #tpu.memory_space<vmem>>, %arg4: memref<128x512xbf16, #tpu.memory_space<vmem>>, %arg5: memref<1x512xf32, #tpu.memory_space<vmem>>, %arg6: memref<128x512xbf16, #tpu.memory_space<vmem>>, %arg7: memref<128x512xbf16, #tpu.memory_space<vmem>>, %arg8: memref<1x512xf32, #tpu.memory_space<vmem>>, %arg9: memref<128x128xbf16, #tpu.memory_space<vmem>>, %arg10: memref<1x128xf32, #tpu.memory_space<vmem>>, %arg11: memref<8x128xf32, #tpu.memory_space<vmem>>, %arg12: memref<8x8x128xf32, #tpu.memory_space<vmem>>, %arg13: memref<8x8x512xf32, #tpu.memory_space<vmem>>) attributes {dimension_semantics = [#tpu.dimension_semantics<parallel>], iteration_bounds = array<i64: 1>, scalar_prefetch = 0 : i64, scratch_operands = 2 : i64, tpu.core_type = #tpu.core_type<tc>, window_params = [{transform_indices = @transform_0, window_bounds = array<i64: 8, 8, 512>}, {pipeline_mode = #tpu.pipeline_mode<synchronous>, transform_indices = @transform_1, window_bounds = array<i64: 128, 512>}, {pipeline_mode = #tpu.pipeline_mode<synchronous>, transform_indices = @transform_2, window_bounds = array<i64: 128, 512>}, {pipeline_mode = #tpu.pipeline_mode<synchronous>, transform_indices = @transform_3, window_bounds = array<i64: 128, 512>}, {pipeline_mode = #tpu.pipeline_mode<synchronous>, transform_indices = @transform_4, window_bounds = array<i64: 1, 512>}, {pipeline_mode = #tpu.pipeline_mode<synchronous>, transform_indices = @transform_5, window_bounds = array<i64: 128, 512>}, {pipeline_mode = #tpu.pipeline_mode<synchronous>, transform_indices = @transform_6, window_bounds = array<i64: 128, 512>}, {pipeline_mode = #tpu.pipeline_mode<synchronous>, transform_indices = @transform_7, window_bounds = array<i64: 1, 512>}, {pipeline_mode = #tpu.pipeline_mode<synchronous>, transform_indices = @transform_8, window_bounds = array<i64: 128, 128>}, {pipeline_mode = #tpu.pipeline_mode<synchronous>, transform_indices = @transform_9, window_bounds = array<i64: 1, 128>}, {transform_indices = @transform_10, window_bounds = array<i64: 8, 128>}]} {
    %c0 = arith.constant 0 : index
    %c0_0 = arith.constant 0 : index
    %0 = vector.load %arg2[%c0, %c0_0] : memref<128x512xbf16, #tpu.memory_space<vmem>>, vector<128x512xbf16>
    %cst = arith.constant 0.000000e+00 : f32
    %1 = vector.broadcast %cst : f32 to vector<8x128xf32>
    %cst_1 = arith.constant 0.000000e+00 : f32
    %2 = vector.broadcast %cst_1 : f32 to vector<8x128xf32>
    %c0_i32 = arith.constant 0 : i32
    %3 = arith.index_cast %c0_i32 : i32 to index
    %c0_2 = arith.constant 0 : index
    %c0_3 = arith.constant 0 : index
    %4 = vector.load %arg1[%3, %c0_2, %c0_3] : memref<8x8x512xf32, #tpu.memory_space<vmem>>, vector<1x8x512xf32>
    %5 = vector.shape_cast %4 : vector<1x8x512xf32> to vector<8x512xf32>
    %6 = arith.truncf %1 : vector<8x128xf32> to vector<8x128xbf16>
    %cst_4 = arith.constant dense<0.000000e+00> : vector<8x512xf32>
    %7 = tpu.matmul %6, %0, %cst_4 {dimension_numbers = #tpu.dot_dimension_numbers<[1], [0], [0], [1], [0, 0, 1, 1], [], []>} : vector<8x128xbf16>, vector<128x512xbf16>, vector<8x512xf32> -> vector<8x512xf32>
    %8 = arith.addf %5, %7 : vector<8x512xf32>
    %9 = vector.extract_strided_slice %8 {offsets = [0, 0], sizes = [8, 128], strides = [1, 1]} : vector<8x512xf32> to vector<8x128xf32>
    %cst_5 = arith.constant 5.000000e-01 : f32
    %10 = vector.broadcast %cst_5 : f32 to vector<8x128xf32>
    %11 = arith.mulf %10, %9 : vector<8x128xf32>
    %12 = math.tanh %11 : vector<8x128xf32>
    %cst_6 = arith.constant 5.000000e-01 : f32
    %13 = vector.broadcast %cst_6 : f32 to vector<8x128xf32>
    %14 = arith.mulf %13, %12 : vector<8x128xf32>
    %cst_7 = arith.constant 5.000000e-01 : f32
    %15 = vector.broadcast %cst_7 : f32 to vector<8x128xf32>
    %16 = arith.addf %14, %15 : vector<8x128xf32>
    %17 = vector.extract_strided_slice %8 {offsets = [0, 128], sizes = [8, 128], strides = [1, 1]} : vector<8x512xf32> to vector<8x128xf32>
    %cst_8 = arith.constant 5.000000e-01 : f32
    %18 = vector.broadcast %cst_8 : f32 to vector<8x128xf32>
    %19 = arith.mulf %18, %17 : vector<8x128xf32>
    %20 = math.tanh %19 : vector<8x128xf32>
    %cst_9 = arith.constant 5.000000e-01 : f32
    %21 = vector.broadcast %cst_9 : f32 to vector<8x128xf32>
    %22 = arith.mulf %21, %20 : vector<8x128xf32>
    %cst_10 = arith.constant 5.000000e-01 : f32
    %23 = vector.broadcast %cst_10 : f32 to vector<8x128xf32>
    %24 = arith.addf %22, %23 : vector<8x128xf32>
    %25 = vector.extract_strided_slice %8 {offsets = [0, 256], sizes = [8, 128], strides = [1, 1]} : vector<8x512xf32> to vector<8x128xf32>
    %26 = math.tanh %25 : vector<8x128xf32>
    %27 = vector.extract_strided_slice %8 {offsets = [0, 384], sizes = [8, 128], strides = [1, 1]} : vector<8x512xf32> to vector<8x128xf32>
    %cst_11 = arith.constant 5.000000e-01 : f32
    %28 = vector.broadcast %cst_11 : f32 to vector<8x128xf32>
    %29 = arith.mulf %28, %27 : vector<8x128xf32>
    %30 = math.tanh %29 : vector<8x128xf32>
    %cst_12 = arith.constant 5.000000e-01 : f32
    %31 = vector.broadcast %cst_12 : f32 to vector<8x128xf32>
    %32 = arith.mulf %31, %30 : vector<8x128xf32>
    %cst_13 = arith.constant 5.000000e-01 : f32
    %33 = vector.broadcast %cst_13 : f32 to vector<8x128xf32>
    %34 = arith.addf %32, %33 : vector<8x128xf32>
    %35 = arith.mulf %24, %2 : vector<8x128xf32>
    %36 = arith.mulf %16, %26 : vector<8x128xf32>
    %37 = arith.addf %35, %36 : vector<8x128xf32>
    %38 = math.tanh %37 : vector<8x128xf32>
    %39 = arith.mulf %34, %38 : vector<8x128xf32>
    %40 = arith.index_cast %c0_i32 : i32 to index
    %c0_14 = arith.constant 0 : index
    %c0_15 = arith.constant 0 : index
    %41 = vector.load %arg12[%40, %c0_14, %c0_15] : memref<8x8x128xf32, #tpu.memory_space<vmem>>, vector<1x8x128xf32>
    %42 = vector.shape_cast %41 : vector<1x8x128xf32> to vector<8x128xf32>
    %43 = vector.shape_cast %39 : vector<8x128xf32> to vector<1x8x128xf32>
    tpu.vector_store %arg12[%40, %c0_14, %c0_15], %43 {strides = array<i32>} : memref<8x8x128xf32, #tpu.memory_space<vmem>>, vector<1x8x128xf32>,
    %c1_i32 = arith.constant 1 : i32
    %44 = arith.index_cast %c1_i32 : i32 to index
    %c0_16 = arith.constant 0 : index
    %c0_17 = arith.constant 0 : index
    %45 = vector.load %arg1[%44, %c0_16, %c0_17] : memref<8x8x512xf32, #tpu.memory_space<vmem>>, vector<1x8x512xf32>
    %46 = vector.shape_cast %45 : vector<1x8x512xf32> to vector<8x512xf32>
    %47 = arith.truncf %39 : vector<8x128xf32> to vector<8x128xbf16>
    %cst_18 = arith.constant dense<0.000000e+00> : vector<8x512xf32>
    %48 = tpu.matmul %47, %0, %cst_18 {dimension_numbers = #tpu.dot_dimension_numbers<[1], [0], [0], [1], [0, 0, 1, 1], [], []>} : vector<8x128xbf16>, vector<128x512xbf16>, vector<8x512xf32> -> vector<8x512xf32>
    %49 = arith.addf %46, %48 : vector<8x512xf32>
    %50 = vector.extract_strided_slice %49 {offsets = [0, 0], sizes = [8, 128], strides = [1, 1]} : vector<8x512xf32> to vector<8x128xf32>
    %cst_19 = arith.constant 5.000000e-01 : f32
    %51 = vector.broadcast %cst_19 : f32 to vector<8x128xf32>
    %52 = arith.mulf %51, %50 : vector<8x128xf32>
    %53 = math.tanh %52 : vector<8x128xf32>
    %cst_20 = arith.constant 5.000000e-01 : f32
    %54 = vector.broadcast %cst_20 : f32 to vector<8x128xf32>
    %55 = arith.mulf %54, %53 : vector<8x128xf32>
    %cst_21 = arith.constant 5.000000e-01 : f32
    %56 = vector.broadcast %cst_21 : f32 to vector<8x128xf32>
    %57 = arith.addf %55, %56 : vector<8x128xf32>
    %58 = vector.extract_strided_slice %49 {offsets = [0, 128], sizes = [8, 128], strides = [1, 1]} : vector<8x512xf32> to vector<8x128xf32>
    %cst_22 = arith.constant 5.000000e-01 : f32
    %59 = vector.broadcast %cst_22 : f32 to vector<8x128xf32>
    %60 = arith.mulf %59, %58 : vector<8x128xf32>
    %61 = math.tanh %60 : vector<8x128xf32>
    %cst_23 = arith.constant 5.000000e-01 : f32
    %62 = vector.broadcast %cst_23 : f32 to vector<8x128xf32>
    %63 = arith.mulf %62, %61 : vector<8x128xf32>
    %cst_24 = arith.constant 5.000000e-01 : f32
    %64 = vector.broadcast %cst_24 : f32 to vector<8x128xf32>
    %65 = arith.addf %63, %64 : vector<8x128xf32>
    %66 = vector.extract_strided_slice %49 {offsets = [0, 256], sizes = [8, 128], strides = [1, 1]} : vector<8x512xf32> to vector<8x128xf32>
    %67 = math.tanh %66 : vector<8x128xf32>
    %68 = vector.extract_strided_slice %49 {offsets = [0, 384], sizes = [8, 128], strides = [1, 1]} : vector<8x512xf32> to vector<8x128xf32>
    %cst_25 = arith.constant 5.000000e-01 : f32
    %69 = vector.broadcast %cst_25 : f32 to vector<8x128xf32>
    %70 = arith.mulf %69, %68 : vector<8x128xf32>
    %71 = math.tanh %70 : vector<8x128xf32>
    %cst_26 = arith.constant 5.000000e-01 : f32
    %72 = vector.broadcast %cst_26 : f32 to vector<8x128xf32>
    %73 = arith.mulf %72, %71 : vector<8x128xf32>
    %cst_27 = arith.constant 5.000000e-01 : f32
    %74 = vector.broadcast %cst_27 : f32 to vector<8x128xf32>
    %75 = arith.addf %73, %74 : vector<8x128xf32>
    %76 = arith.mulf %65, %37 : vector<8x128xf32>
    %77 = arith.mulf %57, %67 : vector<8x128xf32>
    %78 = arith.addf %76, %77 : vector<8x128xf32>
    %79 = math.tanh %78 : vector<8x128xf32>
    %80 = arith.mulf %75, %79 : vector<8x128xf32>
    %81 = arith.index_cast %c1_i32 : i32 to index
    %c0_28 = arith.constant 0 : index
    %c0_29 = arith.constant 0 : index
    %82 = vector.load %arg12[%81, %c0_28, %c0_29] : memref<8x8x128xf32, #tpu.memory_space<vmem>>, vector<1x8x128xf32>
    %83 = vector.shape_cast %82 : vector<1x8x128xf32> to vector<8x128xf32>
    %84 = vector.shape_cast %80 : vector<8x128xf32> to vector<1x8x128xf32>
    tpu.vector_store %arg12[%81, %c0_28, %c0_29], %84 {strides = array<i32>} : memref<8x8x128xf32, #tpu.memory_space<vmem>>, vector<1x8x128xf32>,
    %c2_i32 = arith.constant 2 : i32
    %85 = arith.index_cast %c2_i32 : i32 to index
    %c0_30 = arith.constant 0 : index
    %c0_31 = arith.constant 0 : index
    %86 = vector.load %arg1[%85, %c0_30, %c0_31] : memref<8x8x512xf32, #tpu.memory_space<vmem>>, vector<1x8x512xf32>
    %87 = vector.shape_cast %86 : vector<1x8x512xf32> to vector<8x512xf32>
    %88 = arith.truncf %80 : vector<8x128xf32> to vector<8x128xbf16>
    %cst_32 = arith.constant dense<0.000000e+00> : vector<8x512xf32>
    %89 = tpu.matmul %88, %0, %cst_32 {dimension_numbers = #tpu.dot_dimension_numbers<[1], [0], [0], [1], [0, 0, 1, 1], [], []>} : vector<8x128xbf16>, vector<128x512xbf16>, vector<8x512xf32> -> vector<8x512xf32>
    %90 = arith.addf %87, %89 : vector<8x512xf32>
    %91 = vector.extract_strided_slice %90 {offsets = [0, 0], sizes = [8, 128], strides = [1, 1]} : vector<8x512xf32> to vector<8x128xf32>
    %cst_33 = arith.constant 5.000000e-01 : f32
    %92 = vector.broadcast %cst_33 : f32 to vector<8x128xf32>
    %93 = arith.mulf %92, %91 : vector<8x128xf32>
    %94 = math.tanh %93 : vector<8x128xf32>
    %cst_34 = arith.constant 5.000000e-01 : f32
    %95 = vector.broadcast %cst_34 : f32 to vector<8x128xf32>
    %96 = arith.mulf %95, %94 : vector<8x128xf32>
    %cst_35 = arith.constant 5.000000e-01 : f32
    %97 = vector.broadcast %cst_35 : f32 to vector<8x128xf32>
    %98 = arith.addf %96, %97 : vector<8x128xf32>
    %99 = vector.extract_strided_slice %90 {offsets = [0, 128], sizes = [8, 128], strides = [1, 1]} : vector<8x512xf32> to vector<8x128xf32>
    %cst_36 = arith.constant 5.000000e-01 : f32
    %100 = vector.broadcast %cst_36 : f32 to vector<8x128xf32>
    %101 = arith.mulf %100, %99 : vector<8x128xf32>
    %102 = math.tanh %101 : vector<8x128xf32>
    %cst_37 = arith.constant 5.000000e-01 : f32
    %103 = vector.broadcast %cst_37 : f32 to vector<8x128xf32>
    %104 = arith.mulf %103, %102 : vector<8x128xf32>
    %cst_38 = arith.constant 5.000000e-01 : f32
    %105 = vector.broadcast %cst_38 : f32 to vector<8x128xf32>
    %106 = arith.addf %104, %105 : vector<8x128xf32>
    %107 = vector.extract_strided_slice %90 {offsets = [0, 256], sizes = [8, 128], strides = [1, 1]} : vector<8x512xf32> to vector<8x128xf32>
    %108 = math.tanh %107 : vector<8x128xf32>
    %109 = vector.extract_strided_slice %90 {offsets = [0, 384], sizes = [8, 128], strides = [1, 1]} : vector<8x512xf32> to vector<8x128xf32>
    %cst_39 = arith.constant 5.000000e-01 : f32
    %110 = vector.broadcast %cst_39 : f32 to vector<8x128xf32>
    %111 = arith.mulf %110, %109 : vector<8x128xf32>
    %112 = math.tanh %111 : vector<8x128xf32>
    %cst_40 = arith.constant 5.000000e-01 : f32
    %113 = vector.broadcast %cst_40 : f32 to vector<8x128xf32>
    %114 = arith.mulf %113, %112 : vector<8x128xf32>
    %cst_41 = arith.constant 5.000000e-01 : f32
    %115 = vector.broadcast %cst_41 : f32 to vector<8x128xf32>
    %116 = arith.addf %114, %115 : vector<8x128xf32>
    %117 = arith.mulf %106, %78 : vector<8x128xf32>
    %118 = arith.mulf %98, %108 : vector<8x128xf32>
    %119 = arith.addf %117, %118 : vector<8x128xf32>
    %120 = math.tanh %119 : vector<8x128xf32>
    %121 = arith.mulf %116, %120 : vector<8x128xf32>
    %122 = arith.index_cast %c2_i32 : i32 to index
    %c0_42 = arith.constant 0 : index
    %c0_43 = arith.constant 0 : index
    %123 = vector.load %arg12[%122, %c0_42, %c0_43] : memref<8x8x128xf32, #tpu.memory_space<vmem>>, vector<1x8x128xf32>
    %124 = vector.shape_cast %123 : vector<1x8x128xf32> to vector<8x128xf32>
    %125 = vector.shape_cast %121 : vector<8x128xf32> to vector<1x8x128xf32>
    tpu.vector_store %arg12[%122, %c0_42, %c0_43], %125 {strides = array<i32>} : memref<8x8x128xf32, #tpu.memory_space<vmem>>, vector<1x8x128xf32>,
    %c3_i32 = arith.constant 3 : i32
    %126 = arith.index_cast %c3_i32 : i32 to index
    %c0_44 = arith.constant 0 : index
    %c0_45 = arith.constant 0 : index
    %127 = vector.load %arg1[%126, %c0_44, %c0_45] : memref<8x8x512xf32, #tpu.memory_space<vmem>>, vector<1x8x512xf32>
    %128 = vector.shape_cast %127 : vector<1x8x512xf32> to vector<8x512xf32>
    %129 = arith.truncf %121 : vector<8x128xf32> to vector<8x128xbf16>
    %cst_46 = arith.constant dense<0.000000e+00> : vector<8x512xf32>
    %130 = tpu.matmul %129, %0, %cst_46 {dimension_numbers = #tpu.dot_dimension_numbers<[1], [0], [0], [1], [0, 0, 1, 1], [], []>} : vector<8x128xbf16>, vector<128x512xbf16>, vector<8x512xf32> -> vector<8x512xf32>
    %131 = arith.addf %128, %130 : vector<8x512xf32>
    %132 = vector.extract_strided_slice %131 {offsets = [0, 0], sizes = [8, 128], strides = [1, 1]} : vector<8x512xf32> to vector<8x128xf32>
    %cst_47 = arith.constant 5.000000e-01 : f32
    %133 = vector.broadcast %cst_47 : f32 to vector<8x128xf32>
    %134 = arith.mulf %133, %132 : vector<8x128xf32>
    %135 = math.tanh %134 : vector<8x128xf32>
    %cst_48 = arith.constant 5.000000e-01 : f32
    %136 = vector.broadcast %cst_48 : f32 to vector<8x128xf32>
    %137 = arith.mulf %136, %135 : vector<8x128xf32>
    %cst_49 = arith.constant 5.000000e-01 : f32
    %138 = vector.broadcast %cst_49 : f32 to vector<8x128xf32>
    %139 = arith.addf %137, %138 : vector<8x128xf32>
    %140 = vector.extract_strided_slice %131 {offsets = [0, 128], sizes = [8, 128], strides = [1, 1]} : vector<8x512xf32> to vector<8x128xf32>
    %cst_50 = arith.constant 5.000000e-01 : f32
    %141 = vector.broadcast %cst_50 : f32 to vector<8x128xf32>
    %142 = arith.mulf %141, %140 : vector<8x128xf32>
    %143 = math.tanh %142 : vector<8x128xf32>
    %cst_51 = arith.constant 5.000000e-01 : f32
    %144 = vector.broadcast %cst_51 : f32 to vector<8x128xf32>
    %145 = arith.mulf %144, %143 : vector<8x128xf32>
    %cst_52 = arith.constant 5.000000e-01 : f32
    %146 = vector.broadcast %cst_52 : f32 to vector<8x128xf32>
    %147 = arith.addf %145, %146 : vector<8x128xf32>
    %148 = vector.extract_strided_slice %131 {offsets = [0, 256], sizes = [8, 128], strides = [1, 1]} : vector<8x512xf32> to vector<8x128xf32>
    %149 = math.tanh %148 : vector<8x128xf32>
    %150 = vector.extract_strided_slice %131 {offsets = [0, 384], sizes = [8, 128], strides = [1, 1]} : vector<8x512xf32> to vector<8x128xf32>
    %cst_53 = arith.constant 5.000000e-01 : f32
    %151 = vector.broadcast %cst_53 : f32 to vector<8x128xf32>
    %152 = arith.mulf %151, %150 : vector<8x128xf32>
    %153 = math.tanh %152 : vector<8x128xf32>
    %cst_54 = arith.constant 5.000000e-01 : f32
    %154 = vector.broadcast %cst_54 : f32 to vector<8x128xf32>
    %155 = arith.mulf %154, %153 : vector<8x128xf32>
    %cst_55 = arith.constant 5.000000e-01 : f32
    %156 = vector.broadcast %cst_55 : f32 to vector<8x128xf32>
    %157 = arith.addf %155, %156 : vector<8x128xf32>
    %158 = arith.mulf %147, %119 : vector<8x128xf32>
    %159 = arith.mulf %139, %149 : vector<8x128xf32>
    %160 = arith.addf %158, %159 : vector<8x128xf32>
    %161 = math.tanh %160 : vector<8x128xf32>
    %162 = arith.mulf %157, %161 : vector<8x128xf32>
    %163 = arith.index_cast %c3_i32 : i32 to index
    %c0_56 = arith.constant 0 : index
    %c0_57 = arith.constant 0 : index
    %164 = vector.load %arg12[%163, %c0_56, %c0_57] : memref<8x8x128xf32, #tpu.memory_space<vmem>>, vector<1x8x128xf32>
    %165 = vector.shape_cast %164 : vector<1x8x128xf32> to vector<8x128xf32>
    %166 = vector.shape_cast %162 : vector<8x128xf32> to vector<1x8x128xf32>
    tpu.vector_store %arg12[%163, %c0_56, %c0_57], %166 {strides = array<i32>} : memref<8x8x128xf32, #tpu.memory_space<vmem>>, vector<1x8x128xf32>,
    %c4_i32 = arith.constant 4 : i32
    %167 = arith.index_cast %c4_i32 : i32 to index
    %c0_58 = arith.constant 0 : index
    %c0_59 = arith.constant 0 : index
    %168 = vector.load %arg1[%167, %c0_58, %c0_59] : memref<8x8x512xf32, #tpu.memory_space<vmem>>, vector<1x8x512xf32>
    %169 = vector.shape_cast %168 : vector<1x8x512xf32> to vector<8x512xf32>
    %170 = arith.truncf %162 : vector<8x128xf32> to vector<8x128xbf16>
    %cst_60 = arith.constant dense<0.000000e+00> : vector<8x512xf32>
    %171 = tpu.matmul %170, %0, %cst_60 {dimension_numbers = #tpu.dot_dimension_numbers<[1], [0], [0], [1], [0, 0, 1, 1], [], []>} : vector<8x128xbf16>, vector<128x512xbf16>, vector<8x512xf32> -> vector<8x512xf32>
    %172 = arith.addf %169, %171 : vector<8x512xf32>
    %173 = vector.extract_strided_slice %172 {offsets = [0, 0], sizes = [8, 128], strides = [1, 1]} : vector<8x512xf32> to vector<8x128xf32>
    %cst_61 = arith.constant 5.000000e-01 : f32
    %174 = vector.broadcast %cst_61 : f32 to vector<8x128xf32>
    %175 = arith.mulf %174, %173 : vector<8x128xf32>
    %176 = math.tanh %175 : vector<8x128xf32>
    %cst_62 = arith.constant 5.000000e-01 : f32
    %177 = vector.broadcast %cst_62 : f32 to vector<8x128xf32>
    %178 = arith.mulf %177, %176 : vector<8x128xf32>
    %cst_63 = arith.constant 5.000000e-01 : f32
    %179 = vector.broadcast %cst_63 : f32 to vector<8x128xf32>
    %180 = arith.addf %178, %179 : vector<8x128xf32>
    %181 = vector.extract_strided_slice %172 {offsets = [0, 128], sizes = [8, 128], strides = [1, 1]} : vector<8x512xf32> to vector<8x128xf32>
    %cst_64 = arith.constant 5.000000e-01 : f32
    %182 = vector.broadcast %cst_64 : f32 to vector<8x128xf32>
    %183 = arith.mulf %182, %181 : vector<8x128xf32>
    %184 = math.tanh %183 : vector<8x128xf32>
    %cst_65 = arith.constant 5.000000e-01 : f32
    %185 = vector.broadcast %cst_65 : f32 to vector<8x128xf32>
    %186 = arith.mulf %185, %184 : vector<8x128xf32>
    %cst_66 = arith.constant 5.000000e-01 : f32
    %187 = vector.broadcast %cst_66 : f32 to vector<8x128xf32>
    %188 = arith.addf %186, %187 : vector<8x128xf32>
    %189 = vector.extract_strided_slice %172 {offsets = [0, 256], sizes = [8, 128], strides = [1, 1]} : vector<8x512xf32> to vector<8x128xf32>
    %190 = math.tanh %189 : vector<8x128xf32>
    %191 = vector.extract_strided_slice %172 {offsets = [0, 384], sizes = [8, 128], strides = [1, 1]} : vector<8x512xf32> to vector<8x128xf32>
    %cst_67 = arith.constant 5.000000e-01 : f32
    %192 = vector.broadcast %cst_67 : f32 to vector<8x128xf32>
    %193 = arith.mulf %192, %191 : vector<8x128xf32>
    %194 = math.tanh %193 : vector<8x128xf32>
    %cst_68 = arith.constant 5.000000e-01 : f32
    %195 = vector.broadcast %cst_68 : f32 to vector<8x128xf32>
    %196 = arith.mulf %195, %194 : vector<8x128xf32>
    %cst_69 = arith.constant 5.000000e-01 : f32
    %197 = vector.broadcast %cst_69 : f32 to vector<8x128xf32>
    %198 = arith.addf %196, %197 : vector<8x128xf32>
    %199 = arith.mulf %188, %160 : vector<8x128xf32>
    %200 = arith.mulf %180, %190 : vector<8x128xf32>
    %201 = arith.addf %199, %200 : vector<8x128xf32>
    %202 = math.tanh %201 : vector<8x128xf32>
    %203 = arith.mulf %198, %202 : vector<8x128xf32>
    %204 = arith.index_cast %c4_i32 : i32 to index
    %c0_70 = arith.constant 0 : index
    %c0_71 = arith.constant 0 : index
    %205 = vector.load %arg12[%204, %c0_70, %c0_71] : memref<8x8x128xf32, #tpu.memory_space<vmem>>, vector<1x8x128xf32>
    %206 = vector.shape_cast %205 : vector<1x8x128xf32> to vector<8x128xf32>
    %207 = vector.shape_cast %203 : vector<8x128xf32> to vector<1x8x128xf32>
    tpu.vector_store %arg12[%204, %c0_70, %c0_71], %207 {strides = array<i32>} : memref<8x8x128xf32, #tpu.memory_space<vmem>>, vector<1x8x128xf32>,
    %c5_i32 = arith.constant 5 : i32
    %208 = arith.index_cast %c5_i32 : i32 to index
    %c0_72 = arith.constant 0 : index
    %c0_73 = arith.constant 0 : index
    %209 = vector.load %arg1[%208, %c0_72, %c0_73] : memref<8x8x512xf32, #tpu.memory_space<vmem>>, vector<1x8x512xf32>
    %210 = vector.shape_cast %209 : vector<1x8x512xf32> to vector<8x512xf32>
    %211 = arith.truncf %203 : vector<8x128xf32> to vector<8x128xbf16>
    %cst_74 = arith.constant dense<0.000000e+00> : vector<8x512xf32>
    %212 = tpu.matmul %211, %0, %cst_74 {dimension_numbers = #tpu.dot_dimension_numbers<[1], [0], [0], [1], [0, 0, 1, 1], [], []>} : vector<8x128xbf16>, vector<128x512xbf16>, vector<8x512xf32> -> vector<8x512xf32>
    %213 = arith.addf %210, %212 : vector<8x512xf32>
    %214 = vector.extract_strided_slice %213 {offsets = [0, 0], sizes = [8, 128], strides = [1, 1]} : vector<8x512xf32> to vector<8x128xf32>
    %cst_75 = arith.constant 5.000000e-01 : f32
    %215 = vector.broadcast %cst_75 : f32 to vector<8x128xf32>
    %216 = arith.mulf %215, %214 : vector<8x128xf32>
    %217 = math.tanh %216 : vector<8x128xf32>
    %cst_76 = arith.constant 5.000000e-01 : f32
    %218 = vector.broadcast %cst_76 : f32 to vector<8x128xf32>
    %219 = arith.mulf %218, %217 : vector<8x128xf32>
    %cst_77 = arith.constant 5.000000e-01 : f32
    %220 = vector.broadcast %cst_77 : f32 to vector<8x128xf32>
    %221 = arith.addf %219, %220 : vector<8x128xf32>
    %222 = vector.extract_strided_slice %213 {offsets = [0, 128], sizes = [8, 128], strides = [1, 1]} : vector<8x512xf32> to vector<8x128xf32>
    %cst_78 = arith.constant 5.000000e-01 : f32
    %223 = vector.broadcast %cst_78 : f32 to vector<8x128xf32>
    %224 = arith.mulf %223, %222 : vector<8x128xf32>
    %225 = math.tanh %224 : vector<8x128xf32>
    %cst_79 = arith.constant 5.000000e-01 : f32
    %226 = vector.broadcast %cst_79 : f32 to vector<8x128xf32>
    %227 = arith.mulf %226, %225 : vector<8x128xf32>
    %cst_80 = arith.constant 5.000000e-01 : f32
    %228 = vector.broadcast %cst_80 : f32 to vector<8x128xf32>
    %229 = arith.addf %227, %228 : vector<8x128xf32>
    %230 = vector.extract_strided_slice %213 {offsets = [0, 256], sizes = [8, 128], strides = [1, 1]} : vector<8x512xf32> to vector<8x128xf32>
    %231 = math.tanh %230 : vector<8x128xf32>
    %232 = vector.extract_strided_slice %213 {offsets = [0, 384], sizes = [8, 128], strides = [1, 1]} : vector<8x512xf32> to vector<8x128xf32>
    %cst_81 = arith.constant 5.000000e-01 : f32
    %233 = vector.broadcast %cst_81 : f32 to vector<8x128xf32>
    %234 = arith.mulf %233, %232 : vector<8x128xf32>
    %235 = math.tanh %234 : vector<8x128xf32>
    %cst_82 = arith.constant 5.000000e-01 : f32
    %236 = vector.broadcast %cst_82 : f32 to vector<8x128xf32>
    %237 = arith.mulf %236, %235 : vector<8x128xf32>
    %cst_83 = arith.constant 5.000000e-01 : f32
    %238 = vector.broadcast %cst_83 : f32 to vector<8x128xf32>
    %239 = arith.addf %237, %238 : vector<8x128xf32>
    %240 = arith.mulf %229, %201 : vector<8x128xf32>
    %241 = arith.mulf %221, %231 : vector<8x128xf32>
    %242 = arith.addf %240, %241 : vector<8x128xf32>
    %243 = math.tanh %242 : vector<8x128xf32>
    %244 = arith.mulf %239, %243 : vector<8x128xf32>
    %245 = arith.index_cast %c5_i32 : i32 to index
    %c0_84 = arith.constant 0 : index
    %c0_85 = arith.constant 0 : index
    %246 = vector.load %arg12[%245, %c0_84, %c0_85] : memref<8x8x128xf32, #tpu.memory_space<vmem>>, vector<1x8x128xf32>
    %247 = vector.shape_cast %246 : vector<1x8x128xf32> to vector<8x128xf32>
    %248 = vector.shape_cast %244 : vector<8x128xf32> to vector<1x8x128xf32>
    tpu.vector_store %arg12[%245, %c0_84, %c0_85], %248 {strides = array<i32>} : memref<8x8x128xf32, #tpu.memory_space<vmem>>, vector<1x8x128xf32>,
    %c6_i32 = arith.constant 6 : i32
    %249 = arith.index_cast %c6_i32 : i32 to index
    %c0_86 = arith.constant 0 : index
    %c0_87 = arith.constant 0 : index
    %250 = vector.load %arg1[%249, %c0_86, %c0_87] : memref<8x8x512xf32, #tpu.memory_space<vmem>>, vector<1x8x512xf32>
    %251 = vector.shape_cast %250 : vector<1x8x512xf32> to vector<8x512xf32>
    %252 = arith.truncf %244 : vector<8x128xf32> to vector<8x128xbf16>
    %cst_88 = arith.constant dense<0.000000e+00> : vector<8x512xf32>
    %253 = tpu.matmul %252, %0, %cst_88 {dimension_numbers = #tpu.dot_dimension_numbers<[1], [0], [0], [1], [0, 0, 1, 1], [], []>} : vector<8x128xbf16>, vector<128x512xbf16>, vector<8x512xf32> -> vector<8x512xf32>
    %254 = arith.addf %251, %253 : vector<8x512xf32>
    %255 = vector.extract_strided_slice %254 {offsets = [0, 0], sizes = [8, 128], strides = [1, 1]} : vector<8x512xf32> to vector<8x128xf32>
    %cst_89 = arith.constant 5.000000e-01 : f32
    %256 = vector.broadcast %cst_89 : f32 to vector<8x128xf32>
    %257 = arith.mulf %256, %255 : vector<8x128xf32>
    %258 = math.tanh %257 : vector<8x128xf32>
    %cst_90 = arith.constant 5.000000e-01 : f32
    %259 = vector.broadcast %cst_90 : f32 to vector<8x128xf32>
    %260 = arith.mulf %259, %258 : vector<8x128xf32>
    %cst_91 = arith.constant 5.000000e-01 : f32
    %261 = vector.broadcast %cst_91 : f32 to vector<8x128xf32>
    %262 = arith.addf %260, %261 : vector<8x128xf32>
    %263 = vector.extract_strided_slice %254 {offsets = [0, 128], sizes = [8, 128], strides = [1, 1]} : vector<8x512xf32> to vector<8x128xf32>
    %cst_92 = arith.constant 5.000000e-01 : f32
    %264 = vector.broadcast %cst_92 : f32 to vector<8x128xf32>
    %265 = arith.mulf %264, %263 : vector<8x128xf32>
    %266 = math.tanh %265 : vector<8x128xf32>
    %cst_93 = arith.constant 5.000000e-01 : f32
    %267 = vector.broadcast %cst_93 : f32 to vector<8x128xf32>
    %268 = arith.mulf %267, %266 : vector<8x128xf32>
    %cst_94 = arith.constant 5.000000e-01 : f32
    %269 = vector.broadcast %cst_94 : f32 to vector<8x128xf32>
    %270 = arith.addf %268, %269 : vector<8x128xf32>
    %271 = vector.extract_strided_slice %254 {offsets = [0, 256], sizes = [8, 128], strides = [1, 1]} : vector<8x512xf32> to vector<8x128xf32>
    %272 = math.tanh %271 : vector<8x128xf32>
    %273 = vector.extract_strided_slice %254 {offsets = [0, 384], sizes = [8, 128], strides = [1, 1]} : vector<8x512xf32> to vector<8x128xf32>
    %cst_95 = arith.constant 5.000000e-01 : f32
    %274 = vector.broadcast %cst_95 : f32 to vector<8x128xf32>
    %275 = arith.mulf %274, %273 : vector<8x128xf32>
    %276 = math.tanh %275 : vector<8x128xf32>
    %cst_96 = arith.constant 5.000000e-01 : f32
    %277 = vector.broadcast %cst_96 : f32 to vector<8x128xf32>
    %278 = arith.mulf %277, %276 : vector<8x128xf32>
    %cst_97 = arith.constant 5.000000e-01 : f32
    %279 = vector.broadcast %cst_97 : f32 to vector<8x128xf32>
    %280 = arith.addf %278, %279 : vector<8x128xf32>
    %281 = arith.mulf %270, %242 : vector<8x128xf32>
    %282 = arith.mulf %262, %272 : vector<8x128xf32>
    %283 = arith.addf %281, %282 : vector<8x128xf32>
    %284 = math.tanh %283 : vector<8x128xf32>
    %285 = arith.mulf %280, %284 : vector<8x128xf32>
    %286 = arith.index_cast %c6_i32 : i32 to index
    %c0_98 = arith.constant 0 : index
    %c0_99 = arith.constant 0 : index
    %287 = vector.load %arg12[%286, %c0_98, %c0_99] : memref<8x8x128xf32, #tpu.memory_space<vmem>>, vector<1x8x128xf32>
    %288 = vector.shape_cast %287 : vector<1x8x128xf32> to vector<8x128xf32>
    %289 = vector.shape_cast %285 : vector<8x128xf32> to vector<1x8x128xf32>
    tpu.vector_store %arg12[%286, %c0_98, %c0_99], %289 {strides = array<i32>} : memref<8x8x128xf32, #tpu.memory_space<vmem>>, vector<1x8x128xf32>,
    %c7_i32 = arith.constant 7 : i32
    %290 = arith.index_cast %c7_i32 : i32 to index
    %c0_100 = arith.constant 0 : index
    %c0_101 = arith.constant 0 : index
    %291 = vector.load %arg1[%290, %c0_100, %c0_101] : memref<8x8x512xf32, #tpu.memory_space<vmem>>, vector<1x8x512xf32>
    %292 = vector.shape_cast %291 : vector<1x8x512xf32> to vector<8x512xf32>
    %293 = arith.truncf %285 : vector<8x128xf32> to vector<8x128xbf16>
    %cst_102 = arith.constant dense<0.000000e+00> : vector<8x512xf32>
    %294 = tpu.matmul %293, %0, %cst_102 {dimension_numbers = #tpu.dot_dimension_numbers<[1], [0], [0], [1], [0, 0, 1, 1], [], []>} : vector<8x128xbf16>, vector<128x512xbf16>, vector<8x512xf32> -> vector<8x512xf32>
    %295 = arith.addf %292, %294 : vector<8x512xf32>
    %296 = vector.extract_strided_slice %295 {offsets = [0, 0], sizes = [8, 128], strides = [1, 1]} : vector<8x512xf32> to vector<8x128xf32>
    %cst_103 = arith.constant 5.000000e-01 : f32
    %297 = vector.broadcast %cst_103 : f32 to vector<8x128xf32>
    %298 = arith.mulf %297, %296 : vector<8x128xf32>
    %299 = math.tanh %298 : vector<8x128xf32>
    %cst_104 = arith.constant 5.000000e-01 : f32
    %300 = vector.broadcast %cst_104 : f32 to vector<8x128xf32>
    %301 = arith.mulf %300, %299 : vector<8x128xf32>
    %cst_105 = arith.constant 5.000000e-01 : f32
    %302 = vector.broadcast %cst_105 : f32 to vector<8x128xf32>
    %303 = arith.addf %301, %302 : vector<8x128xf32>
    %304 = vector.extract_strided_slice %295 {offsets = [0, 128], sizes = [8, 128], strides = [1, 1]} : vector<8x512xf32> to vector<8x128xf32>
    %cst_106 = arith.constant 5.000000e-01 : f32
    %305 = vector.broadcast %cst_106 : f32 to vector<8x128xf32>
    %306 = arith.mulf %305, %304 : vector<8x128xf32>
    %307 = math.tanh %306 : vector<8x128xf32>
    %cst_107 = arith.constant 5.000000e-01 : f32
    %308 = vector.broadcast %cst_107 : f32 to vector<8x128xf32>
    %309 = arith.mulf %308, %307 : vector<8x128xf32>
    %cst_108 = arith.constant 5.000000e-01 : f32
    %310 = vector.broadcast %cst_108 : f32 to vector<8x128xf32>
    %311 = arith.addf %309, %310 : vector<8x128xf32>
    %312 = vector.extract_strided_slice %295 {offsets = [0, 256], sizes = [8, 128], strides = [1, 1]} : vector<8x512xf32> to vector<8x128xf32>
    %313 = math.tanh %312 : vector<8x128xf32>
    %314 = vector.extract_strided_slice %295 {offsets = [0, 384], sizes = [8, 128], strides = [1, 1]} : vector<8x512xf32> to vector<8x128xf32>
    %cst_109 = arith.constant 5.000000e-01 : f32
    %315 = vector.broadcast %cst_109 : f32 to vector<8x128xf32>
    %316 = arith.mulf %315, %314 : vector<8x128xf32>
    %317 = math.tanh %316 : vector<8x128xf32>
    %cst_110 = arith.constant 5.000000e-01 : f32
    %318 = vector.broadcast %cst_110 : f32 to vector<8x128xf32>
    %319 = arith.mulf %318, %317 : vector<8x128xf32>
    %cst_111 = arith.constant 5.000000e-01 : f32
    %320 = vector.broadcast %cst_111 : f32 to vector<8x128xf32>
    %321 = arith.addf %319, %320 : vector<8x128xf32>
    %322 = arith.mulf %311, %283 : vector<8x128xf32>
    %323 = arith.mulf %303, %313 : vector<8x128xf32>
    %324 = arith.addf %322, %323 : vector<8x128xf32>
    %325 = math.tanh %324 : vector<8x128xf32>
    %326 = arith.mulf %321, %325 : vector<8x128xf32>
    %327 = arith.index_cast %c7_i32 : i32 to index
    %c0_112 = arith.constant 0 : index
    %c0_113 = arith.constant 0 : index
    %328 = vector.load %arg12[%327, %c0_112, %c0_113] : memref<8x8x128xf32, #tpu.memory_space<vmem>>, vector<1x8x128xf32>
    %329 = vector.shape_cast %328 : vector<1x8x128xf32> to vector<8x128xf32>
    %330 = vector.shape_cast %326 : vector<8x128xf32> to vector<1x8x128xf32>
    tpu.vector_store %arg12[%327, %c0_112, %c0_113], %330 {strides = array<i32>} : memref<8x8x128xf32, #tpu.memory_space<vmem>>, vector<1x8x128xf32>,
    %c8_i32 = arith.constant 8 : i32
    %c0_114 = arith.constant 0 : index
    %c0_115 = arith.constant 0 : index
    %c0_116 = arith.constant 0 : index
    %331 = vector.load %arg12[%c0_114, %c0_115, %c0_116] : memref<8x8x128xf32, #tpu.memory_space<vmem>>, vector<8x8x128xf32>
    %332 = vector.shape_cast %331 : vector<8x8x128xf32> to vector<64x128xf32>
    %333 = arith.truncf %332 : vector<64x128xf32> to vector<64x128xbf16>
    %c0_117 = arith.constant 0 : index
    %c0_118 = arith.constant 0 : index
    %334 = vector.load %arg3[%c0_117, %c0_118] : memref<128x512xbf16, #tpu.memory_space<vmem>>, vector<128x512xbf16>
    %cst_119 = arith.constant dense<0.000000e+00> : vector<64x512xf32>
    %335 = tpu.matmul %333, %334, %cst_119 {dimension_numbers = #tpu.dot_dimension_numbers<[1], [0], [0], [1], [0, 0, 1, 1], [], []>} : vector<64x128xbf16>, vector<128x512xbf16>, vector<64x512xf32> -> vector<64x512xf32>
    %c0_120 = arith.constant 0 : index
    %c0_121 = arith.constant 0 : index
    %336 = vector.load %arg5[%c0_120, %c0_121] : memref<1x512xf32, #tpu.memory_space<vmem>>, vector<1x512xf32>
    %337 = vector.broadcast %336 : vector<1x512xf32> to vector<64x512xf32>
    %338 = arith.addf %335, %337 : vector<64x512xf32>
    %339 = vector.shape_cast %338 : vector<64x512xf32> to vector<8x8x512xf32>
    %c0_122 = arith.constant 0 : index
    %c0_123 = arith.constant 0 : index
    %c0_124 = arith.constant 0 : index
    %340 = vector.load %arg13[%c0_122, %c0_123, %c0_124] : memref<8x8x512xf32, #tpu.memory_space<vmem>>, vector<8x8x512xf32>
    tpu.vector_store %arg13[%c0_122, %c0_123, %c0_124], %339 {strides = array<i32>} : memref<8x8x512xf32, #tpu.memory_space<vmem>>, vector<8x8x512xf32>,
    %c0_125 = arith.constant 0 : index
    %c0_126 = arith.constant 0 : index
    %341 = vector.load %arg4[%c0_125, %c0_126] : memref<128x512xbf16, #tpu.memory_space<vmem>>, vector<128x512xbf16>
    %cst_127 = arith.constant 0.000000e+00 : f32
    %342 = vector.broadcast %cst_127 : f32 to vector<8x128xf32>
    %cst_128 = arith.constant 0.000000e+00 : f32
    %343 = vector.broadcast %cst_128 : f32 to vector<8x128xf32>
    %c0_i32_129 = arith.constant 0 : i32
    %344 = arith.index_cast %c0_i32_129 : i32 to index
    %c0_130 = arith.constant 0 : index
    %c0_131 = arith.constant 0 : index
    %345 = vector.load %arg13[%344, %c0_130, %c0_131] : memref<8x8x512xf32, #tpu.memory_space<vmem>>, vector<1x8x512xf32>
    %346 = vector.shape_cast %345 : vector<1x8x512xf32> to vector<8x512xf32>
    %347 = arith.truncf %342 : vector<8x128xf32> to vector<8x128xbf16>
    %cst_132 = arith.constant dense<0.000000e+00> : vector<8x512xf32>
    %348 = tpu.matmul %347, %341, %cst_132 {dimension_numbers = #tpu.dot_dimension_numbers<[1], [0], [0], [1], [0, 0, 1, 1], [], []>} : vector<8x128xbf16>, vector<128x512xbf16>, vector<8x512xf32> -> vector<8x512xf32>
    %349 = arith.addf %346, %348 : vector<8x512xf32>
    %350 = vector.extract_strided_slice %349 {offsets = [0, 0], sizes = [8, 128], strides = [1, 1]} : vector<8x512xf32> to vector<8x128xf32>
    %cst_133 = arith.constant 5.000000e-01 : f32
    %351 = vector.broadcast %cst_133 : f32 to vector<8x128xf32>
    %352 = arith.mulf %351, %350 : vector<8x128xf32>
    %353 = math.tanh %352 : vector<8x128xf32>
    %cst_134 = arith.constant 5.000000e-01 : f32
    %354 = vector.broadcast %cst_134 : f32 to vector<8x128xf32>
    %355 = arith.mulf %354, %353 : vector<8x128xf32>
    %cst_135 = arith.constant 5.000000e-01 : f32
    %356 = vector.broadcast %cst_135 : f32 to vector<8x128xf32>
    %357 = arith.addf %355, %356 : vector<8x128xf32>
    %358 = vector.extract_strided_slice %349 {offsets = [0, 128], sizes = [8, 128], strides = [1, 1]} : vector<8x512xf32> to vector<8x128xf32>
    %cst_136 = arith.constant 5.000000e-01 : f32
    %359 = vector.broadcast %cst_136 : f32 to vector<8x128xf32>
    %360 = arith.mulf %359, %358 : vector<8x128xf32>
    %361 = math.tanh %360 : vector<8x128xf32>
    %cst_137 = arith.constant 5.000000e-01 : f32
    %362 = vector.broadcast %cst_137 : f32 to vector<8x128xf32>
    %363 = arith.mulf %362, %361 : vector<8x128xf32>
    %cst_138 = arith.constant 5.000000e-01 : f32
    %364 = vector.broadcast %cst_138 : f32 to vector<8x128xf32>
    %365 = arith.addf %363, %364 : vector<8x128xf32>
    %366 = vector.extract_strided_slice %349 {offsets = [0, 256], sizes = [8, 128], strides = [1, 1]} : vector<8x512xf32> to vector<8x128xf32>
    %367 = math.tanh %366 : vector<8x128xf32>
    %368 = vector.extract_strided_slice %349 {offsets = [0, 384], sizes = [8, 128], strides = [1, 1]} : vector<8x512xf32> to vector<8x128xf32>
    %cst_139 = arith.constant 5.000000e-01 : f32
    %369 = vector.broadcast %cst_139 : f32 to vector<8x128xf32>
    %370 = arith.mulf %369, %368 : vector<8x128xf32>
    %371 = math.tanh %370 : vector<8x128xf32>
    %cst_140 = arith.constant 5.000000e-01 : f32
    %372 = vector.broadcast %cst_140 : f32 to vector<8x128xf32>
    %373 = arith.mulf %372, %371 : vector<8x128xf32>
    %cst_141 = arith.constant 5.000000e-01 : f32
    %374 = vector.broadcast %cst_141 : f32 to vector<8x128xf32>
    %375 = arith.addf %373, %374 : vector<8x128xf32>
    %376 = arith.mulf %365, %343 : vector<8x128xf32>
    %377 = arith.mulf %357, %367 : vector<8x128xf32>
    %378 = arith.addf %376, %377 : vector<8x128xf32>
    %379 = math.tanh %378 : vector<8x128xf32>
    %380 = arith.mulf %375, %379 : vector<8x128xf32>
    %381 = arith.index_cast %c0_i32_129 : i32 to index
    %c0_142 = arith.constant 0 : index
    %c0_143 = arith.constant 0 : index
    %382 = vector.load %arg12[%381, %c0_142, %c0_143] : memref<8x8x128xf32, #tpu.memory_space<vmem>>, vector<1x8x128xf32>
    %383 = vector.shape_cast %382 : vector<1x8x128xf32> to vector<8x128xf32>
    %384 = vector.shape_cast %380 : vector<8x128xf32> to vector<1x8x128xf32>
    tpu.vector_store %arg12[%381, %c0_142, %c0_143], %384 {strides = array<i32>} : memref<8x8x128xf32, #tpu.memory_space<vmem>>, vector<1x8x128xf32>,
    %c1_i32_144 = arith.constant 1 : i32
    %385 = arith.index_cast %c1_i32_144 : i32 to index
    %c0_145 = arith.constant 0 : index
    %c0_146 = arith.constant 0 : index
    %386 = vector.load %arg13[%385, %c0_145, %c0_146] : memref<8x8x512xf32, #tpu.memory_space<vmem>>, vector<1x8x512xf32>
    %387 = vector.shape_cast %386 : vector<1x8x512xf32> to vector<8x512xf32>
    %388 = arith.truncf %380 : vector<8x128xf32> to vector<8x128xbf16>
    %cst_147 = arith.constant dense<0.000000e+00> : vector<8x512xf32>
    %389 = tpu.matmul %388, %341, %cst_147 {dimension_numbers = #tpu.dot_dimension_numbers<[1], [0], [0], [1], [0, 0, 1, 1], [], []>} : vector<8x128xbf16>, vector<128x512xbf16>, vector<8x512xf32> -> vector<8x512xf32>
    %390 = arith.addf %387, %389 : vector<8x512xf32>
    %391 = vector.extract_strided_slice %390 {offsets = [0, 0], sizes = [8, 128], strides = [1, 1]} : vector<8x512xf32> to vector<8x128xf32>
    %cst_148 = arith.constant 5.000000e-01 : f32
    %392 = vector.broadcast %cst_148 : f32 to vector<8x128xf32>
    %393 = arith.mulf %392, %391 : vector<8x128xf32>
    %394 = math.tanh %393 : vector<8x128xf32>
    %cst_149 = arith.constant 5.000000e-01 : f32
    %395 = vector.broadcast %cst_149 : f32 to vector<8x128xf32>
    %396 = arith.mulf %395, %394 : vector<8x128xf32>
    %cst_150 = arith.constant 5.000000e-01 : f32
    %397 = vector.broadcast %cst_150 : f32 to vector<8x128xf32>
    %398 = arith.addf %396, %397 : vector<8x128xf32>
    %399 = vector.extract_strided_slice %390 {offsets = [0, 128], sizes = [8, 128], strides = [1, 1]} : vector<8x512xf32> to vector<8x128xf32>
    %cst_151 = arith.constant 5.000000e-01 : f32
    %400 = vector.broadcast %cst_151 : f32 to vector<8x128xf32>
    %401 = arith.mulf %400, %399 : vector<8x128xf32>
    %402 = math.tanh %401 : vector<8x128xf32>
    %cst_152 = arith.constant 5.000000e-01 : f32
    %403 = vector.broadcast %cst_152 : f32 to vector<8x128xf32>
    %404 = arith.mulf %403, %402 : vector<8x128xf32>
    %cst_153 = arith.constant 5.000000e-01 : f32
    %405 = vector.broadcast %cst_153 : f32 to vector<8x128xf32>
    %406 = arith.addf %404, %405 : vector<8x128xf32>
    %407 = vector.extract_strided_slice %390 {offsets = [0, 256], sizes = [8, 128], strides = [1, 1]} : vector<8x512xf32> to vector<8x128xf32>
    %408 = math.tanh %407 : vector<8x128xf32>
    %409 = vector.extract_strided_slice %390 {offsets = [0, 384], sizes = [8, 128], strides = [1, 1]} : vector<8x512xf32> to vector<8x128xf32>
    %cst_154 = arith.constant 5.000000e-01 : f32
    %410 = vector.broadcast %cst_154 : f32 to vector<8x128xf32>
    %411 = arith.mulf %410, %409 : vector<8x128xf32>
    %412 = math.tanh %411 : vector<8x128xf32>
    %cst_155 = arith.constant 5.000000e-01 : f32
    %413 = vector.broadcast %cst_155 : f32 to vector<8x128xf32>
    %414 = arith.mulf %413, %412 : vector<8x128xf32>
    %cst_156 = arith.constant 5.000000e-01 : f32
    %415 = vector.broadcast %cst_156 : f32 to vector<8x128xf32>
    %416 = arith.addf %414, %415 : vector<8x128xf32>
    %417 = arith.mulf %406, %378 : vector<8x128xf32>
    %418 = arith.mulf %398, %408 : vector<8x128xf32>
    %419 = arith.addf %417, %418 : vector<8x128xf32>
    %420 = math.tanh %419 : vector<8x128xf32>
    %421 = arith.mulf %416, %420 : vector<8x128xf32>
    %422 = arith.index_cast %c1_i32_144 : i32 to index
    %c0_157 = arith.constant 0 : index
    %c0_158 = arith.constant 0 : index
    %423 = vector.load %arg12[%422, %c0_157, %c0_158] : memref<8x8x128xf32, #tpu.memory_space<vmem>>, vector<1x8x128xf32>
    %424 = vector.shape_cast %423 : vector<1x8x128xf32> to vector<8x128xf32>
    %425 = vector.shape_cast %421 : vector<8x128xf32> to vector<1x8x128xf32>
    tpu.vector_store %arg12[%422, %c0_157, %c0_158], %425 {strides = array<i32>} : memref<8x8x128xf32, #tpu.memory_space<vmem>>, vector<1x8x128xf32>,
    %c2_i32_159 = arith.constant 2 : i32
    %426 = arith.index_cast %c2_i32_159 : i32 to index
    %c0_160 = arith.constant 0 : index
    %c0_161 = arith.constant 0 : index
    %427 = vector.load %arg13[%426, %c0_160, %c0_161] : memref<8x8x512xf32, #tpu.memory_space<vmem>>, vector<1x8x512xf32>
    %428 = vector.shape_cast %427 : vector<1x8x512xf32> to vector<8x512xf32>
    %429 = arith.truncf %421 : vector<8x128xf32> to vector<8x128xbf16>
    %cst_162 = arith.constant dense<0.000000e+00> : vector<8x512xf32>
    %430 = tpu.matmul %429, %341, %cst_162 {dimension_numbers = #tpu.dot_dimension_numbers<[1], [0], [0], [1], [0, 0, 1, 1], [], []>} : vector<8x128xbf16>, vector<128x512xbf16>, vector<8x512xf32> -> vector<8x512xf32>
    %431 = arith.addf %428, %430 : vector<8x512xf32>
    %432 = vector.extract_strided_slice %431 {offsets = [0, 0], sizes = [8, 128], strides = [1, 1]} : vector<8x512xf32> to vector<8x128xf32>
    %cst_163 = arith.constant 5.000000e-01 : f32
    %433 = vector.broadcast %cst_163 : f32 to vector<8x128xf32>
    %434 = arith.mulf %433, %432 : vector<8x128xf32>
    %435 = math.tanh %434 : vector<8x128xf32>
    %cst_164 = arith.constant 5.000000e-01 : f32
    %436 = vector.broadcast %cst_164 : f32 to vector<8x128xf32>
    %437 = arith.mulf %436, %435 : vector<8x128xf32>
    %cst_165 = arith.constant 5.000000e-01 : f32
    %438 = vector.broadcast %cst_165 : f32 to vector<8x128xf32>
    %439 = arith.addf %437, %438 : vector<8x128xf32>
    %440 = vector.extract_strided_slice %431 {offsets = [0, 128], sizes = [8, 128], strides = [1, 1]} : vector<8x512xf32> to vector<8x128xf32>
    %cst_166 = arith.constant 5.000000e-01 : f32
    %441 = vector.broadcast %cst_166 : f32 to vector<8x128xf32>
    %442 = arith.mulf %441, %440 : vector<8x128xf32>
    %443 = math.tanh %442 : vector<8x128xf32>
    %cst_167 = arith.constant 5.000000e-01 : f32
    %444 = vector.broadcast %cst_167 : f32 to vector<8x128xf32>
    %445 = arith.mulf %444, %443 : vector<8x128xf32>
    %cst_168 = arith.constant 5.000000e-01 : f32
    %446 = vector.broadcast %cst_168 : f32 to vector<8x128xf32>
    %447 = arith.addf %445, %446 : vector<8x128xf32>
    %448 = vector.extract_strided_slice %431 {offsets = [0, 256], sizes = [8, 128], strides = [1, 1]} : vector<8x512xf32> to vector<8x128xf32>
    %449 = math.tanh %448 : vector<8x128xf32>
    %450 = vector.extract_strided_slice %431 {offsets = [0, 384], sizes = [8, 128], strides = [1, 1]} : vector<8x512xf32> to vector<8x128xf32>
    %cst_169 = arith.constant 5.000000e-01 : f32
    %451 = vector.broadcast %cst_169 : f32 to vector<8x128xf32>
    %452 = arith.mulf %451, %450 : vector<8x128xf32>
    %453 = math.tanh %452 : vector<8x128xf32>
    %cst_170 = arith.constant 5.000000e-01 : f32
    %454 = vector.broadcast %cst_170 : f32 to vector<8x128xf32>
    %455 = arith.mulf %454, %453 : vector<8x128xf32>
    %cst_171 = arith.constant 5.000000e-01 : f32
    %456 = vector.broadcast %cst_171 : f32 to vector<8x128xf32>
    %457 = arith.addf %455, %456 : vector<8x128xf32>
    %458 = arith.mulf %447, %419 : vector<8x128xf32>
    %459 = arith.mulf %439, %449 : vector<8x128xf32>
    %460 = arith.addf %458, %459 : vector<8x128xf32>
    %461 = math.tanh %460 : vector<8x128xf32>
    %462 = arith.mulf %457, %461 : vector<8x128xf32>
    %463 = arith.index_cast %c2_i32_159 : i32 to index
    %c0_172 = arith.constant 0 : index
    %c0_173 = arith.constant 0 : index
    %464 = vector.load %arg12[%463, %c0_172, %c0_173] : memref<8x8x128xf32, #tpu.memory_space<vmem>>, vector<1x8x128xf32>
    %465 = vector.shape_cast %464 : vector<1x8x128xf32> to vector<8x128xf32>
    %466 = vector.shape_cast %462 : vector<8x128xf32> to vector<1x8x128xf32>
    tpu.vector_store %arg12[%463, %c0_172, %c0_173], %466 {strides = array<i32>} : memref<8x8x128xf32, #tpu.memory_space<vmem>>, vector<1x8x128xf32>,
    %c3_i32_174 = arith.constant 3 : i32
    %467 = arith.index_cast %c3_i32_174 : i32 to index
    %c0_175 = arith.constant 0 : index
    %c0_176 = arith.constant 0 : index
    %468 = vector.load %arg13[%467, %c0_175, %c0_176] : memref<8x8x512xf32, #tpu.memory_space<vmem>>, vector<1x8x512xf32>
    %469 = vector.shape_cast %468 : vector<1x8x512xf32> to vector<8x512xf32>
    %470 = arith.truncf %462 : vector<8x128xf32> to vector<8x128xbf16>
    %cst_177 = arith.constant dense<0.000000e+00> : vector<8x512xf32>
    %471 = tpu.matmul %470, %341, %cst_177 {dimension_numbers = #tpu.dot_dimension_numbers<[1], [0], [0], [1], [0, 0, 1, 1], [], []>} : vector<8x128xbf16>, vector<128x512xbf16>, vector<8x512xf32> -> vector<8x512xf32>
    %472 = arith.addf %469, %471 : vector<8x512xf32>
    %473 = vector.extract_strided_slice %472 {offsets = [0, 0], sizes = [8, 128], strides = [1, 1]} : vector<8x512xf32> to vector<8x128xf32>
    %cst_178 = arith.constant 5.000000e-01 : f32
    %474 = vector.broadcast %cst_178 : f32 to vector<8x128xf32>
    %475 = arith.mulf %474, %473 : vector<8x128xf32>
    %476 = math.tanh %475 : vector<8x128xf32>
    %cst_179 = arith.constant 5.000000e-01 : f32
    %477 = vector.broadcast %cst_179 : f32 to vector<8x128xf32>
    %478 = arith.mulf %477, %476 : vector<8x128xf32>
    %cst_180 = arith.constant 5.000000e-01 : f32
    %479 = vector.broadcast %cst_180 : f32 to vector<8x128xf32>
    %480 = arith.addf %478, %479 : vector<8x128xf32>
    %481 = vector.extract_strided_slice %472 {offsets = [0, 128], sizes = [8, 128], strides = [1, 1]} : vector<8x512xf32> to vector<8x128xf32>
    %cst_181 = arith.constant 5.000000e-01 : f32
    %482 = vector.broadcast %cst_181 : f32 to vector<8x128xf32>
    %483 = arith.mulf %482, %481 : vector<8x128xf32>
    %484 = math.tanh %483 : vector<8x128xf32>
    %cst_182 = arith.constant 5.000000e-01 : f32
    %485 = vector.broadcast %cst_182 : f32 to vector<8x128xf32>
    %486 = arith.mulf %485, %484 : vector<8x128xf32>
    %cst_183 = arith.constant 5.000000e-01 : f32
    %487 = vector.broadcast %cst_183 : f32 to vector<8x128xf32>
    %488 = arith.addf %486, %487 : vector<8x128xf32>
    %489 = vector.extract_strided_slice %472 {offsets = [0, 256], sizes = [8, 128], strides = [1, 1]} : vector<8x512xf32> to vector<8x128xf32>
    %490 = math.tanh %489 : vector<8x128xf32>
    %491 = vector.extract_strided_slice %472 {offsets = [0, 384], sizes = [8, 128], strides = [1, 1]} : vector<8x512xf32> to vector<8x128xf32>
    %cst_184 = arith.constant 5.000000e-01 : f32
    %492 = vector.broadcast %cst_184 : f32 to vector<8x128xf32>
    %493 = arith.mulf %492, %491 : vector<8x128xf32>
    %494 = math.tanh %493 : vector<8x128xf32>
    %cst_185 = arith.constant 5.000000e-01 : f32
    %495 = vector.broadcast %cst_185 : f32 to vector<8x128xf32>
    %496 = arith.mulf %495, %494 : vector<8x128xf32>
    %cst_186 = arith.constant 5.000000e-01 : f32
    %497 = vector.broadcast %cst_186 : f32 to vector<8x128xf32>
    %498 = arith.addf %496, %497 : vector<8x128xf32>
    %499 = arith.mulf %488, %460 : vector<8x128xf32>
    %500 = arith.mulf %480, %490 : vector<8x128xf32>
    %501 = arith.addf %499, %500 : vector<8x128xf32>
    %502 = math.tanh %501 : vector<8x128xf32>
    %503 = arith.mulf %498, %502 : vector<8x128xf32>
    %504 = arith.index_cast %c3_i32_174 : i32 to index
    %c0_187 = arith.constant 0 : index
    %c0_188 = arith.constant 0 : index
    %505 = vector.load %arg12[%504, %c0_187, %c0_188] : memref<8x8x128xf32, #tpu.memory_space<vmem>>, vector<1x8x128xf32>
    %506 = vector.shape_cast %505 : vector<1x8x128xf32> to vector<8x128xf32>
    %507 = vector.shape_cast %503 : vector<8x128xf32> to vector<1x8x128xf32>
    tpu.vector_store %arg12[%504, %c0_187, %c0_188], %507 {strides = array<i32>} : memref<8x8x128xf32, #tpu.memory_space<vmem>>, vector<1x8x128xf32>,
    %c4_i32_189 = arith.constant 4 : i32
    %508 = arith.index_cast %c4_i32_189 : i32 to index
    %c0_190 = arith.constant 0 : index
    %c0_191 = arith.constant 0 : index
    %509 = vector.load %arg13[%508, %c0_190, %c0_191] : memref<8x8x512xf32, #tpu.memory_space<vmem>>, vector<1x8x512xf32>
    %510 = vector.shape_cast %509 : vector<1x8x512xf32> to vector<8x512xf32>
    %511 = arith.truncf %503 : vector<8x128xf32> to vector<8x128xbf16>
    %cst_192 = arith.constant dense<0.000000e+00> : vector<8x512xf32>
    %512 = tpu.matmul %511, %341, %cst_192 {dimension_numbers = #tpu.dot_dimension_numbers<[1], [0], [0], [1], [0, 0, 1, 1], [], []>} : vector<8x128xbf16>, vector<128x512xbf16>, vector<8x512xf32> -> vector<8x512xf32>
    %513 = arith.addf %510, %512 : vector<8x512xf32>
    %514 = vector.extract_strided_slice %513 {offsets = [0, 0], sizes = [8, 128], strides = [1, 1]} : vector<8x512xf32> to vector<8x128xf32>
    %cst_193 = arith.constant 5.000000e-01 : f32
    %515 = vector.broadcast %cst_193 : f32 to vector<8x128xf32>
    %516 = arith.mulf %515, %514 : vector<8x128xf32>
    %517 = math.tanh %516 : vector<8x128xf32>
    %cst_194 = arith.constant 5.000000e-01 : f32
    %518 = vector.broadcast %cst_194 : f32 to vector<8x128xf32>
    %519 = arith.mulf %518, %517 : vector<8x128xf32>
    %cst_195 = arith.constant 5.000000e-01 : f32
    %520 = vector.broadcast %cst_195 : f32 to vector<8x128xf32>
    %521 = arith.addf %519, %520 : vector<8x128xf32>
    %522 = vector.extract_strided_slice %513 {offsets = [0, 128], sizes = [8, 128], strides = [1, 1]} : vector<8x512xf32> to vector<8x128xf32>
    %cst_196 = arith.constant 5.000000e-01 : f32
    %523 = vector.broadcast %cst_196 : f32 to vector<8x128xf32>
    %524 = arith.mulf %523, %522 : vector<8x128xf32>
    %525 = math.tanh %524 : vector<8x128xf32>
    %cst_197 = arith.constant 5.000000e-01 : f32
    %526 = vector.broadcast %cst_197 : f32 to vector<8x128xf32>
    %527 = arith.mulf %526, %525 : vector<8x128xf32>
    %cst_198 = arith.constant 5.000000e-01 : f32
    %528 = vector.broadcast %cst_198 : f32 to vector<8x128xf32>
    %529 = arith.addf %527, %528 : vector<8x128xf32>
    %530 = vector.extract_strided_slice %513 {offsets = [0, 256], sizes = [8, 128], strides = [1, 1]} : vector<8x512xf32> to vector<8x128xf32>
    %531 = math.tanh %530 : vector<8x128xf32>
    %532 = vector.extract_strided_slice %513 {offsets = [0, 384], sizes = [8, 128], strides = [1, 1]} : vector<8x512xf32> to vector<8x128xf32>
    %cst_199 = arith.constant 5.000000e-01 : f32
    %533 = vector.broadcast %cst_199 : f32 to vector<8x128xf32>
    %534 = arith.mulf %533, %532 : vector<8x128xf32>
    %535 = math.tanh %534 : vector<8x128xf32>
    %cst_200 = arith.constant 5.000000e-01 : f32
    %536 = vector.broadcast %cst_200 : f32 to vector<8x128xf32>
    %537 = arith.mulf %536, %535 : vector<8x128xf32>
    %cst_201 = arith.constant 5.000000e-01 : f32
    %538 = vector.broadcast %cst_201 : f32 to vector<8x128xf32>
    %539 = arith.addf %537, %538 : vector<8x128xf32>
    %540 = arith.mulf %529, %501 : vector<8x128xf32>
    %541 = arith.mulf %521, %531 : vector<8x128xf32>
    %542 = arith.addf %540, %541 : vector<8x128xf32>
    %543 = math.tanh %542 : vector<8x128xf32>
    %544 = arith.mulf %539, %543 : vector<8x128xf32>
    %545 = arith.index_cast %c4_i32_189 : i32 to index
    %c0_202 = arith.constant 0 : index
    %c0_203 = arith.constant 0 : index
    %546 = vector.load %arg12[%545, %c0_202, %c0_203] : memref<8x8x128xf32, #tpu.memory_space<vmem>>, vector<1x8x128xf32>
    %547 = vector.shape_cast %546 : vector<1x8x128xf32> to vector<8x128xf32>
    %548 = vector.shape_cast %544 : vector<8x128xf32> to vector<1x8x128xf32>
    tpu.vector_store %arg12[%545, %c0_202, %c0_203], %548 {strides = array<i32>} : memref<8x8x128xf32, #tpu.memory_space<vmem>>, vector<1x8x128xf32>,
    %c5_i32_204 = arith.constant 5 : i32
    %549 = arith.index_cast %c5_i32_204 : i32 to index
    %c0_205 = arith.constant 0 : index
    %c0_206 = arith.constant 0 : index
    %550 = vector.load %arg13[%549, %c0_205, %c0_206] : memref<8x8x512xf32, #tpu.memory_space<vmem>>, vector<1x8x512xf32>
    %551 = vector.shape_cast %550 : vector<1x8x512xf32> to vector<8x512xf32>
    %552 = arith.truncf %544 : vector<8x128xf32> to vector<8x128xbf16>
    %cst_207 = arith.constant dense<0.000000e+00> : vector<8x512xf32>
    %553 = tpu.matmul %552, %341, %cst_207 {dimension_numbers = #tpu.dot_dimension_numbers<[1], [0], [0], [1], [0, 0, 1, 1], [], []>} : vector<8x128xbf16>, vector<128x512xbf16>, vector<8x512xf32> -> vector<8x512xf32>
    %554 = arith.addf %551, %553 : vector<8x512xf32>
    %555 = vector.extract_strided_slice %554 {offsets = [0, 0], sizes = [8, 128], strides = [1, 1]} : vector<8x512xf32> to vector<8x128xf32>
    %cst_208 = arith.constant 5.000000e-01 : f32
    %556 = vector.broadcast %cst_208 : f32 to vector<8x128xf32>
    %557 = arith.mulf %556, %555 : vector<8x128xf32>
    %558 = math.tanh %557 : vector<8x128xf32>
    %cst_209 = arith.constant 5.000000e-01 : f32
    %559 = vector.broadcast %cst_209 : f32 to vector<8x128xf32>
    %560 = arith.mulf %559, %558 : vector<8x128xf32>
    %cst_210 = arith.constant 5.000000e-01 : f32
    %561 = vector.broadcast %cst_210 : f32 to vector<8x128xf32>
    %562 = arith.addf %560, %561 : vector<8x128xf32>
    %563 = vector.extract_strided_slice %554 {offsets = [0, 128], sizes = [8, 128], strides = [1, 1]} : vector<8x512xf32> to vector<8x128xf32>
    %cst_211 = arith.constant 5.000000e-01 : f32
    %564 = vector.broadcast %cst_211 : f32 to vector<8x128xf32>
    %565 = arith.mulf %564, %563 : vector<8x128xf32>
    %566 = math.tanh %565 : vector<8x128xf32>
    %cst_212 = arith.constant 5.000000e-01 : f32
    %567 = vector.broadcast %cst_212 : f32 to vector<8x128xf32>
    %568 = arith.mulf %567, %566 : vector<8x128xf32>
    %cst_213 = arith.constant 5.000000e-01 : f32
    %569 = vector.broadcast %cst_213 : f32 to vector<8x128xf32>
    %570 = arith.addf %568, %569 : vector<8x128xf32>
    %571 = vector.extract_strided_slice %554 {offsets = [0, 256], sizes = [8, 128], strides = [1, 1]} : vector<8x512xf32> to vector<8x128xf32>
    %572 = math.tanh %571 : vector<8x128xf32>
    %573 = vector.extract_strided_slice %554 {offsets = [0, 384], sizes = [8, 128], strides = [1, 1]} : vector<8x512xf32> to vector<8x128xf32>
    %cst_214 = arith.constant 5.000000e-01 : f32
    %574 = vector.broadcast %cst_214 : f32 to vector<8x128xf32>
    %575 = arith.mulf %574, %573 : vector<8x128xf32>
    %576 = math.tanh %575 : vector<8x128xf32>
    %cst_215 = arith.constant 5.000000e-01 : f32
    %577 = vector.broadcast %cst_215 : f32 to vector<8x128xf32>
    %578 = arith.mulf %577, %576 : vector<8x128xf32>
    %cst_216 = arith.constant 5.000000e-01 : f32
    %579 = vector.broadcast %cst_216 : f32 to vector<8x128xf32>
    %580 = arith.addf %578, %579 : vector<8x128xf32>
    %581 = arith.mulf %570, %542 : vector<8x128xf32>
    %582 = arith.mulf %562, %572 : vector<8x128xf32>
    %583 = arith.addf %581, %582 : vector<8x128xf32>
    %584 = math.tanh %583 : vector<8x128xf32>
    %585 = arith.mulf %580, %584 : vector<8x128xf32>
    %586 = arith.index_cast %c5_i32_204 : i32 to index
    %c0_217 = arith.constant 0 : index
    %c0_218 = arith.constant 0 : index
    %587 = vector.load %arg12[%586, %c0_217, %c0_218] : memref<8x8x128xf32, #tpu.memory_space<vmem>>, vector<1x8x128xf32>
    %588 = vector.shape_cast %587 : vector<1x8x128xf32> to vector<8x128xf32>
    %589 = vector.shape_cast %585 : vector<8x128xf32> to vector<1x8x128xf32>
    tpu.vector_store %arg12[%586, %c0_217, %c0_218], %589 {strides = array<i32>} : memref<8x8x128xf32, #tpu.memory_space<vmem>>, vector<1x8x128xf32>,
    %c6_i32_219 = arith.constant 6 : i32
    %590 = arith.index_cast %c6_i32_219 : i32 to index
    %c0_220 = arith.constant 0 : index
    %c0_221 = arith.constant 0 : index
    %591 = vector.load %arg13[%590, %c0_220, %c0_221] : memref<8x8x512xf32, #tpu.memory_space<vmem>>, vector<1x8x512xf32>
    %592 = vector.shape_cast %591 : vector<1x8x512xf32> to vector<8x512xf32>
    %593 = arith.truncf %585 : vector<8x128xf32> to vector<8x128xbf16>
    %cst_222 = arith.constant dense<0.000000e+00> : vector<8x512xf32>
    %594 = tpu.matmul %593, %341, %cst_222 {dimension_numbers = #tpu.dot_dimension_numbers<[1], [0], [0], [1], [0, 0, 1, 1], [], []>} : vector<8x128xbf16>, vector<128x512xbf16>, vector<8x512xf32> -> vector<8x512xf32>
    %595 = arith.addf %592, %594 : vector<8x512xf32>
    %596 = vector.extract_strided_slice %595 {offsets = [0, 0], sizes = [8, 128], strides = [1, 1]} : vector<8x512xf32> to vector<8x128xf32>
    %cst_223 = arith.constant 5.000000e-01 : f32
    %597 = vector.broadcast %cst_223 : f32 to vector<8x128xf32>
    %598 = arith.mulf %597, %596 : vector<8x128xf32>
    %599 = math.tanh %598 : vector<8x128xf32>
    %cst_224 = arith.constant 5.000000e-01 : f32
    %600 = vector.broadcast %cst_224 : f32 to vector<8x128xf32>
    %601 = arith.mulf %600, %599 : vector<8x128xf32>
    %cst_225 = arith.constant 5.000000e-01 : f32
    %602 = vector.broadcast %cst_225 : f32 to vector<8x128xf32>
    %603 = arith.addf %601, %602 : vector<8x128xf32>
    %604 = vector.extract_strided_slice %595 {offsets = [0, 128], sizes = [8, 128], strides = [1, 1]} : vector<8x512xf32> to vector<8x128xf32>
    %cst_226 = arith.constant 5.000000e-01 : f32
    %605 = vector.broadcast %cst_226 : f32 to vector<8x128xf32>
    %606 = arith.mulf %605, %604 : vector<8x128xf32>
    %607 = math.tanh %606 : vector<8x128xf32>
    %cst_227 = arith.constant 5.000000e-01 : f32
    %608 = vector.broadcast %cst_227 : f32 to vector<8x128xf32>
    %609 = arith.mulf %608, %607 : vector<8x128xf32>
    %cst_228 = arith.constant 5.000000e-01 : f32
    %610 = vector.broadcast %cst_228 : f32 to vector<8x128xf32>
    %611 = arith.addf %609, %610 : vector<8x128xf32>
    %612 = vector.extract_strided_slice %595 {offsets = [0, 256], sizes = [8, 128], strides = [1, 1]} : vector<8x512xf32> to vector<8x128xf32>
    %613 = math.tanh %612 : vector<8x128xf32>
    %614 = vector.extract_strided_slice %595 {offsets = [0, 384], sizes = [8, 128], strides = [1, 1]} : vector<8x512xf32> to vector<8x128xf32>
    %cst_229 = arith.constant 5.000000e-01 : f32
    %615 = vector.broadcast %cst_229 : f32 to vector<8x128xf32>
    %616 = arith.mulf %615, %614 : vector<8x128xf32>
    %617 = math.tanh %616 : vector<8x128xf32>
    %cst_230 = arith.constant 5.000000e-01 : f32
    %618 = vector.broadcast %cst_230 : f32 to vector<8x128xf32>
    %619 = arith.mulf %618, %617 : vector<8x128xf32>
    %cst_231 = arith.constant 5.000000e-01 : f32
    %620 = vector.broadcast %cst_231 : f32 to vector<8x128xf32>
    %621 = arith.addf %619, %620 : vector<8x128xf32>
    %622 = arith.mulf %611, %583 : vector<8x128xf32>
    %623 = arith.mulf %603, %613 : vector<8x128xf32>
    %624 = arith.addf %622, %623 : vector<8x128xf32>
    %625 = math.tanh %624 : vector<8x128xf32>
    %626 = arith.mulf %621, %625 : vector<8x128xf32>
    %627 = arith.index_cast %c6_i32_219 : i32 to index
    %c0_232 = arith.constant 0 : index
    %c0_233 = arith.constant 0 : index
    %628 = vector.load %arg12[%627, %c0_232, %c0_233] : memref<8x8x128xf32, #tpu.memory_space<vmem>>, vector<1x8x128xf32>
    %629 = vector.shape_cast %628 : vector<1x8x128xf32> to vector<8x128xf32>
    %630 = vector.shape_cast %626 : vector<8x128xf32> to vector<1x8x128xf32>
    tpu.vector_store %arg12[%627, %c0_232, %c0_233], %630 {strides = array<i32>} : memref<8x8x128xf32, #tpu.memory_space<vmem>>, vector<1x8x128xf32>,
    %c7_i32_234 = arith.constant 7 : i32
    %631 = arith.index_cast %c7_i32_234 : i32 to index
    %c0_235 = arith.constant 0 : index
    %c0_236 = arith.constant 0 : index
    %632 = vector.load %arg13[%631, %c0_235, %c0_236] : memref<8x8x512xf32, #tpu.memory_space<vmem>>, vector<1x8x512xf32>
    %633 = vector.shape_cast %632 : vector<1x8x512xf32> to vector<8x512xf32>
    %634 = arith.truncf %626 : vector<8x128xf32> to vector<8x128xbf16>
    %cst_237 = arith.constant dense<0.000000e+00> : vector<8x512xf32>
    %635 = tpu.matmul %634, %341, %cst_237 {dimension_numbers = #tpu.dot_dimension_numbers<[1], [0], [0], [1], [0, 0, 1, 1], [], []>} : vector<8x128xbf16>, vector<128x512xbf16>, vector<8x512xf32> -> vector<8x512xf32>
    %636 = arith.addf %633, %635 : vector<8x512xf32>
    %637 = vector.extract_strided_slice %636 {offsets = [0, 0], sizes = [8, 128], strides = [1, 1]} : vector<8x512xf32> to vector<8x128xf32>
    %cst_238 = arith.constant 5.000000e-01 : f32
    %638 = vector.broadcast %cst_238 : f32 to vector<8x128xf32>
    %639 = arith.mulf %638, %637 : vector<8x128xf32>
    %640 = math.tanh %639 : vector<8x128xf32>
    %cst_239 = arith.constant 5.000000e-01 : f32
    %641 = vector.broadcast %cst_239 : f32 to vector<8x128xf32>
    %642 = arith.mulf %641, %640 : vector<8x128xf32>
    %cst_240 = arith.constant 5.000000e-01 : f32
    %643 = vector.broadcast %cst_240 : f32 to vector<8x128xf32>
    %644 = arith.addf %642, %643 : vector<8x128xf32>
    %645 = vector.extract_strided_slice %636 {offsets = [0, 128], sizes = [8, 128], strides = [1, 1]} : vector<8x512xf32> to vector<8x128xf32>
    %cst_241 = arith.constant 5.000000e-01 : f32
    %646 = vector.broadcast %cst_241 : f32 to vector<8x128xf32>
    %647 = arith.mulf %646, %645 : vector<8x128xf32>
    %648 = math.tanh %647 : vector<8x128xf32>
    %cst_242 = arith.constant 5.000000e-01 : f32
    %649 = vector.broadcast %cst_242 : f32 to vector<8x128xf32>
    %650 = arith.mulf %649, %648 : vector<8x128xf32>
    %cst_243 = arith.constant 5.000000e-01 : f32
    %651 = vector.broadcast %cst_243 : f32 to vector<8x128xf32>
    %652 = arith.addf %650, %651 : vector<8x128xf32>
    %653 = vector.extract_strided_slice %636 {offsets = [0, 256], sizes = [8, 128], strides = [1, 1]} : vector<8x512xf32> to vector<8x128xf32>
    %654 = math.tanh %653 : vector<8x128xf32>
    %655 = vector.extract_strided_slice %636 {offsets = [0, 384], sizes = [8, 128], strides = [1, 1]} : vector<8x512xf32> to vector<8x128xf32>
    %cst_244 = arith.constant 5.000000e-01 : f32
    %656 = vector.broadcast %cst_244 : f32 to vector<8x128xf32>
    %657 = arith.mulf %656, %655 : vector<8x128xf32>
    %658 = math.tanh %657 : vector<8x128xf32>
    %cst_245 = arith.constant 5.000000e-01 : f32
    %659 = vector.broadcast %cst_245 : f32 to vector<8x128xf32>
    %660 = arith.mulf %659, %658 : vector<8x128xf32>
    %cst_246 = arith.constant 5.000000e-01 : f32
    %661 = vector.broadcast %cst_246 : f32 to vector<8x128xf32>
    %662 = arith.addf %660, %661 : vector<8x128xf32>
    %663 = arith.mulf %652, %624 : vector<8x128xf32>
    %664 = arith.mulf %644, %654 : vector<8x128xf32>
    %665 = arith.addf %663, %664 : vector<8x128xf32>
    %666 = math.tanh %665 : vector<8x128xf32>
    %667 = arith.mulf %662, %666 : vector<8x128xf32>
    %668 = arith.index_cast %c7_i32_234 : i32 to index
    %c0_247 = arith.constant 0 : index
    %c0_248 = arith.constant 0 : index
    %669 = vector.load %arg12[%668, %c0_247, %c0_248] : memref<8x8x128xf32, #tpu.memory_space<vmem>>, vector<1x8x128xf32>
    %670 = vector.shape_cast %669 : vector<1x8x128xf32> to vector<8x128xf32>
    %671 = vector.shape_cast %667 : vector<8x128xf32> to vector<1x8x128xf32>
    tpu.vector_store %arg12[%668, %c0_247, %c0_248], %671 {strides = array<i32>} : memref<8x8x128xf32, #tpu.memory_space<vmem>>, vector<1x8x128xf32>,
    %c8_i32_249 = arith.constant 8 : i32
    %c0_250 = arith.constant 0 : index
    %c0_251 = arith.constant 0 : index
    %c0_252 = arith.constant 0 : index
    %672 = vector.load %arg12[%c0_250, %c0_251, %c0_252] : memref<8x8x128xf32, #tpu.memory_space<vmem>>, vector<8x8x128xf32>
    %673 = vector.shape_cast %672 : vector<8x8x128xf32> to vector<64x128xf32>
    %674 = arith.truncf %673 : vector<64x128xf32> to vector<64x128xbf16>
    %c0_253 = arith.constant 0 : index
    %c0_254 = arith.constant 0 : index
    %675 = vector.load %arg6[%c0_253, %c0_254] : memref<128x512xbf16, #tpu.memory_space<vmem>>, vector<128x512xbf16>
    %cst_255 = arith.constant dense<0.000000e+00> : vector<64x512xf32>
    %676 = tpu.matmul %674, %675, %cst_255 {dimension_numbers = #tpu.dot_dimension_numbers<[1], [0], [0], [1], [0, 0, 1, 1], [], []>} : vector<64x128xbf16>, vector<128x512xbf16>, vector<64x512xf32> -> vector<64x512xf32>
    %c0_256 = arith.constant 0 : index
    %c0_257 = arith.constant 0 : index
    %677 = vector.load %arg8[%c0_256, %c0_257] : memref<1x512xf32, #tpu.memory_space<vmem>>, vector<1x512xf32>
    %678 = vector.broadcast %677 : vector<1x512xf32> to vector<64x512xf32>
    %679 = arith.addf %676, %678 : vector<64x512xf32>
    %680 = vector.shape_cast %679 : vector<64x512xf32> to vector<8x8x512xf32>
    %c0_258 = arith.constant 0 : index
    %c0_259 = arith.constant 0 : index
    %c0_260 = arith.constant 0 : index
    %681 = vector.load %arg13[%c0_258, %c0_259, %c0_260] : memref<8x8x512xf32, #tpu.memory_space<vmem>>, vector<8x8x512xf32>
    tpu.vector_store %arg13[%c0_258, %c0_259, %c0_260], %680 {strides = array<i32>} : memref<8x8x512xf32, #tpu.memory_space<vmem>>, vector<8x8x512xf32>,
    %c0_261 = arith.constant 0 : index
    %c0_262 = arith.constant 0 : index
    %682 = vector.load %arg7[%c0_261, %c0_262] : memref<128x512xbf16, #tpu.memory_space<vmem>>, vector<128x512xbf16>
    %cst_263 = arith.constant 0.000000e+00 : f32
    %683 = vector.broadcast %cst_263 : f32 to vector<8x128xf32>
    %cst_264 = arith.constant 0.000000e+00 : f32
    %684 = vector.broadcast %cst_264 : f32 to vector<8x128xf32>
    %c0_i32_265 = arith.constant 0 : i32
    %685 = arith.index_cast %c0_i32_265 : i32 to index
    %c0_266 = arith.constant 0 : index
    %c0_267 = arith.constant 0 : index
    %686 = vector.load %arg13[%685, %c0_266, %c0_267] : memref<8x8x512xf32, #tpu.memory_space<vmem>>, vector<1x8x512xf32>
    %687 = vector.shape_cast %686 : vector<1x8x512xf32> to vector<8x512xf32>
    %688 = arith.truncf %683 : vector<8x128xf32> to vector<8x128xbf16>
    %cst_268 = arith.constant dense<0.000000e+00> : vector<8x512xf32>
    %689 = tpu.matmul %688, %682, %cst_268 {dimension_numbers = #tpu.dot_dimension_numbers<[1], [0], [0], [1], [0, 0, 1, 1], [], []>} : vector<8x128xbf16>, vector<128x512xbf16>, vector<8x512xf32> -> vector<8x512xf32>
    %690 = arith.addf %687, %689 : vector<8x512xf32>
    %691 = vector.extract_strided_slice %690 {offsets = [0, 0], sizes = [8, 128], strides = [1, 1]} : vector<8x512xf32> to vector<8x128xf32>
    %cst_269 = arith.constant 5.000000e-01 : f32
    %692 = vector.broadcast %cst_269 : f32 to vector<8x128xf32>
    %693 = arith.mulf %692, %691 : vector<8x128xf32>
    %694 = math.tanh %693 : vector<8x128xf32>
    %cst_270 = arith.constant 5.000000e-01 : f32
    %695 = vector.broadcast %cst_270 : f32 to vector<8x128xf32>
    %696 = arith.mulf %695, %694 : vector<8x128xf32>
    %cst_271 = arith.constant 5.000000e-01 : f32
    %697 = vector.broadcast %cst_271 : f32 to vector<8x128xf32>
    %698 = arith.addf %696, %697 : vector<8x128xf32>
    %699 = vector.extract_strided_slice %690 {offsets = [0, 128], sizes = [8, 128], strides = [1, 1]} : vector<8x512xf32> to vector<8x128xf32>
    %cst_272 = arith.constant 5.000000e-01 : f32
    %700 = vector.broadcast %cst_272 : f32 to vector<8x128xf32>
    %701 = arith.mulf %700, %699 : vector<8x128xf32>
    %702 = math.tanh %701 : vector<8x128xf32>
    %cst_273 = arith.constant 5.000000e-01 : f32
    %703 = vector.broadcast %cst_273 : f32 to vector<8x128xf32>
    %704 = arith.mulf %703, %702 : vector<8x128xf32>
    %cst_274 = arith.constant 5.000000e-01 : f32
    %705 = vector.broadcast %cst_274 : f32 to vector<8x128xf32>
    %706 = arith.addf %704, %705 : vector<8x128xf32>
    %707 = vector.extract_strided_slice %690 {offsets = [0, 256], sizes = [8, 128], strides = [1, 1]} : vector<8x512xf32> to vector<8x128xf32>
    %708 = math.tanh %707 : vector<8x128xf32>
    %709 = vector.extract_strided_slice %690 {offsets = [0, 384], sizes = [8, 128], strides = [1, 1]} : vector<8x512xf32> to vector<8x128xf32>
    %cst_275 = arith.constant 5.000000e-01 : f32
    %710 = vector.broadcast %cst_275 : f32 to vector<8x128xf32>
    %711 = arith.mulf %710, %709 : vector<8x128xf32>
    %712 = math.tanh %711 : vector<8x128xf32>
    %cst_276 = arith.constant 5.000000e-01 : f32
    %713 = vector.broadcast %cst_276 : f32 to vector<8x128xf32>
    %714 = arith.mulf %713, %712 : vector<8x128xf32>
    %cst_277 = arith.constant 5.000000e-01 : f32
    %715 = vector.broadcast %cst_277 : f32 to vector<8x128xf32>
    %716 = arith.addf %714, %715 : vector<8x128xf32>
    %717 = arith.mulf %706, %684 : vector<8x128xf32>
    %718 = arith.mulf %698, %708 : vector<8x128xf32>
    %719 = arith.addf %717, %718 : vector<8x128xf32>
    %720 = math.tanh %719 : vector<8x128xf32>
    %721 = arith.mulf %716, %720 : vector<8x128xf32>
    %c1_i32_278 = arith.constant 1 : i32
    %722 = arith.index_cast %c1_i32_278 : i32 to index
    %c0_279 = arith.constant 0 : index
    %c0_280 = arith.constant 0 : index
    %723 = vector.load %arg13[%722, %c0_279, %c0_280] : memref<8x8x512xf32, #tpu.memory_space<vmem>>, vector<1x8x512xf32>
    %724 = vector.shape_cast %723 : vector<1x8x512xf32> to vector<8x512xf32>
    %725 = arith.truncf %721 : vector<8x128xf32> to vector<8x128xbf16>
    %cst_281 = arith.constant dense<0.000000e+00> : vector<8x512xf32>
    %726 = tpu.matmul %725, %682, %cst_281 {dimension_numbers = #tpu.dot_dimension_numbers<[1], [0], [0], [1], [0, 0, 1, 1], [], []>} : vector<8x128xbf16>, vector<128x512xbf16>, vector<8x512xf32> -> vector<8x512xf32>
    %727 = arith.addf %724, %726 : vector<8x512xf32>
    %728 = vector.extract_strided_slice %727 {offsets = [0, 0], sizes = [8, 128], strides = [1, 1]} : vector<8x512xf32> to vector<8x128xf32>
    %cst_282 = arith.constant 5.000000e-01 : f32
    %729 = vector.broadcast %cst_282 : f32 to vector<8x128xf32>
    %730 = arith.mulf %729, %728 : vector<8x128xf32>
    %731 = math.tanh %730 : vector<8x128xf32>
    %cst_283 = arith.constant 5.000000e-01 : f32
    %732 = vector.broadcast %cst_283 : f32 to vector<8x128xf32>
    %733 = arith.mulf %732, %731 : vector<8x128xf32>
    %cst_284 = arith.constant 5.000000e-01 : f32
    %734 = vector.broadcast %cst_284 : f32 to vector<8x128xf32>
    %735 = arith.addf %733, %734 : vector<8x128xf32>
    %736 = vector.extract_strided_slice %727 {offsets = [0, 128], sizes = [8, 128], strides = [1, 1]} : vector<8x512xf32> to vector<8x128xf32>
    %cst_285 = arith.constant 5.000000e-01 : f32
    %737 = vector.broadcast %cst_285 : f32 to vector<8x128xf32>
    %738 = arith.mulf %737, %736 : vector<8x128xf32>
    %739 = math.tanh %738 : vector<8x128xf32>
    %cst_286 = arith.constant 5.000000e-01 : f32
    %740 = vector.broadcast %cst_286 : f32 to vector<8x128xf32>
    %741 = arith.mulf %740, %739 : vector<8x128xf32>
    %cst_287 = arith.constant 5.000000e-01 : f32
    %742 = vector.broadcast %cst_287 : f32 to vector<8x128xf32>
    %743 = arith.addf %741, %742 : vector<8x128xf32>
    %744 = vector.extract_strided_slice %727 {offsets = [0, 256], sizes = [8, 128], strides = [1, 1]} : vector<8x512xf32> to vector<8x128xf32>
    %745 = math.tanh %744 : vector<8x128xf32>
    %746 = vector.extract_strided_slice %727 {offsets = [0, 384], sizes = [8, 128], strides = [1, 1]} : vector<8x512xf32> to vector<8x128xf32>
    %cst_288 = arith.constant 5.000000e-01 : f32
    %747 = vector.broadcast %cst_288 : f32 to vector<8x128xf32>
    %748 = arith.mulf %747, %746 : vector<8x128xf32>
    %749 = math.tanh %748 : vector<8x128xf32>
    %cst_289 = arith.constant 5.000000e-01 : f32
    %750 = vector.broadcast %cst_289 : f32 to vector<8x128xf32>
    %751 = arith.mulf %750, %749 : vector<8x128xf32>
    %cst_290 = arith.constant 5.000000e-01 : f32
    %752 = vector.broadcast %cst_290 : f32 to vector<8x128xf32>
    %753 = arith.addf %751, %752 : vector<8x128xf32>
    %754 = arith.mulf %743, %719 : vector<8x128xf32>
    %755 = arith.mulf %735, %745 : vector<8x128xf32>
    %756 = arith.addf %754, %755 : vector<8x128xf32>
    %757 = math.tanh %756 : vector<8x128xf32>
    %758 = arith.mulf %753, %757 : vector<8x128xf32>
    %c2_i32_291 = arith.constant 2 : i32
    %759 = arith.index_cast %c2_i32_291 : i32 to index
    %c0_292 = arith.constant 0 : index
    %c0_293 = arith.constant 0 : index
    %760 = vector.load %arg13[%759, %c0_292, %c0_293] : memref<8x8x512xf32, #tpu.memory_space<vmem>>, vector<1x8x512xf32>
    %761 = vector.shape_cast %760 : vector<1x8x512xf32> to vector<8x512xf32>
    %762 = arith.truncf %758 : vector<8x128xf32> to vector<8x128xbf16>
    %cst_294 = arith.constant dense<0.000000e+00> : vector<8x512xf32>
    %763 = tpu.matmul %762, %682, %cst_294 {dimension_numbers = #tpu.dot_dimension_numbers<[1], [0], [0], [1], [0, 0, 1, 1], [], []>} : vector<8x128xbf16>, vector<128x512xbf16>, vector<8x512xf32> -> vector<8x512xf32>
    %764 = arith.addf %761, %763 : vector<8x512xf32>
    %765 = vector.extract_strided_slice %764 {offsets = [0, 0], sizes = [8, 128], strides = [1, 1]} : vector<8x512xf32> to vector<8x128xf32>
    %cst_295 = arith.constant 5.000000e-01 : f32
    %766 = vector.broadcast %cst_295 : f32 to vector<8x128xf32>
    %767 = arith.mulf %766, %765 : vector<8x128xf32>
    %768 = math.tanh %767 : vector<8x128xf32>
    %cst_296 = arith.constant 5.000000e-01 : f32
    %769 = vector.broadcast %cst_296 : f32 to vector<8x128xf32>
    %770 = arith.mulf %769, %768 : vector<8x128xf32>
    %cst_297 = arith.constant 5.000000e-01 : f32
    %771 = vector.broadcast %cst_297 : f32 to vector<8x128xf32>
    %772 = arith.addf %770, %771 : vector<8x128xf32>
    %773 = vector.extract_strided_slice %764 {offsets = [0, 128], sizes = [8, 128], strides = [1, 1]} : vector<8x512xf32> to vector<8x128xf32>
    %cst_298 = arith.constant 5.000000e-01 : f32
    %774 = vector.broadcast %cst_298 : f32 to vector<8x128xf32>
    %775 = arith.mulf %774, %773 : vector<8x128xf32>
    %776 = math.tanh %775 : vector<8x128xf32>
    %cst_299 = arith.constant 5.000000e-01 : f32
    %777 = vector.broadcast %cst_299 : f32 to vector<8x128xf32>
    %778 = arith.mulf %777, %776 : vector<8x128xf32>
    %cst_300 = arith.constant 5.000000e-01 : f32
    %779 = vector.broadcast %cst_300 : f32 to vector<8x128xf32>
    %780 = arith.addf %778, %779 : vector<8x128xf32>
    %781 = vector.extract_strided_slice %764 {offsets = [0, 256], sizes = [8, 128], strides = [1, 1]} : vector<8x512xf32> to vector<8x128xf32>
    %782 = math.tanh %781 : vector<8x128xf32>
    %783 = vector.extract_strided_slice %764 {offsets = [0, 384], sizes = [8, 128], strides = [1, 1]} : vector<8x512xf32> to vector<8x128xf32>
    %cst_301 = arith.constant 5.000000e-01 : f32
    %784 = vector.broadcast %cst_301 : f32 to vector<8x128xf32>
    %785 = arith.mulf %784, %783 : vector<8x128xf32>
    %786 = math.tanh %785 : vector<8x128xf32>
    %cst_302 = arith.constant 5.000000e-01 : f32
    %787 = vector.broadcast %cst_302 : f32 to vector<8x128xf32>
    %788 = arith.mulf %787, %786 : vector<8x128xf32>
    %cst_303 = arith.constant 5.000000e-01 : f32
    %789 = vector.broadcast %cst_303 : f32 to vector<8x128xf32>
    %790 = arith.addf %788, %789 : vector<8x128xf32>
    %791 = arith.mulf %780, %756 : vector<8x128xf32>
    %792 = arith.mulf %772, %782 : vector<8x128xf32>
    %793 = arith.addf %791, %792 : vector<8x128xf32>
    %794 = math.tanh %793 : vector<8x128xf32>
    %795 = arith.mulf %790, %794 : vector<8x128xf32>
    %c3_i32_304 = arith.constant 3 : i32
    %796 = arith.index_cast %c3_i32_304 : i32 to index
    %c0_305 = arith.constant 0 : index
    %c0_306 = arith.constant 0 : index
    %797 = vector.load %arg13[%796, %c0_305, %c0_306] : memref<8x8x512xf32, #tpu.memory_space<vmem>>, vector<1x8x512xf32>
    %798 = vector.shape_cast %797 : vector<1x8x512xf32> to vector<8x512xf32>
    %799 = arith.truncf %795 : vector<8x128xf32> to vector<8x128xbf16>
    %cst_307 = arith.constant dense<0.000000e+00> : vector<8x512xf32>
    %800 = tpu.matmul %799, %682, %cst_307 {dimension_numbers = #tpu.dot_dimension_numbers<[1], [0], [0], [1], [0, 0, 1, 1], [], []>} : vector<8x128xbf16>, vector<128x512xbf16>, vector<8x512xf32> -> vector<8x512xf32>
    %801 = arith.addf %798, %800 : vector<8x512xf32>
    %802 = vector.extract_strided_slice %801 {offsets = [0, 0], sizes = [8, 128], strides = [1, 1]} : vector<8x512xf32> to vector<8x128xf32>
    %cst_308 = arith.constant 5.000000e-01 : f32
    %803 = vector.broadcast %cst_308 : f32 to vector<8x128xf32>
    %804 = arith.mulf %803, %802 : vector<8x128xf32>
    %805 = math.tanh %804 : vector<8x128xf32>
    %cst_309 = arith.constant 5.000000e-01 : f32
    %806 = vector.broadcast %cst_309 : f32 to vector<8x128xf32>
    %807 = arith.mulf %806, %805 : vector<8x128xf32>
    %cst_310 = arith.constant 5.000000e-01 : f32
    %808 = vector.broadcast %cst_310 : f32 to vector<8x128xf32>
    %809 = arith.addf %807, %808 : vector<8x128xf32>
    %810 = vector.extract_strided_slice %801 {offsets = [0, 128], sizes = [8, 128], strides = [1, 1]} : vector<8x512xf32> to vector<8x128xf32>
    %cst_311 = arith.constant 5.000000e-01 : f32
    %811 = vector.broadcast %cst_311 : f32 to vector<8x128xf32>
    %812 = arith.mulf %811, %810 : vector<8x128xf32>
    %813 = math.tanh %812 : vector<8x128xf32>
    %cst_312 = arith.constant 5.000000e-01 : f32
    %814 = vector.broadcast %cst_312 : f32 to vector<8x128xf32>
    %815 = arith.mulf %814, %813 : vector<8x128xf32>
    %cst_313 = arith.constant 5.000000e-01 : f32
    %816 = vector.broadcast %cst_313 : f32 to vector<8x128xf32>
    %817 = arith.addf %815, %816 : vector<8x128xf32>
    %818 = vector.extract_strided_slice %801 {offsets = [0, 256], sizes = [8, 128], strides = [1, 1]} : vector<8x512xf32> to vector<8x128xf32>
    %819 = math.tanh %818 : vector<8x128xf32>
    %820 = vector.extract_strided_slice %801 {offsets = [0, 384], sizes = [8, 128], strides = [1, 1]} : vector<8x512xf32> to vector<8x128xf32>
    %cst_314 = arith.constant 5.000000e-01 : f32
    %821 = vector.broadcast %cst_314 : f32 to vector<8x128xf32>
    %822 = arith.mulf %821, %820 : vector<8x128xf32>
    %823 = math.tanh %822 : vector<8x128xf32>
    %cst_315 = arith.constant 5.000000e-01 : f32
    %824 = vector.broadcast %cst_315 : f32 to vector<8x128xf32>
    %825 = arith.mulf %824, %823 : vector<8x128xf32>
    %cst_316 = arith.constant 5.000000e-01 : f32
    %826 = vector.broadcast %cst_316 : f32 to vector<8x128xf32>
    %827 = arith.addf %825, %826 : vector<8x128xf32>
    %828 = arith.mulf %817, %793 : vector<8x128xf32>
    %829 = arith.mulf %809, %819 : vector<8x128xf32>
    %830 = arith.addf %828, %829 : vector<8x128xf32>
    %831 = math.tanh %830 : vector<8x128xf32>
    %832 = arith.mulf %827, %831 : vector<8x128xf32>
    %c4_i32_317 = arith.constant 4 : i32
    %833 = arith.index_cast %c4_i32_317 : i32 to index
    %c0_318 = arith.constant 0 : index
    %c0_319 = arith.constant 0 : index
    %834 = vector.load %arg13[%833, %c0_318, %c0_319] : memref<8x8x512xf32, #tpu.memory_space<vmem>>, vector<1x8x512xf32>
    %835 = vector.shape_cast %834 : vector<1x8x512xf32> to vector<8x512xf32>
    %836 = arith.truncf %832 : vector<8x128xf32> to vector<8x128xbf16>
    %cst_320 = arith.constant dense<0.000000e+00> : vector<8x512xf32>
    %837 = tpu.matmul %836, %682, %cst_320 {dimension_numbers = #tpu.dot_dimension_numbers<[1], [0], [0], [1], [0, 0, 1, 1], [], []>} : vector<8x128xbf16>, vector<128x512xbf16>, vector<8x512xf32> -> vector<8x512xf32>
    %838 = arith.addf %835, %837 : vector<8x512xf32>
    %839 = vector.extract_strided_slice %838 {offsets = [0, 0], sizes = [8, 128], strides = [1, 1]} : vector<8x512xf32> to vector<8x128xf32>
    %cst_321 = arith.constant 5.000000e-01 : f32
    %840 = vector.broadcast %cst_321 : f32 to vector<8x128xf32>
    %841 = arith.mulf %840, %839 : vector<8x128xf32>
    %842 = math.tanh %841 : vector<8x128xf32>
    %cst_322 = arith.constant 5.000000e-01 : f32
    %843 = vector.broadcast %cst_322 : f32 to vector<8x128xf32>
    %844 = arith.mulf %843, %842 : vector<8x128xf32>
    %cst_323 = arith.constant 5.000000e-01 : f32
    %845 = vector.broadcast %cst_323 : f32 to vector<8x128xf32>
    %846 = arith.addf %844, %845 : vector<8x128xf32>
    %847 = vector.extract_strided_slice %838 {offsets = [0, 128], sizes = [8, 128], strides = [1, 1]} : vector<8x512xf32> to vector<8x128xf32>
    %cst_324 = arith.constant 5.000000e-01 : f32
    %848 = vector.broadcast %cst_324 : f32 to vector<8x128xf32>
    %849 = arith.mulf %848, %847 : vector<8x128xf32>
    %850 = math.tanh %849 : vector<8x128xf32>
    %cst_325 = arith.constant 5.000000e-01 : f32
    %851 = vector.broadcast %cst_325 : f32 to vector<8x128xf32>
    %852 = arith.mulf %851, %850 : vector<8x128xf32>
    %cst_326 = arith.constant 5.000000e-01 : f32
    %853 = vector.broadcast %cst_326 : f32 to vector<8x128xf32>
    %854 = arith.addf %852, %853 : vector<8x128xf32>
    %855 = vector.extract_strided_slice %838 {offsets = [0, 256], sizes = [8, 128], strides = [1, 1]} : vector<8x512xf32> to vector<8x128xf32>
    %856 = math.tanh %855 : vector<8x128xf32>
    %857 = vector.extract_strided_slice %838 {offsets = [0, 384], sizes = [8, 128], strides = [1, 1]} : vector<8x512xf32> to vector<8x128xf32>
    %cst_327 = arith.constant 5.000000e-01 : f32
    %858 = vector.broadcast %cst_327 : f32 to vector<8x128xf32>
    %859 = arith.mulf %858, %857 : vector<8x128xf32>
    %860 = math.tanh %859 : vector<8x128xf32>
    %cst_328 = arith.constant 5.000000e-01 : f32
    %861 = vector.broadcast %cst_328 : f32 to vector<8x128xf32>
    %862 = arith.mulf %861, %860 : vector<8x128xf32>
    %cst_329 = arith.constant 5.000000e-01 : f32
    %863 = vector.broadcast %cst_329 : f32 to vector<8x128xf32>
    %864 = arith.addf %862, %863 : vector<8x128xf32>
    %865 = arith.mulf %854, %830 : vector<8x128xf32>
    %866 = arith.mulf %846, %856 : vector<8x128xf32>
    %867 = arith.addf %865, %866 : vector<8x128xf32>
    %868 = math.tanh %867 : vector<8x128xf32>
    %869 = arith.mulf %864, %868 : vector<8x128xf32>
    %c5_i32_330 = arith.constant 5 : i32
    %870 = arith.index_cast %c5_i32_330 : i32 to index
    %c0_331 = arith.constant 0 : index
    %c0_332 = arith.constant 0 : index
    %871 = vector.load %arg13[%870, %c0_331, %c0_332] : memref<8x8x512xf32, #tpu.memory_space<vmem>>, vector<1x8x512xf32>
    %872 = vector.shape_cast %871 : vector<1x8x512xf32> to vector<8x512xf32>
    %873 = arith.truncf %869 : vector<8x128xf32> to vector<8x128xbf16>
    %cst_333 = arith.constant dense<0.000000e+00> : vector<8x512xf32>
    %874 = tpu.matmul %873, %682, %cst_333 {dimension_numbers = #tpu.dot_dimension_numbers<[1], [0], [0], [1], [0, 0, 1, 1], [], []>} : vector<8x128xbf16>, vector<128x512xbf16>, vector<8x512xf32> -> vector<8x512xf32>
    %875 = arith.addf %872, %874 : vector<8x512xf32>
    %876 = vector.extract_strided_slice %875 {offsets = [0, 0], sizes = [8, 128], strides = [1, 1]} : vector<8x512xf32> to vector<8x128xf32>
    %cst_334 = arith.constant 5.000000e-01 : f32
    %877 = vector.broadcast %cst_334 : f32 to vector<8x128xf32>
    %878 = arith.mulf %877, %876 : vector<8x128xf32>
    %879 = math.tanh %878 : vector<8x128xf32>
    %cst_335 = arith.constant 5.000000e-01 : f32
    %880 = vector.broadcast %cst_335 : f32 to vector<8x128xf32>
    %881 = arith.mulf %880, %879 : vector<8x128xf32>
    %cst_336 = arith.constant 5.000000e-01 : f32
    %882 = vector.broadcast %cst_336 : f32 to vector<8x128xf32>
    %883 = arith.addf %881, %882 : vector<8x128xf32>
    %884 = vector.extract_strided_slice %875 {offsets = [0, 128], sizes = [8, 128], strides = [1, 1]} : vector<8x512xf32> to vector<8x128xf32>
    %cst_337 = arith.constant 5.000000e-01 : f32
    %885 = vector.broadcast %cst_337 : f32 to vector<8x128xf32>
    %886 = arith.mulf %885, %884 : vector<8x128xf32>
    %887 = math.tanh %886 : vector<8x128xf32>
    %cst_338 = arith.constant 5.000000e-01 : f32
    %888 = vector.broadcast %cst_338 : f32 to vector<8x128xf32>
    %889 = arith.mulf %888, %887 : vector<8x128xf32>
    %cst_339 = arith.constant 5.000000e-01 : f32
    %890 = vector.broadcast %cst_339 : f32 to vector<8x128xf32>
    %891 = arith.addf %889, %890 : vector<8x128xf32>
    %892 = vector.extract_strided_slice %875 {offsets = [0, 256], sizes = [8, 128], strides = [1, 1]} : vector<8x512xf32> to vector<8x128xf32>
    %893 = math.tanh %892 : vector<8x128xf32>
    %894 = vector.extract_strided_slice %875 {offsets = [0, 384], sizes = [8, 128], strides = [1, 1]} : vector<8x512xf32> to vector<8x128xf32>
    %cst_340 = arith.constant 5.000000e-01 : f32
    %895 = vector.broadcast %cst_340 : f32 to vector<8x128xf32>
    %896 = arith.mulf %895, %894 : vector<8x128xf32>
    %897 = math.tanh %896 : vector<8x128xf32>
    %cst_341 = arith.constant 5.000000e-01 : f32
    %898 = vector.broadcast %cst_341 : f32 to vector<8x128xf32>
    %899 = arith.mulf %898, %897 : vector<8x128xf32>
    %cst_342 = arith.constant 5.000000e-01 : f32
    %900 = vector.broadcast %cst_342 : f32 to vector<8x128xf32>
    %901 = arith.addf %899, %900 : vector<8x128xf32>
    %902 = arith.mulf %891, %867 : vector<8x128xf32>
    %903 = arith.mulf %883, %893 : vector<8x128xf32>
    %904 = arith.addf %902, %903 : vector<8x128xf32>
    %905 = math.tanh %904 : vector<8x128xf32>
    %906 = arith.mulf %901, %905 : vector<8x128xf32>
    %c6_i32_343 = arith.constant 6 : i32
    %907 = arith.index_cast %c6_i32_343 : i32 to index
    %c0_344 = arith.constant 0 : index
    %c0_345 = arith.constant 0 : index
    %908 = vector.load %arg13[%907, %c0_344, %c0_345] : memref<8x8x512xf32, #tpu.memory_space<vmem>>, vector<1x8x512xf32>
    %909 = vector.shape_cast %908 : vector<1x8x512xf32> to vector<8x512xf32>
    %910 = arith.truncf %906 : vector<8x128xf32> to vector<8x128xbf16>
    %cst_346 = arith.constant dense<0.000000e+00> : vector<8x512xf32>
    %911 = tpu.matmul %910, %682, %cst_346 {dimension_numbers = #tpu.dot_dimension_numbers<[1], [0], [0], [1], [0, 0, 1, 1], [], []>} : vector<8x128xbf16>, vector<128x512xbf16>, vector<8x512xf32> -> vector<8x512xf32>
    %912 = arith.addf %909, %911 : vector<8x512xf32>
    %913 = vector.extract_strided_slice %912 {offsets = [0, 0], sizes = [8, 128], strides = [1, 1]} : vector<8x512xf32> to vector<8x128xf32>
    %cst_347 = arith.constant 5.000000e-01 : f32
    %914 = vector.broadcast %cst_347 : f32 to vector<8x128xf32>
    %915 = arith.mulf %914, %913 : vector<8x128xf32>
    %916 = math.tanh %915 : vector<8x128xf32>
    %cst_348 = arith.constant 5.000000e-01 : f32
    %917 = vector.broadcast %cst_348 : f32 to vector<8x128xf32>
    %918 = arith.mulf %917, %916 : vector<8x128xf32>
    %cst_349 = arith.constant 5.000000e-01 : f32
    %919 = vector.broadcast %cst_349 : f32 to vector<8x128xf32>
    %920 = arith.addf %918, %919 : vector<8x128xf32>
    %921 = vector.extract_strided_slice %912 {offsets = [0, 128], sizes = [8, 128], strides = [1, 1]} : vector<8x512xf32> to vector<8x128xf32>
    %cst_350 = arith.constant 5.000000e-01 : f32
    %922 = vector.broadcast %cst_350 : f32 to vector<8x128xf32>
    %923 = arith.mulf %922, %921 : vector<8x128xf32>
    %924 = math.tanh %923 : vector<8x128xf32>
    %cst_351 = arith.constant 5.000000e-01 : f32
    %925 = vector.broadcast %cst_351 : f32 to vector<8x128xf32>
    %926 = arith.mulf %925, %924 : vector<8x128xf32>
    %cst_352 = arith.constant 5.000000e-01 : f32
    %927 = vector.broadcast %cst_352 : f32 to vector<8x128xf32>
    %928 = arith.addf %926, %927 : vector<8x128xf32>
    %929 = vector.extract_strided_slice %912 {offsets = [0, 256], sizes = [8, 128], strides = [1, 1]} : vector<8x512xf32> to vector<8x128xf32>
    %930 = math.tanh %929 : vector<8x128xf32>
    %931 = vector.extract_strided_slice %912 {offsets = [0, 384], sizes = [8, 128], strides = [1, 1]} : vector<8x512xf32> to vector<8x128xf32>
    %cst_353 = arith.constant 5.000000e-01 : f32
    %932 = vector.broadcast %cst_353 : f32 to vector<8x128xf32>
    %933 = arith.mulf %932, %931 : vector<8x128xf32>
    %934 = math.tanh %933 : vector<8x128xf32>
    %cst_354 = arith.constant 5.000000e-01 : f32
    %935 = vector.broadcast %cst_354 : f32 to vector<8x128xf32>
    %936 = arith.mulf %935, %934 : vector<8x128xf32>
    %cst_355 = arith.constant 5.000000e-01 : f32
    %937 = vector.broadcast %cst_355 : f32 to vector<8x128xf32>
    %938 = arith.addf %936, %937 : vector<8x128xf32>
    %939 = arith.mulf %928, %904 : vector<8x128xf32>
    %940 = arith.mulf %920, %930 : vector<8x128xf32>
    %941 = arith.addf %939, %940 : vector<8x128xf32>
    %942 = math.tanh %941 : vector<8x128xf32>
    %943 = arith.mulf %938, %942 : vector<8x128xf32>
    %c7_i32_356 = arith.constant 7 : i32
    %944 = arith.index_cast %c7_i32_356 : i32 to index
    %c0_357 = arith.constant 0 : index
    %c0_358 = arith.constant 0 : index
    %945 = vector.load %arg13[%944, %c0_357, %c0_358] : memref<8x8x512xf32, #tpu.memory_space<vmem>>, vector<1x8x512xf32>
    %946 = vector.shape_cast %945 : vector<1x8x512xf32> to vector<8x512xf32>
    %947 = arith.truncf %943 : vector<8x128xf32> to vector<8x128xbf16>
    %cst_359 = arith.constant dense<0.000000e+00> : vector<8x512xf32>
    %948 = tpu.matmul %947, %682, %cst_359 {dimension_numbers = #tpu.dot_dimension_numbers<[1], [0], [0], [1], [0, 0, 1, 1], [], []>} : vector<8x128xbf16>, vector<128x512xbf16>, vector<8x512xf32> -> vector<8x512xf32>
    %949 = arith.addf %946, %948 : vector<8x512xf32>
    %950 = vector.extract_strided_slice %949 {offsets = [0, 0], sizes = [8, 128], strides = [1, 1]} : vector<8x512xf32> to vector<8x128xf32>
    %cst_360 = arith.constant 5.000000e-01 : f32
    %951 = vector.broadcast %cst_360 : f32 to vector<8x128xf32>
    %952 = arith.mulf %951, %950 : vector<8x128xf32>
    %953 = math.tanh %952 : vector<8x128xf32>
    %cst_361 = arith.constant 5.000000e-01 : f32
    %954 = vector.broadcast %cst_361 : f32 to vector<8x128xf32>
    %955 = arith.mulf %954, %953 : vector<8x128xf32>
    %cst_362 = arith.constant 5.000000e-01 : f32
    %956 = vector.broadcast %cst_362 : f32 to vector<8x128xf32>
    %957 = arith.addf %955, %956 : vector<8x128xf32>
    %958 = vector.extract_strided_slice %949 {offsets = [0, 128], sizes = [8, 128], strides = [1, 1]} : vector<8x512xf32> to vector<8x128xf32>
    %cst_363 = arith.constant 5.000000e-01 : f32
    %959 = vector.broadcast %cst_363 : f32 to vector<8x128xf32>
    %960 = arith.mulf %959, %958 : vector<8x128xf32>
    %961 = math.tanh %960 : vector<8x128xf32>
    %cst_364 = arith.constant 5.000000e-01 : f32
    %962 = vector.broadcast %cst_364 : f32 to vector<8x128xf32>
    %963 = arith.mulf %962, %961 : vector<8x128xf32>
    %cst_365 = arith.constant 5.000000e-01 : f32
    %964 = vector.broadcast %cst_365 : f32 to vector<8x128xf32>
    %965 = arith.addf %963, %964 : vector<8x128xf32>
    %966 = vector.extract_strided_slice %949 {offsets = [0, 256], sizes = [8, 128], strides = [1, 1]} : vector<8x512xf32> to vector<8x128xf32>
    %967 = math.tanh %966 : vector<8x128xf32>
    %968 = vector.extract_strided_slice %949 {offsets = [0, 384], sizes = [8, 128], strides = [1, 1]} : vector<8x512xf32> to vector<8x128xf32>
    %cst_366 = arith.constant 5.000000e-01 : f32
    %969 = vector.broadcast %cst_366 : f32 to vector<8x128xf32>
    %970 = arith.mulf %969, %968 : vector<8x128xf32>
    %971 = math.tanh %970 : vector<8x128xf32>
    %cst_367 = arith.constant 5.000000e-01 : f32
    %972 = vector.broadcast %cst_367 : f32 to vector<8x128xf32>
    %973 = arith.mulf %972, %971 : vector<8x128xf32>
    %cst_368 = arith.constant 5.000000e-01 : f32
    %974 = vector.broadcast %cst_368 : f32 to vector<8x128xf32>
    %975 = arith.addf %973, %974 : vector<8x128xf32>
    %976 = arith.mulf %965, %941 : vector<8x128xf32>
    %977 = arith.mulf %957, %967 : vector<8x128xf32>
    %978 = arith.addf %976, %977 : vector<8x128xf32>
    %979 = math.tanh %978 : vector<8x128xf32>
    %980 = arith.mulf %975, %979 : vector<8x128xf32>
    %c8_i32_369 = arith.constant 8 : i32
    %981 = arith.truncf %980 : vector<8x128xf32> to vector<8x128xbf16>
    %c0_370 = arith.constant 0 : index
    %c0_371 = arith.constant 0 : index
    %982 = vector.load %arg9[%c0_370, %c0_371] : memref<128x128xbf16, #tpu.memory_space<vmem>>, vector<128x128xbf16>
    %cst_372 = arith.constant dense<0.000000e+00> : vector<8x128xf32>
    %983 = tpu.matmul %981, %982, %cst_372 {dimension_numbers = #tpu.dot_dimension_numbers<[1], [0], [0], [1], [0, 0, 1, 1], [], []>} : vector<8x128xbf16>, vector<128x128xbf16>, vector<8x128xf32> -> vector<8x128xf32>
    %c0_373 = arith.constant 0 : index
    %c0_374 = arith.constant 0 : index
    %984 = vector.load %arg10[%c0_373, %c0_374] : memref<1x128xf32, #tpu.memory_space<vmem>>, vector<1x128xf32>
    %985 = vector.broadcast %984 : vector<1x128xf32> to vector<8x128xf32>
    %986 = arith.addf %983, %985 : vector<8x128xf32>
    %987 = math.tanh %986 : vector<8x128xf32>
    %cst_375 = arith.constant 1.000000e+00 : f32
    %988 = vector.broadcast %cst_375 : f32 to vector<8x128xf32>
    %989 = arith.addf %987, %988 : vector<8x128xf32>
    %c0_376 = arith.constant 0 : index
    %c0_377 = arith.constant 0 : index
    %990 = vector.load %arg11[%c0_376, %c0_377] : memref<8x128xf32, #tpu.memory_space<vmem>>, vector<8x128xf32>
    tpu.vector_store %arg11[%c0_376, %c0_377], %989 {strides = array<i32>} : memref<8x128xf32, #tpu.memory_space<vmem>>, vector<8x128xf32>,
    return
  }
  func.func @transform_0(%arg0: i32) -> (i32, i32, i32) {
    %c0_i32 = arith.constant 0 : i32
    %c0_i32_0 = arith.constant 0 : i32
    %c0_i32_1 = arith.constant 0 : i32
    return %c0_i32, %arg0, %c0_i32_0 : i32, i32, i32
  }
  func.func @transform_1(%arg0: i32) -> (i32, i32) {
    %c0_i32 = arith.constant 0 : i32
    %c0_i32_0 = arith.constant 0 : i32
    %c0_i32_1 = arith.constant 0 : i32
    return %c0_i32, %c0_i32_0 : i32, i32
  }
  func.func @transform_2(%arg0: i32) -> (i32, i32) {
    %c0_i32 = arith.constant 0 : i32
    %c0_i32_0 = arith.constant 0 : i32
    %c0_i32_1 = arith.constant 0 : i32
    return %c0_i32, %c0_i32_0 : i32, i32
  }
  func.func @transform_3(%arg0: i32) -> (i32, i32) {
    %c0_i32 = arith.constant 0 : i32
    %c0_i32_0 = arith.constant 0 : i32
    %c0_i32_1 = arith.constant 0 : i32
    return %c0_i32, %c0_i32_0 : i32, i32
  }
  func.func @transform_4(%arg0: i32) -> (i32, i32) {
    %c0_i32 = arith.constant 0 : i32
    %c0_i32_0 = arith.constant 0 : i32
    %c0_i32_1 = arith.constant 0 : i32
    return %c0_i32, %c0_i32_0 : i32, i32
  }
  func.func @transform_5(%arg0: i32) -> (i32, i32) {
    %c0_i32 = arith.constant 0 : i32
    %c0_i32_0 = arith.constant 0 : i32
    %c0_i32_1 = arith.constant 0 : i32
    return %c0_i32, %c0_i32_0 : i32, i32
  }
  func.func @transform_6(%arg0: i32) -> (i32, i32) {
    %c0_i32 = arith.constant 0 : i32
    %c0_i32_0 = arith.constant 0 : i32
    %c0_i32_1 = arith.constant 0 : i32
    return %c0_i32, %c0_i32_0 : i32, i32
  }
  func.func @transform_7(%arg0: i32) -> (i32, i32) {
    %c0_i32 = arith.constant 0 : i32
    %c0_i32_0 = arith.constant 0 : i32
    %c0_i32_1 = arith.constant 0 : i32
    return %c0_i32, %c0_i32_0 : i32, i32
  }
  func.func @transform_8(%arg0: i32) -> (i32, i32) {
    %c0_i32 = arith.constant 0 : i32
    %c0_i32_0 = arith.constant 0 : i32
    %c0_i32_1 = arith.constant 0 : i32
    return %c0_i32, %c0_i32_0 : i32, i32
  }
  func.func @transform_9(%arg0: i32) -> (i32, i32) {
    %c0_i32 = arith.constant 0 : i32
    %c0_i32_0 = arith.constant 0 : i32
    %c0_i32_1 = arith.constant 0 : i32
    return %c0_i32, %c0_i32_0 : i32, i32
  }
  func.func @transform_10(%arg0: i32) -> (i32, i32) {
    %c0_i32 = arith.constant 0 : i32
    %c0_i32_0 = arith.constant 0 : i32
    return %arg0, %c0_i32 : i32, i32
  }
}

</mosaic_0001>

<bundles_post_ra>
// kernel: tpu_custom_call.1
= control target key start
LH: loop header
LB: loop body
LE: loop exit
PB: predicated region body
PF: predicated region fallthrough
CT: control target
= control target key end

     0   :  { %15 = vsyncpa [#allocation5], 0  ;;  %s6308_s0 = inlined_call_operand.hbm [shape: f32[8,8,512], index: 0, kind: input, shape index: {}]   ;;  %s6309_s1 = inlined_call_operand.hbm [shape: bf16[128,512], index: 1, kind: input, shape index: {}]   ;;  %s6310_s2 = inlined_call_operand.hbm [shape: bf16[128,512], index: 2, kind: input, shape index: {}]   ;;  %s6311_s3 = inlined_call_operand.hbm [shape: bf16[128,512], index: 3, kind: input, shape index: {}]   ;;  %s6312_s4 = inlined_call_operand.hbm [shape: f32[1,512], index: 4, kind: input, shape index: {}]   ;;  %s6313_s5 = inlined_call_operand.hbm [shape: bf16[128,512], index: 5, kind: input, shape index: {}]   ;;  %s6314_s6 = inlined_call_operand.hbm [shape: bf16[128,512], index: 6, kind: input, shape index: {}]   ;;  %s6315_s7 = inlined_call_operand.vmem [shape: f32[1,512], index: 7, kind: input, shape index: {}]   ;;  %s6316_s8 = inlined_call_operand.hbm [shape: bf16[128,128], index: 8, kind: input, shape index: {}]   ;;  %s6317_s9 = inlined_call_operand.vmem [shape: f32[1,128], index: 9, kind: input, shape index: {}]   ;;  %s6318_s10 = inlined_call_operand.hbm [shape: f32[8,128], index: 10, kind: output, shape index: {}]  }
   0x1   :  { %16 = vsyncpa [#allocation8], 0 }
   0x2   :  { %17 = vsyncpa [#allocation11], 0 }
   0x3   :  { %18 = vsyncpa [#allocation14], 0 }
   0x4   :  { %19 = vsyncpa [#allocation17], 0  ;;  %s38_s15 = sshll.u32 %s6309_s1, 4  ;;  %s39_s15 = int_to_ptr.hbm [resolvable:$true] %s38_s15 }
   0x5   :  { %20 = vsyncpa [#allocation6], 0  ;;  %s4823_s16 = smov [#allocation7]   ;;  %s64_s20 = sshll.u32 %s6311_s3, 4  ;;  %s65_s20 = int_to_ptr.hbm [resolvable:$true] %s64_s20 }
   0x6   :  { %s40_s17 = sshll.u32 %s4823_s16, 4  ;;  %s4824_s21 = smov 256   ;;  %s41_s17 = int_to_ptr.vmem [resolvable:$true] %s40_s17 }
   0x7   :  { %s4825_s22 = smov 16   ;;  %s4826_s23 = smov [#allocation10]  }
   0x8   :  { %46 = dma.hbm_to_vmem [thread:$0]  %s39_s15, 4096, %s41_s17, [#allocation8], %s4824_s21, %s4824_s21, %s4825_s22  }
   0x9   :  { %s66_s24 = sshll.u32 %s4826_s23, 4  ;;  %s88_s26 = sshll.u32 %s6313_s5, 4  ;;  %s67_s24 = int_to_ptr.vmem [resolvable:$true] %s66_s24  ;;  %s89_s26 = int_to_ptr.hbm [resolvable:$true] %s88_s26 }
   0xa   :  { %72 = dma.hbm_to_vmem [thread:$0]  %s65_s20, 4096, %s67_s24, [#allocation11], %s4824_s21, %s4824_s21, %s4825_s22  }
   0xb   :  { %s25_s28 = sshll.u32 %s6308_s0, 4  ;;  %s4827_s29 = smov [#allocation13]   ;;  %s26_s28 = int_to_ptr.hbm [resolvable:$true] %s25_s28 }
   0xc   :  { %s90_s30 = sshll.u32 %s4827_s29, 4  ;;  %s4828_s11 = smov [#allocation4]   ;;  %s91_s30 = int_to_ptr.vmem [resolvable:$true] %s90_s30 }
   0xd   :  { %96 = dma.hbm_to_vmem [thread:$0]  %s89_s26, 4096, %s91_s30, [#allocation14], %s4824_s21, %s4824_s21, %s4825_s22  }
   0xe   :  { %s27_s5 = sshll.u32 %s4828_s11, 4  ;;  %s4829_s12 = smov 512   ;;  %s28_s5 = int_to_ptr.vmem [resolvable:$true] %s27_s5 }
   0xf   :  { %s4830_s13 = smov 32   ;;  %s51_s16 = sshll.u32 %s6310_s2, 4  ;;  %s52_s16 = int_to_ptr.hbm [resolvable:$true] %s51_s16 }
  0x10   :  { %33 = dma.hbm_to_vmem [thread:$0]  %s26_s28, 4096, %s28_s5, [#allocation5], %s4829_s12, %s4829_s12, %s4830_s13  }
  0x11   :  { %s4831_s0 = smov [#allocation9]   ;;  %s78_s20 = sshll.u32 %s6312_s4, 4  ;;  %s79_s20 = int_to_ptr.hbm [resolvable:$true] %s78_s20 }
  0x12   :  { %s53_s17 = sshll.u32 %s4831_s0, 4  ;;  %s4832_s23 = smov [#allocation12]   ;;  %s54_s17 = int_to_ptr.vmem [resolvable:$true] %s53_s17 }
  0x13   :  { %59 = dma.hbm_to_vmem [thread:$0]  %s52_s16, 4096, %s54_s17, [#allocation8], %s4824_s21, %s4824_s21, %s4825_s22  }
  0x14   :  { %s80_s24 = sshll.u32 %s4832_s23, 4  ;;  %s101_s26 = sshll.u32 %s6314_s6, 4  ;;  %s81_s24 = int_to_ptr.vmem [resolvable:$true] %s80_s24  ;;  %s102_s26 = int_to_ptr.hbm [resolvable:$true] %s101_s26 }
  0x15   :  { %83 = dma.hbm_to_vmem [thread:$0]  %s79_s20, 64, %s81_s24, [#allocation11]  }
  0x16   :  { %s116_s27 = sshll.u32 %s6316_s8, 4  ;;  %s4833_s28 = smov [#allocation15]   ;;  %s117_s27 = int_to_ptr.hbm [resolvable:$true] %s116_s27 }
  0x17   :  { %s103_s4 = sshll.u32 %s4833_s28, 4  ;;  %s4834_s29 = smov [#allocation16]   ;;  %s104_s4 = int_to_ptr.vmem [resolvable:$true] %s103_s4 }
  0x18   :  { %109 = dma.hbm_to_vmem [thread:$0]  %s102_s26, 4096, %s104_s4, [#allocation14], %s4824_s21, %s4824_s21, %s4825_s22  }
  0x19   :  { %s118_s30 = sshll.u32 %s4834_s29, 4  ;;  %s4835_s11 = smov 64   ;;  %s119_s30 = int_to_ptr.vmem [resolvable:$true] %s118_s30 }
  0x1a   :  { %s4836_s6 = smov 4  }
  0x1b   :  { %124 = dma.hbm_to_vmem [thread:$0]  %s117_s27, 1024, %s119_s30, [#allocation17], %s4835_s11, %s4835_s11, %s4836_s6  }
  0x1c   :  { %4811 = dma.done.wait [#allocation5], 4096  }
  0x1d   :  { %4812 = vsyncadd [#allocation5], 4294963200 }
  0x1e   :  { %4813 = dma.done.wait [#allocation8], 8192  }
  0x1f   :  { %4814 = vsyncadd [#allocation8], 4294959104 }
  0x20   :  { %4815 = dma.done.wait [#allocation11], 4160  }
  0x21   :  { %4816 = vsyncadd [#allocation11], 4294963136 }
  0x22   :  { %4817 = dma.done.wait [#allocation14], 8192  }
  0x23   :  { %4818 = vsyncadd [#allocation14], 4294959104 }
  0x24   :  { %4819 = dma.done.wait [#allocation17], 1024  }
  0x25   :  { %4820 = vsyncadd [#allocation17], 4294966272  ;;  %v3610_v0 = vld [vmem:[#allocation7 + $0xe0] sm:$0xf]  ;;  %v4198_v1 = vld [vmem:[#allocation7 + $0xec] sm:$0xf0] }
  0x26   :  { %v4196_v2 = vld [vmem:[#allocation7 + $0xe4] sm:$0xf]  ;;  %v4933_v3 = vor.u32 %v4198_v1, %v3610_v0  ;;  %v3612_v4 = vld [vmem:[#allocation7 + $0xf0] sm:$0xf0]  ;;  %v3618_v5 = vld [vmem:[#allocation7 + $0xe8] sm:$0xf] }
  0x27   :  { %v4199_v6 = vld [vmem:[#allocation7 + $0xf4] sm:$0xf0]  ;;  %v4935_v7 = vor.u32 %v4196_v2, %v3612_v4  ;;  %v4197_v9 = vld [vmem:[#allocation7 + $0xec] sm:$0xf]  ;;  %v3620_v10 = vld [vmem:[#allocation7 + $0xf8] sm:$0xf0] }
  0x28   :  { %v4937_v8 = vor.u32 %v4199_v6, %v3618_v5  ;;  %v3594_v11 = vld [vmem:[#allocation7 + $0xc0] sm:$0xf]  ;;  %356 = vmatpush.bf16.msra.mxu0 %v4933_v3  ;;  %v4940_v12 = vor.u32 %v4197_v9, %v3620_v10  ;;  %v4194_v13 = vld [vmem:[#allocation7 + $0xcc] sm:$0xf0]  ;;  %v4192_v14 = vld [vmem:[#allocation7 + $0xc4] sm:$0xf] }
  0x29   :  { %v3596_v15 = vld [vmem:[#allocation7 + $0xd0] sm:$0xf0]  ;;  %369 = vmatpush.bf16.msra.mxu1 %v4935_v7  ;;  %v4944_v16 = vor.u32 %v4194_v13, %v3594_v11  ;;  %v3602_v18 = vld [vmem:[#allocation7 + $0xc8] sm:$0xf]  ;;  %v4195_v19 = vld [vmem:[#allocation7 + $0xd4] sm:$0xf0] }
  0x2a   :  { %382 = vmatpush.bf16.msra.mxu2 %v4937_v8  ;;  %v4946_v17 = vor.u32 %v4192_v14, %v3596_v15  ;;  %v4193_v20 = vld [vmem:[#allocation7 + $0xcc] sm:$0xf]  ;;  %395 = vmatpush.bf16.msra.mxu3 %v4940_v12  ;;  %v4949_v21 = vor.u32 %v4195_v19, %v3602_v18  ;;  %v3604_v22 = vld [vmem:[#allocation7 + $0xd8] sm:$0xf0]  ;;  %v3578_v23 = vld [vmem:[#allocation7 + $0xa0] sm:$0xf] }
  0x2b   :  { %v4190_v24 = vld [vmem:[#allocation7 + $0xac] sm:$0xf0]  ;;  %v4951_v25 = vor.u32 %v4193_v20, %v3604_v22  ;;  %v4188_v26 = vld [vmem:[#allocation7 + $0xa4] sm:$0xf]  ;;  %v3580_v27 = vld [vmem:[#allocation7 + $0xb0] sm:$0xf0] }
  0x2c   :  { %v3586_v28 = vld [vmem:[#allocation7 + $0xa8] sm:$0xf]  ;;  %357 = vmatpush.bf16.msra.mxu0 %v4944_v16  ;;  %v4954_v29 = vor.u32 %v4190_v24, %v3578_v23  ;;  %v4191_v30 = vld [vmem:[#allocation7 + $0xb4] sm:$0xf0]  ;;  %v4189_v31 = vld [vmem:[#allocation7 + $0xac] sm:$0xf]  ;;  %v4958_v33 = vor.u32 %v4188_v26, %v3580_v27 }
  0x2d   :  { %v3588_v32 = vld [vmem:[#allocation7 + $0xb8] sm:$0xf0]  ;;  %370 = vmatpush.bf16.msra.mxu1 %v4946_v17  ;;  %v4960_v34 = vor.u32 %v4191_v30, %v3586_v28  ;;  %v3562_v35 = vld [vmem:[#allocation7 + $0x80] sm:$0xf]  ;;  %v4186_v36 = vld [vmem:[#allocation7 + $0x8c] sm:$0xf0] }
  0x2e   :  { %383 = vmatpush.bf16.msra.mxu2 %v4949_v21  ;;  %v4184_v37 = vld [vmem:[#allocation7 + $0x84] sm:$0xf]  ;;  %396 = vmatpush.bf16.msra.mxu3 %v4951_v25  ;;  %v4963_v38 = vor.u32 %v4189_v31, %v3588_v32  ;;  %v3564_v39 = vld [vmem:[#allocation7 + $0x90] sm:$0xf0]  ;;  %v3570_v40 = vld [vmem:[#allocation7 + $0x88] sm:$0xf]  ;;  %v4966_v44 = vor.u32 %v4186_v36, %v3562_v35 }
  0x2f   :  { %v4187_v41 = vld [vmem:[#allocation7 + $0x94] sm:$0xf0]  ;;  %v4185_v42 = vld [vmem:[#allocation7 + $0x8c] sm:$0xf]  ;;  %v3572_v43 = vld [vmem:[#allocation7 + $0x98] sm:$0xf0]  ;;  %v4970_v45 = vor.u32 %v4184_v37, %v3564_v39 }
  0x30   :  { %358 = vmatpush.bf16.msra.mxu0 %v4954_v29  ;;  %v4972_v46 = vor.u32 %v4187_v41, %v3570_v40  ;;  %v3546_v47 = vld [vmem:[#allocation7 + $0x60] sm:$0xf]  ;;  %v4182_v48 = vld [vmem:[#allocation7 + $0x6c] sm:$0xf0]  ;;  %v4180_v49 = vld [vmem:[#allocation7 + $0x64] sm:$0xf]  ;;  %v4975_v50 = vor.u32 %v4185_v42, %v3572_v43 }
  0x31   :  { %371 = vmatpush.bf16.msra.mxu1 %v4958_v33  ;;  %v3548_v51 = vld [vmem:[#allocation7 + $0x70] sm:$0xf0]  ;;  %v3554_v52 = vld [vmem:[#allocation7 + $0x68] sm:$0xf]  ;;  %v4183_v53 = vld [vmem:[#allocation7 + $0x74] sm:$0xf0]  ;;  %v4978_v56 = vor.u32 %v4182_v48, %v3546_v47 }
  0x32   :  { %384 = vmatpush.bf16.msra.mxu2 %v4960_v34  ;;  %397 = vmatpush.bf16.msra.mxu3 %v4963_v38  ;;  %v4181_v54 = vld [vmem:[#allocation7 + $0x6c] sm:$0xf]  ;;  %v3556_v55 = vld [vmem:[#allocation7 + $0x78] sm:$0xf0]  ;;  %v4982_v57 = vor.u32 %v4180_v49, %v3548_v51  ;;  %v4984_v58 = vor.u32 %v4183_v53, %v3554_v52  ;;  %v3530_v59 = vld [vmem:[#allocation7 + $0x40] sm:$0xf] }
  0x33   :  { %v4178_v60 = vld [vmem:[#allocation7 + $0x4c] sm:$0xf0]  ;;  %v4176_v61 = vld [vmem:[#allocation7 + $0x44] sm:$0xf]  ;;  %v4987_v62 = vor.u32 %v4181_v54, %v3556_v55  ;;  %v3532_v63 = vld [vmem:[#allocation7 + $0x50] sm:$0xf0] }
  0x34   :  { %359 = vmatpush.bf16.msra.mxu0 %v4966_v44  ;;  %v3538_v0 = vld [vmem:[#allocation7 + $0x48] sm:$0xf]  ;;  %v4179_v1 = vld [vmem:[#allocation7 + $0x54] sm:$0xf0]  ;;  %v4177_v2 = vld [vmem:[#allocation7 + $0x4c] sm:$0xf]  ;;  %v4990_v5 = vor.u32 %v4178_v60, %v3530_v59  ;;  %v4994_v9 = vor.u32 %v4176_v61, %v3532_v63 }
  0x35   :  { %372 = vmatpush.bf16.msra.mxu1 %v4970_v45  ;;  %v3540_v4 = vld [vmem:[#allocation7 + $0x58] sm:$0xf0]  ;;  %v3514_v6 = vld [vmem:[#allocation7 + $0x20] sm:$0xf]  ;;  %v4996_v10 = vor.u32 %v4179_v1, %v3538_v0  ;;  %v4174_v11 = vld [vmem:[#allocation7 + $0x2c] sm:$0xf0] }
  0x36   :  { %385 = vmatpush.bf16.msra.mxu2 %v4972_v46  ;;  %398 = vmatpush.bf16.msra.mxu3 %v4975_v50  ;;  %v4172_v13 = vld [vmem:[#allocation7 + $0x24] sm:$0xf]  ;;  %v3516_v14 = vld [vmem:[#allocation7 + $0x30] sm:$0xf0]  ;;  %v4999_v15 = vor.u32 %v4177_v2, %v3540_v4  ;;  %v3522_v18 = vld [vmem:[#allocation7 + $0x28] sm:$0xf]  ;;  %v5002_v23 = vor.u32 %v4174_v11, %v3514_v6 }
  0x37   :  { %v4175_v19 = vld [vmem:[#allocation7 + $0x34] sm:$0xf0]  ;;  %v4173_v20 = vld [vmem:[#allocation7 + $0x2c] sm:$0xf]  ;;  %v3524_v22 = vld [vmem:[#allocation7 + $0x38] sm:$0xf0]  ;;  %v5006_v24 = vor.u32 %v4172_v13, %v3516_v14 }
  0x38   :  { %360 = vmatpush.bf16.msra.mxu0 %v4978_v56  ;;  %v5008_v26 = vor.u32 %v4175_v19, %v3522_v18  ;;  %v3498_v27 = vld [vmem:[#allocation7] sm:$0xf]  ;;  %v4170_v28 = vld [vmem:[#allocation7 + $0xc] sm:$0xf0]  ;;  %v4168_v30 = vld [vmem:[#allocation7 + $0x4] sm:$0xf]  ;;  %v5011_v31 = vor.u32 %v4173_v20, %v3524_v22 }
  0x39   :  { %373 = vmatpush.bf16.msra.mxu1 %v4982_v57  ;;  %v3500_v32 = vld [vmem:[#allocation7 + $0x10] sm:$0xf0]  ;;  %v3506_v35 = vld [vmem:[#allocation7 + $0x8] sm:$0xf]  ;;  %v4171_v36 = vld [vmem:[#allocation7 + $0x14] sm:$0xf0]  ;;  %v5014_v40 = vor.u32 %v4170_v28, %v3498_v27 }
  0x3a   :  { %386 = vmatpush.bf16.msra.mxu2 %v4984_v58  ;;  %399 = vmatpush.bf16.msra.mxu3 %v4987_v62  ;;  %v4169_v37 = vld [vmem:[#allocation7 + $0xc] sm:$0xf]  ;;  %v3508_v39 = vld [vmem:[#allocation7 + $0x18] sm:$0xf0]  ;;  %v5018_v41 = vor.u32 %v4168_v30, %v3500_v32  ;;  %v5020_v42 = vor.u32 %v4171_v36, %v3506_v35  ;;  %v6319_v47 = vmov 0   ;;  %v192_v48 = vld [vmem:[#allocation4] sm:$0xff] }
  0x3b   :  { %v5023_v43 = vor.u32 %v4169_v37, %v3508_v39  ;;  %v193_v49 = vld [vmem:[#allocation4 + $0x8] sm:$0xff]  ;;  %v194_v60 = vld [vmem:[#allocation4 + $0x10] sm:$0xff]  ;;  %v195_v61 = vld [vmem:[#allocation4 + $0x18] sm:$0xff]  ;;  %s4838_s5 = smov [#allocation18]   ;;  %s3482_s15 = sshll.u32 %s6318_s10, 4  ;;  %s3483_s15 = int_to_ptr.hbm [resolvable:$true] %s3482_s15 }
  0x3c   :  { %361 = vmatpush.bf16.msra.mxu0 %v4990_v5  ;;  %s3480_s12 = sshll.u32 %s4838_s5, 4  ;;  %s3481_s12 = int_to_ptr.vmem [resolvable:$true] %s3480_s12 }
  0x3d   :  { %374 = vmatpush.bf16.msra.mxu1 %v4994_v9 }
  0x3e   :  { %387 = vmatpush.bf16.msra.mxu2 %v4996_v10  ;;  %400 = vmatpush.bf16.msra.mxu3 %v4999_v15 }
  0x40   :  { %362 = vmatpush.bf16.msra.mxu0 %v5002_v23 }
  0x41   :  { %375 = vmatpush.bf16.msra.mxu1 %v5006_v24 }
  0x42   :  { %388 = vmatpush.bf16.msra.mxu2 %v5008_v26  ;;  %401 = vmatpush.bf16.msra.mxu3 %v5011_v31 }
  0x44   :  { %363 = vmatpush.bf16.msra.mxu0 %v5014_v40 }
  0x45   :  { %376 = vmatpush.bf16.msra.mxu1 %v5018_v41 }
  0x46   :  { %389 = vmatpush.bf16.msra.mxu2 %v5020_v42  ;;  %402 = vmatpush.bf16.msra.mxu3 %v5023_v43 }
  0x47   :  { %364 = vmatmul.bf16.vlgmr.msra.gmra.mxu0 %v6319_v47 }
  0x48   :  { %437 = vmatpush.bf16.msrb.mxu0 %v4933_v3  ;;  %377 = vmatmul.bf16.vlgmr.msra.gmra.mxu1 %v6319_v47 }
  0x49   :  { %450 = vmatpush.bf16.msrb.mxu1 %v4935_v7  ;;  %390 = vmatmul.bf16.vlgmr.msra.gmra.mxu2 %v6319_v47 }
  0x4a   :  { %403 = vmatmul.bf16.vlgmr.msra.gmra.mxu3 %v6319_v47  ;;  %463 = vmatpush.bf16.msrb.mxu2 %v4937_v8 }
  0x4b   :  { %476 = vmatpush.bf16.msrb.mxu3 %v4940_v12 }
  0x4c   :  { %438 = vmatpush.bf16.msrb.mxu0 %v4944_v16 }
  0x4d   :  { %451 = vmatpush.bf16.msrb.mxu1 %v4946_v17 }
  0x4e   :  { %464 = vmatpush.bf16.msrb.mxu2 %v4949_v21 }
  0x4f   :  { %477 = vmatpush.bf16.msrb.mxu3 %v4951_v25 }
  0x50   :  { %439 = vmatpush.bf16.msrb.mxu0 %v4954_v29 }
  0x51   :  { %452 = vmatpush.bf16.msrb.mxu1 %v4958_v33 }
  0x52   :  { %465 = vmatpush.bf16.msrb.mxu2 %v4960_v34 }
  0x53   :  { %478 = vmatpush.bf16.msrb.mxu3 %v4963_v38 }
  0x54   :  { %440 = vmatpush.bf16.msrb.mxu0 %v4966_v44 }
  0x55   :  { %453 = vmatpush.bf16.msrb.mxu1 %v4970_v45 }
  0x56   :  { %466 = vmatpush.bf16.msrb.mxu2 %v4972_v46 }
  0x57   :  { %479 = vmatpush.bf16.msrb.mxu3 %v4975_v50 }
  0x58   :  { %441 = vmatpush.bf16.msrb.mxu0 %v4978_v56 }
  0x59   :  { %454 = vmatpush.bf16.msrb.mxu1 %v4982_v57 }
  0x5a   :  { %467 = vmatpush.bf16.msrb.mxu2 %v4984_v58 }
  0x5b   :  { %480 = vmatpush.bf16.msrb.mxu3 %v4987_v62 }
  0x5c   :  { %442 = vmatpush.bf16.msrb.mxu0 %v4990_v5 }
  0x5d   :  { %455 = vmatpush.bf16.msrb.mxu1 %v4994_v9 }
  0x5e   :  { %468 = vmatpush.bf16.msrb.mxu2 %v4996_v10 }
  0x5f   :  { %481 = vmatpush.bf16.msrb.mxu3 %v4999_v15 }
  0x60   :  { %443 = vmatpush.bf16.msrb.mxu0 %v5002_v23 }
  0x61   :  { %456 = vmatpush.bf16.msrb.mxu1 %v5006_v24 }
  0x62   :  { %469 = vmatpush.bf16.msrb.mxu2 %v5008_v26 }
  0x63   :  { %482 = vmatpush.bf16.msrb.mxu3 %v5011_v31 }
  0x64   :  { %444 = vmatpush.bf16.msrb.mxu0 %v5014_v40 }
  0x65   :  { %457 = vmatpush.bf16.msrb.mxu1 %v5018_v41 }
  0x66   :  { %470 = vmatpush.bf16.msrb.mxu2 %v5020_v42 }
  0x67   :  { %483 = vmatpush.bf16.msrb.mxu3 %v5023_v43 }
  0x68   :  { %519 = vmatpush.bf16.msra.mxu0 %v4933_v3 }
  0x69   :  { %532 = vmatpush.bf16.msra.mxu1 %v4935_v7 }
  0x6a   :  { %545 = vmatpush.bf16.msra.mxu2 %v4937_v8 }
  0x6b   :  { %558 = vmatpush.bf16.msra.mxu3 %v4940_v12 }
  0x6c   :  { %520 = vmatpush.bf16.msra.mxu0 %v4944_v16 }
  0x6d   :  { %533 = vmatpush.bf16.msra.mxu1 %v4946_v17 }
  0x6e   :  { %546 = vmatpush.bf16.msra.mxu2 %v4949_v21 }
  0x6f   :  { %559 = vmatpush.bf16.msra.mxu3 %v4951_v25 }
  0x70   :  { %521 = vmatpush.bf16.msra.mxu0 %v4954_v29 }
  0x71   :  { %534 = vmatpush.bf16.msra.mxu1 %v4958_v33 }
  0x72   :  { %547 = vmatpush.bf16.msra.mxu2 %v4960_v34 }
  0x73   :  { %560 = vmatpush.bf16.msra.mxu3 %v4963_v38 }
  0x74   :  { %522 = vmatpush.bf16.msra.mxu0 %v4966_v44 }
  0x75   :  { %535 = vmatpush.bf16.msra.mxu1 %v4970_v45 }
  0x76   :  { %548 = vmatpush.bf16.msra.mxu2 %v4972_v46 }
  0x77   :  { %561 = vmatpush.bf16.msra.mxu3 %v4975_v50 }
  0x78   :  { %523 = vmatpush.bf16.msra.mxu0 %v4978_v56 }
  0x79   :  { %536 = vmatpush.bf16.msra.mxu1 %v4982_v57 }
  0x7a   :  { %549 = vmatpush.bf16.msra.mxu2 %v4984_v58 }
  0x7b   :  { %562 = vmatpush.bf16.msra.mxu3 %v4987_v62 }
  0x7c   :  { %524 = vmatpush.bf16.msra.mxu0 %v4990_v5 }
  0x7d   :  { %537 = vmatpush.bf16.msra.mxu1 %v4994_v9 }
  0x7e   :  { %550 = vmatpush.bf16.msra.mxu2 %v4996_v10 }
  0x7f   :  { %563 = vmatpush.bf16.msra.mxu3 %v4999_v15 }
  0x80   :  { %525 = vmatpush.bf16.msra.mxu0 %v5002_v23 }
  0x81   :  { %538 = vmatpush.bf16.msra.mxu1 %v5006_v24 }
  0x82   :  { %551 = vmatpush.bf16.msra.mxu2 %v5008_v26 }
  0x83   :  { %564 = vmatpush.bf16.msra.mxu3 %v5011_v31 }
  0x84   :  { %526 = vmatpush.bf16.msra.mxu0 %v5014_v40 }
  0x85   :  { %539 = vmatpush.bf16.msra.mxu1 %v5018_v41 }
  0x86   :  { %552 = vmatpush.bf16.msra.mxu2 %v5020_v42 }
  0x87   :  { %565 = vmatpush.bf16.msra.mxu3 %v5023_v43 }
  0xc4   :  { %v365_v51 = vpop.f32.mrf.mxu0 }
  0xc5   :  { %v408_v52 = vadd.f32 %v365_v51, %v192_v48  ;;  %v378_v53 = vpop.f32.mrf.mxu1 }
  0xc6   :  { %v409_v54 = vadd.f32 %v378_v53, %v193_v49  ;;  %v432_v53 = vld [vmem:[#allocation4 + $0x20] sm:$0xff] }
  0xc7   :  { %v412_v55 = vmul.f32 0.5, %v408_v52 }
  0xc8   :  { %v416_v59 = vmul.f32 0.5, %v409_v54  ;;  %v433_v54 = vld [vmem:[#allocation4 + $0x28] sm:$0xff] }
  0xc9   :  { %4353 = vtanh.f32 %v412_v55 }
  0xca   :  { %4355 = vtanh.f32 %v416_v59 }
  0xcc   :  { %v391_v63 = vpop.f32.mrf.mxu2  ;;  %v367_v2 = vpop.f32.mrf.mxu0 }
  0xcd   :  { %v410_v0 = vadd.f32 %v391_v63, %v194_v60  ;;  %v404_v1 = vpop.f32.mrf.mxu3  ;;  %v380_v6 = vpop.f32.mrf.mxu1  ;;  %v435_v2 = vld [vmem:[#allocation4 + $0x38] sm:$0xff] }
  0xce   :  { %v411_v4 = vadd.f32 %v404_v1, %v195_v61  ;;  %v434_v1 = vld [vmem:[#allocation4 + $0x30] sm:$0xff] }
  0xcf   :  { %4357 = vtanh.f32 %v410_v0  ;;  %v4354_v11 = vpop.eup %4353 }
  0xd0   :  { %v421_v13 = vmul.f32 0.5, %v411_v4  ;;  %v4356_v14 = vpop.eup %4355  ;;  %v414_v18 = vmul.f32 0.5, %v4354_v11 }
  0xd1   :  { %v418_v19 = vmul.f32 0.5, %v4356_v14 }
  0xd2   :  { %4359 = vtanh.f32 %v421_v13  ;;  %v415_v20 = vadd.f32 0.5, %v414_v18 }
  0xd3   :  { %v419_v22 = vadd.f32 0.5, %v418_v19 }
  0xd4   :  { %v393_v27 = vpop.f32.mrf.mxu2 }
  0xd5   :  { %v4358_v28 = vpop.eup %4357  ;;  %v406_v30 = vpop.f32.mrf.mxu3  ;;  %v425_v32 = vmul.f32 0.0, %v419_v22 }
  0xd6   :  { %v426_v35 = vmul.f32 %v4358_v28, %v415_v20 }
  0xd8   :  { %v4360_v36 = vpop.eup %4359  ;;  %v5097_v37 = vadd.f32 %v426_v35, %v425_v32 }
  0xd9   :  { %v423_v39 = vmul.f32 0.5, %v4360_v36 }
  0xda   :  { %4361 = vtanh.f32 %v5097_v37 }
  0xdb   :  { %v424_v48 = vadd.f32 0.5, %v423_v39 }
  0xe0   :  { %v4362_v49 = vpop.eup %4361 }
  0xe1   :  { %v5100_v51 = vmul.f32 %v4362_v49, %v424_v48 }
  0xe3   :  { %v436_v52 = vpack.c.bf16 %v5100_v51, %v5100_v51 }
  0xe5   :  { %445 = vmatmul.bf16.vlgmr.msrb.gmra.mxu0 %v436_v52  ;;  %458 = vmatmul.bf16.vlgmr.msrb.gmra.mxu1 %v436_v52 }
  0xe6   :  { %471 = vmatmul.bf16.vlgmr.msrb.gmra.mxu2 %v436_v52  ;;  %484 = vmatmul.bf16.vlgmr.msrb.gmra.mxu3 %v436_v52 }
  0xe7   :  { %601 = vmatpush.bf16.msrb.mxu0 %v4933_v3  ;;  %614 = vmatpush.bf16.msrb.mxu1 %v4935_v7 }
  0xe8   :  { %627 = vmatpush.bf16.msrb.mxu2 %v4937_v8  ;;  %640 = vmatpush.bf16.msrb.mxu3 %v4940_v12 }
  0xeb   :  { %602 = vmatpush.bf16.msrb.mxu0 %v4944_v16  ;;  %615 = vmatpush.bf16.msrb.mxu1 %v4946_v17 }
  0xec   :  { %628 = vmatpush.bf16.msrb.mxu2 %v4949_v21  ;;  %641 = vmatpush.bf16.msrb.mxu3 %v4951_v25 }
  0xef   :  { %603 = vmatpush.bf16.msrb.mxu0 %v4954_v29  ;;  %616 = vmatpush.bf16.msrb.mxu1 %v4958_v33 }
  0xf0   :  { %629 = vmatpush.bf16.msrb.mxu2 %v4960_v34  ;;  %642 = vmatpush.bf16.msrb.mxu3 %v4963_v38 }
  0xf3   :  { %604 = vmatpush.bf16.msrb.mxu0 %v4966_v44  ;;  %617 = vmatpush.bf16.msrb.mxu1 %v4970_v45 }
  0xf4   :  { %630 = vmatpush.bf16.msrb.mxu2 %v4972_v46  ;;  %643 = vmatpush.bf16.msrb.mxu3 %v4975_v50 }
  0xf7   :  { %605 = vmatpush.bf16.msrb.mxu0 %v4978_v56  ;;  %618 = vmatpush.bf16.msrb.mxu1 %v4982_v57 }
  0xf8   :  { %631 = vmatpush.bf16.msrb.mxu2 %v4984_v58  ;;  %644 = vmatpush.bf16.msrb.mxu3 %v4987_v62 }
  0xfb   :  { %606 = vmatpush.bf16.msrb.mxu0 %v4990_v5  ;;  %619 = vmatpush.bf16.msrb.mxu1 %v4994_v9 }
  0xfc   :  { %632 = vmatpush.bf16.msrb.mxu2 %v4996_v10  ;;  %645 = vmatpush.bf16.msrb.mxu3 %v4999_v15 }
  0xff   :  { %607 = vmatpush.bf16.msrb.mxu0 %v5002_v23  ;;  %620 = vmatpush.bf16.msrb.mxu1 %v5006_v24 }
 0x100   :  { %633 = vmatpush.bf16.msrb.mxu2 %v5008_v26  ;;  %646 = vmatpush.bf16.msrb.mxu3 %v5011_v31 }
 0x103   :  { %608 = vmatpush.bf16.msrb.mxu0 %v5014_v40  ;;  %621 = vmatpush.bf16.msrb.mxu1 %v5018_v41 }
 0x104   :  { %634 = vmatpush.bf16.msrb.mxu2 %v5020_v42  ;;  %647 = vmatpush.bf16.msrb.mxu3 %v5023_v43 }
 0x162   :  { %v446_v55 = vpop.f32.mrf.mxu0  ;;  %v459_v59 = vpop.f32.mrf.mxu1 }
 0x163   :  { %v489_v60 = vadd.f32 %v446_v55, %v432_v53  ;;  %v490_v61 = vadd.f32 %v459_v59, %v433_v54 }
 0x165   :  { %v493_v63 = vmul.f32 0.5, %v489_v60  ;;  %v497_v0 = vmul.f32 0.5, %v490_v61 }
 0x167   :  { %4363 = vtanh.f32 %v493_v63  ;;  %v515_v63 = vld [vmem:[#allocation4 + $0x48] sm:$0xff] }
 0x168   :  { %4365 = vtanh.f32 %v497_v0 }
 0x169   :  { %v472_v4 = vpop.f32.mrf.mxu2  ;;  %v485_v6 = vpop.f32.mrf.mxu3 }
 0x16a   :  { %v491_v11 = vadd.f32 %v472_v4, %v434_v1  ;;  %v492_v13 = vadd.f32 %v485_v6, %v435_v2  ;;  %v448_v14 = vpop.f32.mrf.mxu0  ;;  %v461_v18 = vpop.f32.mrf.mxu1 }
 0x16b   :  { %v517_v14 = vld [vmem:[#allocation4 + $0x58] sm:$0xff] }
 0x16c   :  { %4367 = vtanh.f32 %v491_v11  ;;  %v502_v19 = vmul.f32 0.5, %v492_v13  ;;  %v516_v13 = vld [vmem:[#allocation4 + $0x50] sm:$0xff] }
 0x16d   :  { %v4364_v20 = vpop.eup %4363 }
 0x16e   :  { %v4366_v22 = vpop.eup %4365  ;;  %v495_v27 = vmul.f32 0.5, %v4364_v20  ;;  %4369 = vtanh.f32 %v502_v19 }
 0x16f   :  { %v499_v28 = vmul.f32 0.5, %v4366_v22 }
 0x170   :  { %v496_v30 = vadd.f32 0.5, %v495_v27 }
 0x171   :  { %v500_v32 = vadd.f32 0.5, %v499_v28  ;;  %v474_v35 = vpop.f32.mrf.mxu2  ;;  %v487_v36 = vpop.f32.mrf.mxu3 }
 0x172   :  { %v4368_v39 = vpop.eup %4367 }
 0x173   :  { %v506_v48 = vmul.f32 %v500_v32, %v5097_v37  ;;  %v507_v49 = vmul.f32 %v4368_v39, %v496_v30  ;;  %v514_v37 = vld [vmem:[#allocation4 + $0x40] sm:$0xff] }
 0x174   :  { %v4370_v52 = vpop.eup %4369 }
 0x175   :  { %v5137_v53 = vadd.f32 %v507_v49, %v506_v48  ;;  %v504_v54 = vmul.f32 0.5, %v4370_v52 }
 0x177   :  { %4371 = vtanh.f32 %v5137_v53  ;;  %v505_v55 = vadd.f32 0.5, %v504_v54 }
 0x17d   :  { %v4372_v59 = vpop.eup %4371 }
 0x17e   :  { %v5140_v60 = vmul.f32 %v4372_v59, %v505_v55 }
 0x180   :  { %v518_v61 = vpack.c.bf16 %v5140_v60, %v5140_v60 }
 0x182   :  { %527 = vmatmul.bf16.vlgmr.msra.gmra.mxu0 %v518_v61  ;;  %540 = vmatmul.bf16.vlgmr.msra.gmra.mxu1 %v518_v61 }
 0x183   :  { %553 = vmatmul.bf16.vlgmr.msra.gmra.mxu2 %v518_v61  ;;  %566 = vmatmul.bf16.vlgmr.msra.gmra.mxu3 %v518_v61 }
 0x184   :  { %683 = vmatpush.bf16.msra.mxu0 %v4933_v3  ;;  %696 = vmatpush.bf16.msra.mxu1 %v4935_v7 }
 0x185   :  { %709 = vmatpush.bf16.msra.mxu2 %v4937_v8  ;;  %722 = vmatpush.bf16.msra.mxu3 %v4940_v12 }
 0x188   :  { %684 = vmatpush.bf16.msra.mxu0 %v4944_v16  ;;  %697 = vmatpush.bf16.msra.mxu1 %v4946_v17 }
 0x189   :  { %710 = vmatpush.bf16.msra.mxu2 %v4949_v21  ;;  %723 = vmatpush.bf16.msra.mxu3 %v4951_v25 }
 0x18c   :  { %685 = vmatpush.bf16.msra.mxu0 %v4954_v29  ;;  %698 = vmatpush.bf16.msra.mxu1 %v4958_v33 }
 0x18d   :  { %711 = vmatpush.bf16.msra.mxu2 %v4960_v34  ;;  %724 = vmatpush.bf16.msra.mxu3 %v4963_v38 }
 0x190   :  { %686 = vmatpush.bf16.msra.mxu0 %v4966_v44  ;;  %699 = vmatpush.bf16.msra.mxu1 %v4970_v45 }
 0x191   :  { %712 = vmatpush.bf16.msra.mxu2 %v4972_v46  ;;  %725 = vmatpush.bf16.msra.mxu3 %v4975_v50 }
 0x194   :  { %687 = vmatpush.bf16.msra.mxu0 %v4978_v56  ;;  %700 = vmatpush.bf16.msra.mxu1 %v4982_v57 }
 0x195   :  { %713 = vmatpush.bf16.msra.mxu2 %v4984_v58  ;;  %726 = vmatpush.bf16.msra.mxu3 %v4987_v62 }
 0x198   :  { %688 = vmatpush.bf16.msra.mxu0 %v4990_v5  ;;  %701 = vmatpush.bf16.msra.mxu1 %v4994_v9 }
 0x199   :  { %714 = vmatpush.bf16.msra.mxu2 %v4996_v10  ;;  %727 = vmatpush.bf16.msra.mxu3 %v4999_v15 }
 0x19c   :  { %689 = vmatpush.bf16.msra.mxu0 %v5002_v23  ;;  %702 = vmatpush.bf16.msra.mxu1 %v5006_v24 }
 0x19d   :  { %715 = vmatpush.bf16.msra.mxu2 %v5008_v26  ;;  %728 = vmatpush.bf16.msra.mxu3 %v5011_v31 }
 0x1a0   :  { %690 = vmatpush.bf16.msra.mxu0 %v5014_v40  ;;  %703 = vmatpush.bf16.msra.mxu1 %v5018_v41 }
 0x1a1   :  { %716 = vmatpush.bf16.msra.mxu2 %v5020_v42  ;;  %729 = vmatpush.bf16.msra.mxu3 %v5023_v43 }
 0x1ff   :  { %v528_v0 = vpop.f32.mrf.mxu0  ;;  %v541_v1 = vpop.f32.mrf.mxu1 }
 0x200   :  { %v571_v2 = vadd.f32 %v528_v0, %v514_v37  ;;  %v572_v4 = vadd.f32 %v541_v1, %v515_v63 }
 0x202   :  { %v575_v6 = vmul.f32 0.5, %v571_v2  ;;  %v579_v11 = vmul.f32 0.5, %v572_v4 }
 0x204   :  { %4373 = vtanh.f32 %v575_v6 }
 0x205   :  { %4375 = vtanh.f32 %v579_v11  ;;  %v597_v11 = vld [vmem:[#allocation4 + $0x68] sm:$0xff] }
 0x206   :  { %v554_v18 = vpop.f32.mrf.mxu2  ;;  %v567_v19 = vpop.f32.mrf.mxu3 }
 0x207   :  { %v573_v20 = vadd.f32 %v554_v18, %v516_v13  ;;  %v574_v22 = vadd.f32 %v567_v19, %v517_v14  ;;  %v530_v27 = vpop.f32.mrf.mxu0  ;;  %v543_v28 = vpop.f32.mrf.mxu1 }
 0x208   :  { %v598_v27 = vld [vmem:[#allocation4 + $0x70] sm:$0xff]  ;;  %v599_v28 = vld [vmem:[#allocation4 + $0x78] sm:$0xff] }
 0x209   :  { %4377 = vtanh.f32 %v573_v20  ;;  %v584_v30 = vmul.f32 0.5, %v574_v22 }
 0x20a   :  { %v4374_v32 = vpop.eup %4373 }
 0x20b   :  { %v4376_v35 = vpop.eup %4375  ;;  %v577_v36 = vmul.f32 0.5, %v4374_v32  ;;  %4379 = vtanh.f32 %v584_v30 }
 0x20c   :  { %v581_v39 = vmul.f32 0.5, %v4376_v35 }
 0x20d   :  { %v578_v48 = vadd.f32 0.5, %v577_v36 }
 0x20e   :  { %v582_v49 = vadd.f32 0.5, %v581_v39  ;;  %v556_v52 = vpop.f32.mrf.mxu2  ;;  %v569_v54 = vpop.f32.mrf.mxu3 }
 0x20f   :  { %v4378_v55 = vpop.eup %4377 }
 0x210   :  { %v588_v59 = vmul.f32 %v582_v49, %v5137_v53  ;;  %v589_v61 = vmul.f32 %v4378_v55, %v578_v48  ;;  %v596_v53 = vld [vmem:[#allocation4 + $0x60] sm:$0xff] }
 0x211   :  { %v4380_v37 = vpop.eup %4379 }
 0x212   :  { %v5177_v63 = vadd.f32 %v589_v61, %v588_v59  ;;  %v586_v0 = vmul.f32 0.5, %v4380_v37 }
 0x214   :  { %4381 = vtanh.f32 %v5177_v63  ;;  %v587_v1 = vadd.f32 0.5, %v586_v0 }
 0x21a   :  { %v4382_v2 = vpop.eup %4381 }
 0x21b   :  { %v5180_v4 = vmul.f32 %v4382_v2, %v587_v1 }
 0x21d   :  { %v600_v6 = vpack.c.bf16 %v5180_v4, %v5180_v4 }
 0x21f   :  { %609 = vmatmul.bf16.vlgmr.msrb.gmra.mxu0 %v600_v6  ;;  %622 = vmatmul.bf16.vlgmr.msrb.gmra.mxu1 %v600_v6 }
 0x220   :  { %635 = vmatmul.bf16.vlgmr.msrb.gmra.mxu2 %v600_v6  ;;  %648 = vmatmul.bf16.vlgmr.msrb.gmra.mxu3 %v600_v6 }
 0x221   :  { %765 = vmatpush.bf16.msrb.mxu0 %v4933_v3  ;;  %778 = vmatpush.bf16.msrb.mxu1 %v4935_v7 }
 0x222   :  { %791 = vmatpush.bf16.msrb.mxu2 %v4937_v8  ;;  %804 = vmatpush.bf16.msrb.mxu3 %v4940_v12 }
 0x225   :  { %766 = vmatpush.bf16.msrb.mxu0 %v4944_v16  ;;  %779 = vmatpush.bf16.msrb.mxu1 %v4946_v17 }
 0x226   :  { %792 = vmatpush.bf16.msrb.mxu2 %v4949_v21  ;;  %805 = vmatpush.bf16.msrb.mxu3 %v4951_v25 }
 0x229   :  { %767 = vmatpush.bf16.msrb.mxu0 %v4954_v29  ;;  %780 = vmatpush.bf16.msrb.mxu1 %v4958_v33 }
 0x22a   :  { %793 = vmatpush.bf16.msrb.mxu2 %v4960_v34  ;;  %806 = vmatpush.bf16.msrb.mxu3 %v4963_v38 }
 0x22d   :  { %768 = vmatpush.bf16.msrb.mxu0 %v4966_v44  ;;  %781 = vmatpush.bf16.msrb.mxu1 %v4970_v45 }
 0x22e   :  { %794 = vmatpush.bf16.msrb.mxu2 %v4972_v46  ;;  %807 = vmatpush.bf16.msrb.mxu3 %v4975_v50 }
 0x231   :  { %769 = vmatpush.bf16.msrb.mxu0 %v4978_v56  ;;  %782 = vmatpush.bf16.msrb.mxu1 %v4982_v57 }
 0x232   :  { %795 = vmatpush.bf16.msrb.mxu2 %v4984_v58  ;;  %808 = vmatpush.bf16.msrb.mxu3 %v4987_v62 }
 0x235   :  { %770 = vmatpush.bf16.msrb.mxu0 %v4990_v5  ;;  %783 = vmatpush.bf16.msrb.mxu1 %v4994_v9 }
 0x236   :  { %796 = vmatpush.bf16.msrb.mxu2 %v4996_v10  ;;  %809 = vmatpush.bf16.msrb.mxu3 %v4999_v15 }
 0x239   :  { %771 = vmatpush.bf16.msrb.mxu0 %v5002_v23  ;;  %784 = vmatpush.bf16.msrb.mxu1 %v5006_v24 }
 0x23a   :  { %797 = vmatpush.bf16.msrb.mxu2 %v5008_v26  ;;  %810 = vmatpush.bf16.msrb.mxu3 %v5011_v31 }
 0x23d   :  { %772 = vmatpush.bf16.msrb.mxu0 %v5014_v40  ;;  %785 = vmatpush.bf16.msrb.mxu1 %v5018_v41 }
 0x23e   :  { %798 = vmatpush.bf16.msrb.mxu2 %v5020_v42  ;;  %811 = vmatpush.bf16.msrb.mxu3 %v5023_v43 }
 0x29c   :  { %v610_v13 = vpop.f32.mrf.mxu0  ;;  %v623_v14 = vpop.f32.mrf.mxu1 }
 0x29d   :  { %v653_v18 = vadd.f32 %v610_v13, %v596_v53  ;;  %v654_v19 = vadd.f32 %v623_v14, %v597_v11 }
 0x29f   :  { %v657_v20 = vmul.f32 0.5, %v653_v18  ;;  %v661_v22 = vmul.f32 0.5, %v654_v19 }
 0x2a1   :  { %4383 = vtanh.f32 %v657_v20 }
 0x2a2   :  { %4385 = vtanh.f32 %v661_v22 }
 0x2a3   :  { %v636_v30 = vpop.f32.mrf.mxu2  ;;  %v649_v32 = vpop.f32.mrf.mxu3 }
 0x2a4   :  { %v655_v35 = vadd.f32 %v636_v30, %v598_v27  ;;  %v656_v36 = vadd.f32 %v649_v32, %v599_v28  ;;  %v612_v39 = vpop.f32.mrf.mxu0  ;;  %v625_v48 = vpop.f32.mrf.mxu1  ;;  %v679_v27 = vld [vmem:[#allocation4 + $0x88] sm:$0xff] }
 0x2a5   :  { %v680_v48 = vld [vmem:[#allocation4 + $0x90] sm:$0xff] }
 0x2a6   :  { %4387 = vtanh.f32 %v655_v35  ;;  %v666_v49 = vmul.f32 0.5, %v656_v36 }
 0x2a7   :  { %v4384_v52 = vpop.eup %4383 }
 0x2a8   :  { %v4386_v54 = vpop.eup %4385  ;;  %v659_v55 = vmul.f32 0.5, %v4384_v52  ;;  %4389 = vtanh.f32 %v666_v49  ;;  %v681_v49 = vld [vmem:[#allocation4 + $0x98] sm:$0xff] }
 0x2a9   :  { %v663_v59 = vmul.f32 0.5, %v4386_v54 }
 0x2aa   :  { %v660_v61 = vadd.f32 0.5, %v659_v55 }
 0x2ab   :  { %v664_v37 = vadd.f32 0.5, %v663_v59  ;;  %v638_v0 = vpop.f32.mrf.mxu2  ;;  %v651_v1 = vpop.f32.mrf.mxu3 }
 0x2ac   :  { %v4388_v2 = vpop.eup %4387 }
 0x2ad   :  { %v670_v6 = vmul.f32 %v664_v37, %v5177_v63  ;;  %v671_v53 = vmul.f32 %v4388_v2, %v660_v61  ;;  %v678_v63 = vld [vmem:[#allocation4 + $0x80] sm:$0xff] }
 0x2ae   :  { %v4390_v11 = vpop.eup %4389 }
 0x2af   :  { %v5217_v13 = vadd.f32 %v671_v53, %v670_v6  ;;  %v668_v14 = vmul.f32 0.5, %v4390_v11 }
 0x2b1   :  { %4391 = vtanh.f32 %v5217_v13  ;;  %v669_v18 = vadd.f32 0.5, %v668_v14 }
 0x2b7   :  { %v4392_v19 = vpop.eup %4391 }
 0x2b8   :  { %v5220_v20 = vmul.f32 %v4392_v19, %v669_v18 }
 0x2ba   :  { %v682_v22 = vpack.c.bf16 %v5220_v20, %v5220_v20 }
 0x2bc   :  { %691 = vmatmul.bf16.vlgmr.msra.gmra.mxu0 %v682_v22  ;;  %704 = vmatmul.bf16.vlgmr.msra.gmra.mxu1 %v682_v22 }
 0x2bd   :  { %717 = vmatmul.bf16.vlgmr.msra.gmra.mxu2 %v682_v22  ;;  %730 = vmatmul.bf16.vlgmr.msra.gmra.mxu3 %v682_v22 }
 0x2be   :  { %847 = vmatpush.bf16.msra.mxu0 %v4933_v3  ;;  %860 = vmatpush.bf16.msra.mxu1 %v4935_v7 }
 0x2bf   :  { %873 = vmatpush.bf16.msra.mxu2 %v4937_v8  ;;  %886 = vmatpush.bf16.msra.mxu3 %v4940_v12 }
 0x2c2   :  { %848 = vmatpush.bf16.msra.mxu0 %v4944_v16  ;;  %861 = vmatpush.bf16.msra.mxu1 %v4946_v17 }
 0x2c3   :  { %874 = vmatpush.bf16.msra.mxu2 %v4949_v21  ;;  %887 = vmatpush.bf16.msra.mxu3 %v4951_v25 }
 0x2c6   :  { %849 = vmatpush.bf16.msra.mxu0 %v4954_v29  ;;  %862 = vmatpush.bf16.msra.mxu1 %v4958_v33 }
 0x2c7   :  { %875 = vmatpush.bf16.msra.mxu2 %v4960_v34  ;;  %888 = vmatpush.bf16.msra.mxu3 %v4963_v38 }
 0x2ca   :  { %850 = vmatpush.bf16.msra.mxu0 %v4966_v44  ;;  %863 = vmatpush.bf16.msra.mxu1 %v4970_v45 }
 0x2cb   :  { %876 = vmatpush.bf16.msra.mxu2 %v4972_v46  ;;  %889 = vmatpush.bf16.msra.mxu3 %v4975_v50 }
 0x2ce   :  { %851 = vmatpush.bf16.msra.mxu0 %v4978_v56  ;;  %864 = vmatpush.bf16.msra.mxu1 %v4982_v57 }
 0x2cf   :  { %877 = vmatpush.bf16.msra.mxu2 %v4984_v58  ;;  %890 = vmatpush.bf16.msra.mxu3 %v4987_v62 }
 0x2d2   :  { %852 = vmatpush.bf16.msra.mxu0 %v4990_v5  ;;  %865 = vmatpush.bf16.msra.mxu1 %v4994_v9 }
 0x2d3   :  { %878 = vmatpush.bf16.msra.mxu2 %v4996_v10  ;;  %891 = vmatpush.bf16.msra.mxu3 %v4999_v15 }
 0x2d6   :  { %853 = vmatpush.bf16.msra.mxu0 %v5002_v23  ;;  %866 = vmatpush.bf16.msra.mxu1 %v5006_v24 }
 0x2d7   :  { %879 = vmatpush.bf16.msra.mxu2 %v5008_v26  ;;  %892 = vmatpush.bf16.msra.mxu3 %v5011_v31 }
 0x2da   :  { %854 = vmatpush.bf16.msra.mxu0 %v5014_v40  ;;  %867 = vmatpush.bf16.msra.mxu1 %v5018_v41 }
 0x2db   :  { %880 = vmatpush.bf16.msra.mxu2 %v5020_v42  ;;  %893 = vmatpush.bf16.msra.mxu3 %v5023_v43 }
 0x339   :  { %v692_v28 = vpop.f32.mrf.mxu0  ;;  %v705_v30 = vpop.f32.mrf.mxu1 }
 0x33a   :  { %v735_v32 = vadd.f32 %v692_v28, %v678_v63  ;;  %v736_v35 = vadd.f32 %v705_v30, %v679_v27 }
 0x33c   :  { %v739_v36 = vmul.f32 0.5, %v735_v32  ;;  %v743_v39 = vmul.f32 0.5, %v736_v35 }
 0x33e   :  { %4393 = vtanh.f32 %v739_v36 }
 0x33f   :  { %4395 = vtanh.f32 %v743_v39 }
 0x340   :  { %v718_v52 = vpop.f32.mrf.mxu2  ;;  %v731_v54 = vpop.f32.mrf.mxu3 }
 0x341   :  { %v737_v55 = vadd.f32 %v718_v52, %v680_v48  ;;  %v738_v59 = vadd.f32 %v731_v54, %v681_v49  ;;  %v694_v61 = vpop.f32.mrf.mxu0  ;;  %v707_v37 = vpop.f32.mrf.mxu1  ;;  %v3738_v54 = vld [vmem:[#allocation9 + $0xe0] sm:$0xf] }
 0x342   :  { %v3740_v37 = vld [vmem:[#allocation9 + $0xf0] sm:$0xf0] }
 0x343   :  { %4397 = vtanh.f32 %v737_v55  ;;  %v748_v0 = vmul.f32 0.5, %v738_v59  ;;  %v4230_v55 = vld [vmem:[#allocation9 + $0xec] sm:$0xf0]  ;;  %v4228_v59 = vld [vmem:[#allocation9 + $0xe4] sm:$0xf] }
 0x344   :  { %v4394_v1 = vpop.eup %4393  ;;  %v3739_v61 = vor.u32 %v4230_v55, %v3738_v54  ;;  %v3676_v54 = vld [vmem:[#allocation9 + $0x70] sm:$0xf0]  ;;  %v3682_v55 = vld [vmem:[#allocation9 + $0x68] sm:$0xf] }
 0x345   :  { %v4396_v2 = vpop.eup %4395  ;;  %v741_v6 = vmul.f32 0.5, %v4394_v1  ;;  %4399 = vtanh.f32 %v748_v0  ;;  %v3746_v0 = vld [vmem:[#allocation9 + $0xe8] sm:$0xf]  ;;  %v4231_v1 = vld [vmem:[#allocation9 + $0xf4] sm:$0xf0] }
 0x346   :  { %v745_v53 = vmul.f32 0.5, %v4396_v2  ;;  %v3743_v2 = vor.u32 %v4228_v59, %v3740_v37  ;;  %v4215_v59 = vld [vmem:[#allocation9 + $0x74] sm:$0xf0] }
 0x347   :  { %v742_v11 = vadd.f32 0.5, %v741_v6  ;;  %v3747_v6 = vor.u32 %v4231_v1, %v3746_v0  ;;  %v3683_v1 = vor.u32 %v4215_v59, %v3682_v55 }
 0x348   :  { %v746_v14 = vadd.f32 0.5, %v745_v53  ;;  %v720_v18 = vpop.f32.mrf.mxu2  ;;  %v733_v19 = vpop.f32.mrf.mxu3  ;;  %v4229_v53 = vld [vmem:[#allocation9 + $0xec] sm:$0xf] }
 0x349   :  { %v4398_v22 = vpop.eup %4397  ;;  %v3722_v18 = vld [vmem:[#allocation9 + $0xc0] sm:$0xf]  ;;  %v4226_v19 = vld [vmem:[#allocation9 + $0xcc] sm:$0xf0] }
 0x34a   :  { %v752_v63 = vmul.f32 %v746_v14, %v5217_v13  ;;  %v753_v27 = vmul.f32 %v4398_v22, %v742_v11  ;;  %v3748_v11 = vld [vmem:[#allocation9 + $0xf8] sm:$0xf0]  ;;  %v4224_v22 = vld [vmem:[#allocation9 + $0xc4] sm:$0xf] }
 0x34b   :  { %v4400_v28 = vpop.eup %4399  ;;  %v3751_v14 = vor.u32 %v4229_v53, %v3748_v11  ;;  %v3658_v53 = vld [vmem:[#allocation9 + $0x40] sm:$0xf] }
 0x34c   :  { %v5257_v30 = vadd.f32 %v753_v27, %v752_v63  ;;  %v750_v32 = vmul.f32 0.5, %v4400_v28  ;;  %v3723_v63 = vor.u32 %v4226_v19, %v3722_v18  ;;  %v3724_v27 = vld [vmem:[#allocation9 + $0xd0] sm:$0xf0]  ;;  %v3730_v28 = vld [vmem:[#allocation9 + $0xc8] sm:$0xf] }
 0x34d   :  { %v4208_v18 = vld [vmem:[#allocation9 + $0x44] sm:$0xf]  ;;  %v3660_v19 = vld [vmem:[#allocation9 + $0x50] sm:$0xf0] }
 0x34e   :  { %4401 = vtanh.f32 %v5257_v30  ;;  %v751_v35 = vadd.f32 0.5, %v750_v32  ;;  %v3727_v32 = vor.u32 %v4224_v22, %v3724_v27  ;;  %v844_v27 = vld [vmem:[#allocation4 + $0xd0] sm:$0xff] }
 0x354   :  { %v4402_v36 = vpop.eup %4401 }
 0x355   :  { %v5260_v39 = vmul.f32 %v4402_v36, %v751_v35  ;;  %v4225_v36 = vld [vmem:[#allocation9 + $0xcc] sm:$0xf] }
 0x357   :  { %v764_v48 = vpack.c.bf16 %v5260_v39, %v5260_v39 }
 0x359   :  { %773 = vmatmul.bf16.vlgmr.msrb.gmra.mxu0 %v764_v48  ;;  %786 = vmatmul.bf16.vlgmr.msrb.gmra.mxu1 %v764_v48 }
 0x35a   :  { %799 = vmatmul.bf16.vlgmr.msrb.gmra.mxu2 %v764_v48  ;;  %812 = vmatmul.bf16.vlgmr.msrb.gmra.mxu3 %v764_v48  ;;  %v3732_v48 = vld [vmem:[#allocation9 + $0xd8] sm:$0xf0] }
 0x35b   :  { %929 = vmatpush.bf16.msrb.mxu0 %v4933_v3  ;;  %942 = vmatpush.bf16.msrb.mxu1 %v4935_v7  ;;  %v760_v3 = vld [vmem:[#allocation4 + $0xa0] sm:$0xff]  ;;  %v761_v7 = vld [vmem:[#allocation4 + $0xa8] sm:$0xff] }
 0x35c   :  { %955 = vmatpush.bf16.msrb.mxu2 %v4937_v8  ;;  %968 = vmatpush.bf16.msrb.mxu3 %v4940_v12 }
 0x35f   :  { %930 = vmatpush.bf16.msrb.mxu0 %v4944_v16  ;;  %943 = vmatpush.bf16.msrb.mxu1 %v4946_v17 }
 0x360   :  { %956 = vmatpush.bf16.msrb.mxu2 %v4949_v21  ;;  %969 = vmatpush.bf16.msrb.mxu3 %v4951_v25 }
 0x363   :  { %931 = vmatpush.bf16.msrb.mxu0 %v4954_v29  ;;  %944 = vmatpush.bf16.msrb.mxu1 %v4958_v33  ;;  %v762_v29 = vld [vmem:[#allocation4 + $0xb0] sm:$0xff]  ;;  %v763_v33 = vld [vmem:[#allocation4 + $0xb8] sm:$0xff] }
 0x364   :  { %957 = vmatpush.bf16.msrb.mxu2 %v4960_v34  ;;  %970 = vmatpush.bf16.msrb.mxu3 %v4963_v38 }
 0x367   :  { %932 = vmatpush.bf16.msrb.mxu0 %v4966_v44  ;;  %945 = vmatpush.bf16.msrb.mxu1 %v4970_v45 }
 0x368   :  { %958 = vmatpush.bf16.msrb.mxu2 %v4972_v46  ;;  %971 = vmatpush.bf16.msrb.mxu3 %v4975_v50 }
 0x36b   :  { %933 = vmatpush.bf16.msrb.mxu0 %v4978_v56  ;;  %946 = vmatpush.bf16.msrb.mxu1 %v4982_v57 }
 0x36c   :  { %959 = vmatpush.bf16.msrb.mxu2 %v4984_v58  ;;  %972 = vmatpush.bf16.msrb.mxu3 %v4987_v62 }
 0x36f   :  { %934 = vmatpush.bf16.msrb.mxu0 %v4990_v5  ;;  %947 = vmatpush.bf16.msrb.mxu1 %v4994_v9 }
 0x370   :  { %960 = vmatpush.bf16.msrb.mxu2 %v4996_v10  ;;  %973 = vmatpush.bf16.msrb.mxu3 %v4999_v15 }
 0x373   :  { %935 = vmatpush.bf16.msrb.mxu0 %v5002_v23  ;;  %948 = vmatpush.bf16.msrb.mxu1 %v5006_v24 }
 0x374   :  { %961 = vmatpush.bf16.msrb.mxu2 %v5008_v26  ;;  %974 = vmatpush.bf16.msrb.mxu3 %v5011_v31 }
 0x377   :  { %936 = vmatpush.bf16.msrb.mxu0 %v5014_v40  ;;  %949 = vmatpush.bf16.msrb.mxu1 %v5018_v41 }
 0x378   :  { %962 = vmatpush.bf16.msrb.mxu2 %v5020_v42  ;;  %975 = vmatpush.bf16.msrb.mxu3 %v5023_v43 }
 0x3d6   :  { %v774_v8 = vpop.f32.mrf.mxu0  ;;  %v787_v12 = vpop.f32.mrf.mxu1 }
 0x3d7   :  { %v817_v16 = vadd.f32 %v774_v8, %v760_v3  ;;  %v818_v17 = vadd.f32 %v787_v12, %v761_v7  ;;  %v3735_v3 = vor.u32 %v4225_v36, %v3732_v48  ;;  %v3706_v7 = vld [vmem:[#allocation9 + $0xa0] sm:$0xf]  ;;  %v4222_v8 = vld [vmem:[#allocation9 + $0xac] sm:$0xf0]  ;;  %v4220_v12 = vld [vmem:[#allocation9 + $0xa4] sm:$0xf] }
 0x3d8   :  { %v4211_v36 = vld [vmem:[#allocation9 + $0x54] sm:$0xf0] }
 0x3d9   :  { %v821_v21 = vmul.f32 0.5, %v817_v16  ;;  %v825_v25 = vmul.f32 0.5, %v818_v17  ;;  %v3707_v16 = vor.u32 %v4222_v8, %v3706_v7  ;;  %v3708_v17 = vld [vmem:[#allocation9 + $0xb0] sm:$0xf0]  ;;  %v3668_v7 = vld [vmem:[#allocation9 + $0x58] sm:$0xf0] }
 0x3da   :  { %v3642_v8 = vld [vmem:[#allocation9 + $0x20] sm:$0xf] }
 0x3db   :  { %4403 = vtanh.f32 %v821_v21  ;;  %v3714_v21 = vld [vmem:[#allocation9 + $0xa8] sm:$0xf] }
 0x3dc   :  { %4405 = vtanh.f32 %v825_v25  ;;  %v4223_v25 = vld [vmem:[#allocation9 + $0xb4] sm:$0xf0] }
 0x3dd   :  { %v800_v34 = vpop.f32.mrf.mxu2  ;;  %v813_v38 = vpop.f32.mrf.mxu3 }
 0x3de   :  { %v819_v44 = vadd.f32 %v800_v34, %v762_v29  ;;  %v820_v45 = vadd.f32 %v813_v38, %v763_v33  ;;  %v776_v46 = vpop.f32.mrf.mxu0  ;;  %v789_v50 = vpop.f32.mrf.mxu1  ;;  %v3711_v29 = vor.u32 %v4220_v12, %v3708_v17  ;;  %v3715_v33 = vor.u32 %v4223_v25, %v3714_v21  ;;  %v4221_v34 = vld [vmem:[#allocation9 + $0xac] sm:$0xf]  ;;  %v3716_v38 = vld [vmem:[#allocation9 + $0xb8] sm:$0xf0]  ;;  %v4204_v17 = vld [vmem:[#allocation9 + $0x24] sm:$0xf] }
 0x3df   :  { %v4218_v46 = vld [vmem:[#allocation9 + $0x8c] sm:$0xf0]  ;;  %v4216_v50 = vld [vmem:[#allocation9 + $0x84] sm:$0xf]  ;;  %v3644_v21 = vld [vmem:[#allocation9 + $0x30] sm:$0xf0] }
 0x3e0   :  { %4407 = vtanh.f32 %v819_v44  ;;  %v830_v56 = vmul.f32 0.5, %v820_v45  ;;  %v3719_v44 = vor.u32 %v4221_v34, %v3716_v38  ;;  %v3690_v45 = vld [vmem:[#allocation9 + $0x80] sm:$0xf]  ;;  %v4205_v34 = vld [vmem:[#allocation9 + $0x2c] sm:$0xf] }
 0x3e1   :  { %v4404_v57 = vpop.eup %4403 }
 0x3e2   :  { %v4406_v58 = vpop.eup %4405  ;;  %v823_v62 = vmul.f32 0.5, %v4404_v57  ;;  %4409 = vtanh.f32 %v830_v56  ;;  %v3691_v56 = vor.u32 %v4218_v46, %v3690_v45  ;;  %v3692_v57 = vld [vmem:[#allocation9 + $0x90] sm:$0xf0]  ;;  %v3647_v45 = vor.u32 %v4204_v17, %v3644_v21  ;;  %v4261_v17 = vld [vmem:[#allocation10 + $0xec] sm:$0xf] }
 0x3e3   :  { %v827_v5 = vmul.f32 0.5, %v4406_v58  ;;  %v3698_v58 = vld [vmem:[#allocation9 + $0x88] sm:$0xf]  ;;  %v3876_v21 = vld [vmem:[#allocation10 + $0xf8] sm:$0xf0] }
 0x3e4   :  { %v824_v9 = vadd.f32 0.5, %v823_v62  ;;  %v4219_v62 = vld [vmem:[#allocation9 + $0x94] sm:$0xf0] }
 0x3e5   :  { %v828_v10 = vadd.f32 0.5, %v827_v5  ;;  %v802_v15 = vpop.f32.mrf.mxu2  ;;  %v815_v23 = vpop.f32.mrf.mxu3  ;;  %v3695_v5 = vor.u32 %v4216_v50, %v3692_v57  ;;  %v3652_v50 = vld [vmem:[#allocation9 + $0x38] sm:$0xf0]  ;;  %v4202_v57 = vld [vmem:[#allocation9 + $0xc] sm:$0xf0] }
 0x3e6   :  { %v4408_v24 = vpop.eup %4407  ;;  %v3700_v15 = vld [vmem:[#allocation9 + $0x98] sm:$0xf0] }
 0x3e7   :  { %v834_v26 = vmul.f32 %v828_v10, %v5257_v30  ;;  %v835_v31 = vmul.f32 %v4408_v24, %v824_v9  ;;  %v4227_v30 = vld [vmem:[#allocation9 + $0xd4] sm:$0xf0]  ;;  %v3699_v9 = vor.u32 %v4219_v62, %v3698_v58  ;;  %v4217_v10 = vld [vmem:[#allocation9 + $0x8c] sm:$0xf]  ;;  %v842_v24 = vld [vmem:[#allocation4 + $0xc0] sm:$0xff] }
 0x3e8   :  { %v4410_v40 = vpop.eup %4409  ;;  %v3731_v35 = vor.u32 %v4227_v30, %v3730_v28  ;;  %v3703_v23 = vor.u32 %v4217_v10, %v3700_v15  ;;  %v845_v28 = vld [vmem:[#allocation4 + $0xd8] sm:$0xff]  ;;  %v3655_v10 = vor.u32 %v4205_v34, %v3652_v50  ;;  %v4200_v15 = vld [vmem:[#allocation9 + $0x4] sm:$0xf] }
 0x3e9   :  { %v5297_v41 = vadd.f32 %v835_v31, %v834_v26  ;;  %v832_v42 = vmul.f32 0.5, %v4410_v40  ;;  %v843_v26 = vld [vmem:[#allocation4 + $0xc8] sm:$0xff]  ;;  %v3674_v31 = vld [vmem:[#allocation9 + $0x60] sm:$0xf]  ;;  %v4214_v40 = vld [vmem:[#allocation9 + $0x6c] sm:$0xf0] }
 0x3eb   :  { %4411 = vtanh.f32 %v5297_v41  ;;  %v833_v43 = vadd.f32 0.5, %v832_v42  ;;  %v4212_v42 = vld [vmem:[#allocation9 + $0x64] sm:$0xf] }
 0x3ec   :  { %v3679_v0 = vor.u32 %v4212_v42, %v3676_v54 }
 0x3f1   :  { %v4412_v13 = vpop.eup %4411 }
 0x3f2   :  { %v5300_v49 = vmul.f32 %v4412_v13, %v833_v43 }
 0x3f4   :  { %v846_v52 = vpack.c.bf16 %v5300_v49, %v5300_v49 }
 0x3f6   :  { %855 = vmatmul.bf16.vlgmr.msra.gmra.mxu0 %v846_v52  ;;  %868 = vmatmul.bf16.vlgmr.msra.gmra.mxu1 %v846_v52 }
 0x3f7   :  { %881 = vmatmul.bf16.vlgmr.msra.gmra.mxu2 %v846_v52  ;;  %894 = vmatmul.bf16.vlgmr.msra.gmra.mxu3 %v846_v52  ;;  %v3675_v52 = vor.u32 %v4214_v40, %v3674_v31  ;;  %v4201_v31 = vld [vmem:[#allocation9 + $0xc] sm:$0xf]  ;;  %v3636_v40 = vld [vmem:[#allocation9 + $0x18] sm:$0xf0] }
 0x3f8   :  { %1219 = vmatpush.bf16.msra.mxu0 %v3739_v61  ;;  %1248 = vmatpush.bf16.msra.mxu1 %v3743_v2  ;;  %v4213_v2 = vld [vmem:[#allocation9 + $0x6c] sm:$0xf] }
 0x3f9   :  { %1277 = vmatpush.bf16.msra.mxu2 %v3747_v6  ;;  %1306 = vmatpush.bf16.msra.mxu3 %v3751_v14  ;;  %v3684_v6 = vld [vmem:[#allocation9 + $0x78] sm:$0xf0]  ;;  %v4210_v14 = vld [vmem:[#allocation9 + $0x4c] sm:$0xf0] }
 0x3fa   :  { %v3687_v11 = vor.u32 %v4213_v2, %v3684_v6  ;;  %v3659_v30 = vor.u32 %v4210_v14, %v3658_v53 }
 0x3fc   :  { %1220 = vmatpush.bf16.msra.mxu0 %v3723_v63  ;;  %1249 = vmatpush.bf16.msra.mxu1 %v3727_v32  ;;  %v3663_v32 = vor.u32 %v4208_v18, %v3660_v19 }
 0x3fd   :  { %1278 = vmatpush.bf16.msra.mxu2 %v3731_v35  ;;  %1307 = vmatpush.bf16.msra.mxu3 %v3735_v3  ;;  %v3666_v35 = vld [vmem:[#allocation9 + $0x48] sm:$0xf]  ;;  %v4209_v3 = vld [vmem:[#allocation9 + $0x4c] sm:$0xf] }
 0x3fe   :  { %v3667_v48 = vor.u32 %v4211_v36, %v3666_v35  ;;  %v3671_v12 = vor.u32 %v4209_v3, %v3668_v7  ;;  %v4262_v35 = vld [vmem:[#allocation10 + $0xec] sm:$0xf0]  ;;  %v4260_v36 = vld [vmem:[#allocation10 + $0xe4] sm:$0xf]  ;;  %v3868_v3 = vld [vmem:[#allocation10 + $0xf0] sm:$0xf0] }
 0x3ff   :  { %v3874_v7 = vld [vmem:[#allocation10 + $0xe8] sm:$0xf] }
 0x400   :  { %1221 = vmatpush.bf16.msra.mxu0 %v3707_v16  ;;  %1250 = vmatpush.bf16.msra.mxu1 %v3711_v29  ;;  %v4206_v16 = vld [vmem:[#allocation9 + $0x2c] sm:$0xf0]  ;;  %v3650_v29 = vld [vmem:[#allocation9 + $0x28] sm:$0xf] }
 0x401   :  { %1279 = vmatpush.bf16.msra.mxu2 %v3715_v33  ;;  %1308 = vmatpush.bf16.msra.mxu3 %v3719_v44  ;;  %v3643_v25 = vor.u32 %v4206_v16, %v3642_v8  ;;  %v4207_v33 = vld [vmem:[#allocation9 + $0x34] sm:$0xf0] }
 0x402   :  { %v3651_v46 = vor.u32 %v4207_v33, %v3650_v29  ;;  %v4263_v8 = vld [vmem:[#allocation10 + $0xf4] sm:$0xf0]  ;;  %v4256_v29 = vld [vmem:[#allocation10 + $0xc4] sm:$0xf]  ;;  %v3852_v33 = vld [vmem:[#allocation10 + $0xd0] sm:$0xf0] }
 0x403   :  { %v5318_v16 = vor.u32 %v4263_v8, %v3874_v7 }
 0x404   :  { %1222 = vmatpush.bf16.msra.mxu0 %v3691_v56  ;;  %1251 = vmatpush.bf16.msra.mxu1 %v3695_v5  ;;  %v3626_v56 = vld [vmem:[#allocation9] sm:$0xf] }
 0x405   :  { %1280 = vmatpush.bf16.msra.mxu2 %v3699_v9  ;;  %1309 = vmatpush.bf16.msra.mxu3 %v3703_v23  ;;  %v3628_v23 = vld [vmem:[#allocation9 + $0x10] sm:$0xf0] }
 0x408   :  { %1223 = vmatpush.bf16.msra.mxu0 %v3675_v52  ;;  %1252 = vmatpush.bf16.msra.mxu1 %v3679_v0  ;;  %v3631_v52 = vor.u32 %v4200_v15, %v3628_v23  ;;  %v4255_v23 = vld [vmem:[#allocation10 + $0xb4] sm:$0xf0] }
 0x409   :  { %1281 = vmatpush.bf16.msra.mxu2 %v3683_v1  ;;  %1310 = vmatpush.bf16.msra.mxu3 %v3687_v11 }
 0x40c   :  { %1224 = vmatpush.bf16.msra.mxu0 %v3659_v30  ;;  %1253 = vmatpush.bf16.msra.mxu1 %v3663_v32  ;;  %v3866_v32 = vld [vmem:[#allocation10 + $0xe0] sm:$0xf] }
 0x40d   :  { %1282 = vmatpush.bf16.msra.mxu2 %v3667_v48  ;;  %1311 = vmatpush.bf16.msra.mxu3 %v3671_v12  ;;  %v5314_v48 = vor.u32 %v4262_v35, %v3866_v32  ;;  %v5316_v12 = vor.u32 %v4260_v36, %v3868_v3  ;;  %v3812_v35 = vld [vmem:[#allocation10 + $0x78] sm:$0xf0]  ;;  %v3786_v36 = vld [vmem:[#allocation10 + $0x40] sm:$0xf]  ;;  %v4242_v3 = vld [vmem:[#allocation10 + $0x4c] sm:$0xf0] }
 0x410   :  { %1225 = vmatpush.bf16.msra.mxu0 %v3643_v25  ;;  %1254 = vmatpush.bf16.msra.mxu1 %v3647_v45  ;;  %v3850_v25 = vld [vmem:[#allocation10 + $0xc0] sm:$0xf]  ;;  %v4259_v45 = vld [vmem:[#allocation10 + $0xd4] sm:$0xf0] }
 0x411   :  { %1283 = vmatpush.bf16.msra.mxu2 %v3651_v46  ;;  %1312 = vmatpush.bf16.msra.mxu3 %v3655_v10  ;;  %v4257_v46 = vld [vmem:[#allocation10 + $0xcc] sm:$0xf]  ;;  %v3842_v10 = vld [vmem:[#allocation10 + $0xa8] sm:$0xf] }
 0x414   :  { %1255 = vmatpush.bf16.msra.mxu1 %v3631_v52  ;;  %v3818_v52 = vld [vmem:[#allocation10 + $0x80] sm:$0xf] }
 0x473   :  { %v856_v43 = vpop.f32.mrf.mxu0  ;;  %v869_v13 = vpop.f32.mrf.mxu1 }
 0x474   :  { %v899_v61 = vadd.f32 %v856_v43, %v842_v24  ;;  %v900_v37 = vadd.f32 %v869_v13, %v843_v26  ;;  %v3634_v24 = vld [vmem:[#allocation9 + $0x8] sm:$0xf]  ;;  %v4203_v26 = vld [vmem:[#allocation9 + $0x14] sm:$0xf0]  ;;  %v3627_v43 = vor.u32 %v4202_v57, %v3626_v56  ;;  %v3860_v56 = vld [vmem:[#allocation10 + $0xd8] sm:$0xf0] }
 0x475   :  { %v3635_v54 = vor.u32 %v4203_v26, %v3634_v24  ;;  %v3834_v57 = vld [vmem:[#allocation10 + $0xa0] sm:$0xf]  ;;  %v5341_v26 = vor.u32 %v4255_v23, %v3842_v10  ;;  %v4236_v10 = vld [vmem:[#allocation10 + $0x24] sm:$0xf] }
 0x476   :  { %v903_v22 = vmul.f32 0.5, %v899_v61  ;;  %v907_v63 = vmul.f32 0.5, %v900_v37  ;;  %v3639_v61 = vor.u32 %v4201_v31, %v3636_v40  ;;  %1226 = vmatpush.bf16.msra.mxu0 %v3627_v43  ;;  %v1014_v31 = vpack.c.bf16 %v5220_v20, %v5180_v4  ;;  %v3844_v43 = vld [vmem:[#allocation10 + $0xb8] sm:$0xf0]  ;;  %v4248_v4 = vld [vmem:[#allocation10 + $0x84] sm:$0xf] }
 0x477   :  { %1284 = vmatpush.bf16.msra.mxu2 %v3635_v54  ;;  %v1015_v40 = vpack.c.bf16 %v5300_v49, %v5260_v39  ;;  %v4250_v54 = vld [vmem:[#allocation10 + $0x8c] sm:$0xf0]  ;;  %v925_v39 = vld [vmem:[#allocation4 + $0xe8] sm:$0xff] }
 0x478   :  { %4413 = vtanh.f32 %v903_v22  ;;  %1313 = vmatpush.bf16.msra.mxu3 %v3639_v61  ;;  %v5354_v20 = vor.u32 %v4250_v54, %v3818_v52  ;;  %v4251_v61 = vld [vmem:[#allocation10 + $0x94] sm:$0xf0]  ;;  %v4237_v54 = vld [vmem:[#allocation10 + $0x2c] sm:$0xf] }
 0x479   :  { %4415 = vtanh.f32 %v907_v63  ;;  %v4239_v52 = vld [vmem:[#allocation10 + $0x34] sm:$0xf0] }
 0x47a   :  { %v882_v38 = vpop.f32.mrf.mxu2  ;;  %v895_v44 = vpop.f32.mrf.mxu3 }
 0x47b   :  { %v901_v58 = vadd.f32 %v882_v38, %v844_v27  ;;  %v902_v62 = vadd.f32 %v895_v44, %v845_v28  ;;  %v858_v5 = vpop.f32.mrf.mxu0  ;;  %v871_v9 = vpop.f32.mrf.mxu1  ;;  %v5327_v38 = vor.u32 %v4256_v29, %v3852_v33  ;;  %v3858_v44 = vld [vmem:[#allocation10 + $0xc8] sm:$0xf] }
 0x47c   :  { %v5330_v50 = vor.u32 %v4259_v45, %v3858_v44  ;;  %v4252_v5 = vld [vmem:[#allocation10 + $0xa4] sm:$0xf]  ;;  %v3836_v9 = vld [vmem:[#allocation10 + $0xb0] sm:$0xf0]  ;;  %v5375_v44 = vor.u32 %v4242_v3, %v3786_v36  ;;  %v4243_v45 = vld [vmem:[#allocation10 + $0x54] sm:$0xf0] }
 0x47d   :  { %4417 = vtanh.f32 %v901_v58  ;;  %v912_v42 = vmul.f32 0.5, %v902_v62  ;;  %v4254_v58 = vld [vmem:[#allocation10 + $0xac] sm:$0xf0]  ;;  %v5332_v62 = vor.u32 %v4257_v46, %v3860_v56  ;;  %v5339_v24 = vor.u32 %v4252_v5, %v3836_v9  ;;  %v4241_v46 = vld [vmem:[#allocation10 + $0x4c] sm:$0xf] }
 0x47e   :  { %v4414_v13 = vpop.eup %4413  ;;  %v5335_v15 = vor.u32 %v4254_v58, %v3834_v57  ;;  %v3796_v56 = vld [vmem:[#allocation10 + $0x58] sm:$0xf0]  ;;  %v3770_v5 = vld [vmem:[#allocation10 + $0x20] sm:$0xf]  ;;  %v4238_v9 = vld [vmem:[#allocation10 + $0x2c] sm:$0xf0] }
 0x47f   :  { %v4416_v55 = vpop.eup %4415  ;;  %v905_v59 = vmul.f32 0.5, %v4414_v13  ;;  %4419 = vtanh.f32 %v912_v42  ;;  %v4253_v42 = vld [vmem:[#allocation10 + $0xac] sm:$0xf]  ;;  %v3756_v3 = vld [vmem:[#allocation10 + $0x10] sm:$0xf0] }
 0x480   :  { %v909_v37 = vmul.f32 0.5, %v4416_v55  ;;  %v5351_v13 = vor.u32 %v4253_v42, %v3844_v43  ;;  %v3820_v55 = vld [vmem:[#allocation10 + $0x90] sm:$0xf0]  ;;  %v3778_v43 = vld [vmem:[#allocation10 + $0x28] sm:$0xf] }
 0x481   :  { %v906_v0 = vadd.f32 0.5, %v905_v59  ;;  %v3826_v59 = vld [vmem:[#allocation10 + $0x88] sm:$0xf]  ;;  %v5356_v49 = vor.u32 %v4248_v4, %v3820_v55  ;;  %v3772_v42 = vld [vmem:[#allocation10 + $0x30] sm:$0xf0] }
 0x482   :  { %v910_v1 = vadd.f32 0.5, %v909_v37  ;;  %v884_v2 = vpop.f32.mrf.mxu2  ;;  %v897_v6 = vpop.f32.mrf.mxu3  ;;  %v924_v37 = vld [vmem:[#allocation4 + $0xe0] sm:$0xff]  ;;  %v3780_v4 = vld [vmem:[#allocation10 + $0x38] sm:$0xf0]  ;;  %v926_v55 = vld [vmem:[#allocation4 + $0xf0] sm:$0xff] }
 0x483   :  { %v4418_v53 = vpop.eup %4417  ;;  %v3828_v2 = vld [vmem:[#allocation10 + $0x98] sm:$0xf0]  ;;  %v3802_v6 = vld [vmem:[#allocation10 + $0x60] sm:$0xf] }
 0x484   :  { %v916_v11 = vmul.f32 %v910_v1, %v5297_v41  ;;  %v917_v14 = vmul.f32 %v4418_v53, %v906_v0  ;;  %v1013_v41 = vpack.c.bf16 %v5140_v60, %v5100_v51  ;;  %v5321_v51 = vor.u32 %v4261_v17, %v3876_v21  ;;  %v4258_v60 = vld [vmem:[#allocation10 + $0xcc] sm:$0xf0]  ;;  %v4249_v1 = vld [vmem:[#allocation10 + $0x8c] sm:$0xf]  ;;  %v4240_v21 = vld [vmem:[#allocation10 + $0x44] sm:$0xf] }
 0x485   :  { %v4420_v18 = vpop.eup %4419  ;;  %v5325_v34 = vor.u32 %v4258_v60, %v3850_v25  ;;  %v5358_v0 = vor.u32 %v4251_v61, %v3826_v59  ;;  %v5361_v53 = vor.u32 %v4249_v1, %v3828_v2  ;;  %v3788_v25 = vld [vmem:[#allocation10 + $0x50] sm:$0xf0]  ;;  %v3794_v60 = vld [vmem:[#allocation10 + $0x48] sm:$0xf]  ;;  %v927_v59 = vld [vmem:[#allocation4 + $0xf8] sm:$0xff]  ;;  %v5387_v61 = vor.u32 %v4238_v9, %v3770_v5 }
 0x486   :  { %v5305_v19 = vadd.f32 %v917_v14, %v916_v11  ;;  %v914_v22 = vmul.f32 0.5, %v4420_v18  ;;  %v4246_v11 = vld [vmem:[#allocation10 + $0x6c] sm:$0xf0]  ;;  %v4244_v14 = vld [vmem:[#allocation10 + $0x64] sm:$0xf]  ;;  %v5379_v57 = vor.u32 %v4240_v21, %v3788_v25  ;;  %v5381_v58 = vor.u32 %v4243_v45, %v3794_v60 }
 0x487   :  { %v3804_v18 = vld [vmem:[#allocation10 + $0x70] sm:$0xf0] }
 0x488   :  { %4421 = vtanh.f32 %v5305_v19  ;;  %v915_v63 = vadd.f32 0.5, %v914_v22  ;;  %v5365_v22 = vor.u32 %v4246_v11, %v3802_v6  ;;  %v5396_v6 = vor.u32 %v4237_v54, %v3780_v4 }
 0x48e   :  { %v4422_v27 = vpop.eup %4421 }
 0x48f   :  { %v5308_v28 = vmul.f32 %v4422_v27, %v915_v63  ;;  %v5367_v63 = vor.u32 %v4244_v14, %v3804_v18  ;;  %v3810_v27 = vld [vmem:[#allocation10 + $0x68] sm:$0xf] }
 0x491   :  { %v928_v30 = vpack.c.bf16 %v5308_v28, %v5308_v28 }
 0x493   :  { %937 = vmatmul.bf16.vlgmr.msrb.gmra.mxu0 %v928_v30  ;;  %950 = vmatmul.bf16.vlgmr.msrb.gmra.mxu1 %v928_v30 }
 0x494   :  { %963 = vmatmul.bf16.vlgmr.msrb.gmra.mxu2 %v928_v30  ;;  %976 = vmatmul.bf16.vlgmr.msrb.gmra.mxu3 %v928_v30  ;;  %v4247_v30 = vld [vmem:[#allocation10 + $0x74] sm:$0xf0] }
 0x495   :  { %1563 = vmatpush.bf16.msrb.mxu0 %v5314_v48  ;;  %1576 = vmatpush.bf16.msrb.mxu1 %v5316_v12  ;;  %v5370_v32 = vor.u32 %v4247_v30, %v3810_v27  ;;  %v3754_v30 = vld [vmem:[#allocation10] sm:$0xf] }
 0x496   :  { %1589 = vmatpush.bf16.msrb.mxu2 %v5318_v16  ;;  %1602 = vmatpush.bf16.msrb.mxu3 %v5321_v51 }
 0x499   :  { %1564 = vmatpush.bf16.msrb.mxu0 %v5325_v34  ;;  %1577 = vmatpush.bf16.msrb.mxu1 %v5327_v38 }
 0x49a   :  { %1590 = vmatpush.bf16.msrb.mxu2 %v5330_v50  ;;  %1603 = vmatpush.bf16.msrb.mxu3 %v5332_v62 }
 0x49d   :  { %1565 = vmatpush.bf16.msrb.mxu0 %v5335_v15  ;;  %1578 = vmatpush.bf16.msrb.mxu1 %v5339_v24 }
 0x49e   :  { %1591 = vmatpush.bf16.msrb.mxu2 %v5341_v26  ;;  %1604 = vmatpush.bf16.msrb.mxu3 %v5351_v13 }
 0x4a1   :  { %1566 = vmatpush.bf16.msrb.mxu0 %v5354_v20  ;;  %1579 = vmatpush.bf16.msrb.mxu1 %v5356_v49 }
 0x4a2   :  { %1592 = vmatpush.bf16.msrb.mxu2 %v5358_v0  ;;  %1605 = vmatpush.bf16.msrb.mxu3 %v5361_v53 }
 0x4a3   :  { %1227 = vmatmul.bf16.vlgmr.msra.gmra.mxu0 %v1013_v41  ;;  %1256 = vmatmul.bf16.vlgmr.msra.gmra.mxu1 %v1013_v41 }
 0x4a4   :  { %1285 = vmatmul.bf16.vlgmr.msra.gmra.mxu2 %v1013_v41  ;;  %1314 = vmatmul.bf16.vlgmr.msra.gmra.mxu3 %v1013_v41  ;;  %v4245_v41 = vld [vmem:[#allocation10 + $0x6c] sm:$0xf] }
 0x4a5   :  { %v5372_v17 = vor.u32 %v4245_v41, %v3812_v35  ;;  %1567 = vmatpush.bf16.msrb.mxu0 %v5365_v22  ;;  %1580 = vmatpush.bf16.msrb.mxu1 %v5367_v63  ;;  %v4234_v41 = vld [vmem:[#allocation10 + $0xc] sm:$0xf0]  ;;  %v4232_v35 = vld [vmem:[#allocation10 + $0x4] sm:$0xf] }
 0x4a6   :  { %1593 = vmatpush.bf16.msrb.mxu2 %v5370_v32  ;;  %v5399_v36 = vor.u32 %v4234_v41, %v3754_v30  ;;  %v5403_v25 = vor.u32 %v4232_v35, %v3756_v3 }
 0x4a7   :  { %1606 = vmatpush.bf16.msrb.mxu3 %v5372_v17 }
 0x4a9   :  { %1568 = vmatpush.bf16.msrb.mxu0 %v5375_v44  ;;  %1581 = vmatpush.bf16.msrb.mxu1 %v5379_v57 }
 0x4aa   :  { %1594 = vmatpush.bf16.msrb.mxu2 %v5381_v58 }
 0x4ad   :  { %1569 = vmatpush.bf16.msrb.mxu0 %v5387_v61 }
 0x4b1   :  { %1570 = vmatpush.bf16.msrb.mxu0 %v5399_v36 }
 0x4b3   :  { %1232 = vmatmul.bf16.gmra.mxu0 %v1014_v31  ;;  %1261 = vmatmul.bf16.gmra.mxu1 %v1014_v31 }
 0x4b4   :  { %1290 = vmatmul.bf16.gmra.mxu2 %v1014_v31  ;;  %1319 = vmatmul.bf16.gmra.mxu3 %v1014_v31 }
 0x4b5   :  { %1644 = vmatpush.bf16.msra.mxu0 %v5314_v48 }
 0x4b9   :  { %1645 = vmatpush.bf16.msra.mxu0 %v5325_v34 }
 0x4bd   :  { %1646 = vmatpush.bf16.msra.mxu0 %v5335_v15 }
 0x4c1   :  { %1647 = vmatpush.bf16.msra.mxu0 %v5354_v20 }
 0x4c3   :  { %1237 = vmatmul.bf16.gmra.mxu0 %v1015_v40  ;;  %1266 = vmatmul.bf16.gmra.mxu1 %v1015_v40 }
 0x4c4   :  { %1295 = vmatmul.bf16.gmra.mxu2 %v1015_v40  ;;  %1324 = vmatmul.bf16.gmra.mxu3 %v1015_v40  ;;  %v5384_v40 = vor.u32 %v4241_v46, %v3796_v56 }
 0x4c5   :  { %1648 = vmatpush.bf16.msra.mxu0 %v5365_v22 }
 0x4c6   :  { %1607 = vmatpush.bf16.msrb.mxu3 %v5384_v40 }
 0x4c9   :  { %1649 = vmatpush.bf16.msra.mxu0 %v5375_v44 }
 0x4ca   :  { %1608 = vmatpush.bf16.msrb.mxu3 %v5396_v6 }
 0x4cd   :  { %1650 = vmatpush.bf16.msra.mxu0 %v5387_v61 }
 0x4d1   :  { %1651 = vmatpush.bf16.msra.mxu0 %v5399_v36 }
 0x510   :  { %v938_v7 = vpop.f32.mrf.mxu0  ;;  %v951_v8 = vpop.f32.mrf.mxu1 }
 0x511   :  { %v981_v29 = vadd.f32 %v938_v7, %v924_v37  ;;  %v982_v33 = vadd.f32 %v951_v8, %v925_v39  ;;  %v5391_v37 = vor.u32 %v4236_v10, %v3772_v42  ;;  %v5393_v39 = vor.u32 %v4239_v52, %v3778_v43  ;;  %v3762_v7 = vld [vmem:[#allocation10 + $0x8] sm:$0xf]  ;;  %v4235_v8 = vld [vmem:[#allocation10 + $0x14] sm:$0xf0] }
 0x512   :  { %v5405_v60 = vor.u32 %v4235_v8, %v3762_v7 }
 0x513   :  { %v985_v23 = vmul.f32 0.5, %v981_v29  ;;  %v989_v31 = vmul.f32 0.5, %v982_v33  ;;  %1582 = vmatpush.bf16.msrb.mxu1 %v5391_v37  ;;  %1595 = vmatpush.bf16.msrb.mxu2 %v5393_v39  ;;  %v4233_v29 = vld [vmem:[#allocation10 + $0xc] sm:$0xf]  ;;  %v3764_v33 = vld [vmem:[#allocation10 + $0x18] sm:$0xf0] }
 0x514   :  { %v5408_v46 = vor.u32 %v4233_v29, %v3764_v33 }
 0x515   :  { %4423 = vtanh.f32 %v985_v23 }
 0x516   :  { %4425 = vtanh.f32 %v989_v31  ;;  %1609 = vmatpush.bf16.msrb.mxu3 %v5408_v46 }
 0x517   :  { %v964_v1 = vpop.f32.mrf.mxu2  ;;  %v977_v2 = vpop.f32.mrf.mxu3  ;;  %1583 = vmatpush.bf16.msrb.mxu1 %v5403_v25  ;;  %1596 = vmatpush.bf16.msrb.mxu2 %v5405_v60 }
 0x518   :  { %v983_v11 = vadd.f32 %v964_v1, %v926_v55  ;;  %v984_v14 = vadd.f32 %v977_v2, %v927_v59  ;;  %v940_v18 = vpop.f32.mrf.mxu0  ;;  %v953_v27 = vpop.f32.mrf.mxu1 }
 0x51a   :  { %4427 = vtanh.f32 %v983_v11  ;;  %v994_v21 = vmul.f32 0.5, %v984_v14  ;;  %1683 = vmatpush.bf16.msra.mxu3 %v5321_v51 }
 0x51b   :  { %v4424_v45 = vpop.eup %4423  ;;  %1657 = vmatpush.bf16.msra.mxu1 %v5316_v12  ;;  %1670 = vmatpush.bf16.msra.mxu2 %v5318_v16 }
 0x51c   :  { %v4426_v56 = vpop.eup %4425  ;;  %v987_v5 = vmul.f32 0.5, %v4424_v45  ;;  %4429 = vtanh.f32 %v994_v21 }
 0x51d   :  { %v991_v9 = vmul.f32 0.5, %v4426_v56 }
 0x51e   :  { %v988_v10 = vadd.f32 0.5, %v987_v5  ;;  %1684 = vmatpush.bf16.msra.mxu3 %v5332_v62 }
 0x51f   :  { %v992_v23 = vadd.f32 0.5, %v991_v9  ;;  %v966_v31 = vpop.f32.mrf.mxu2  ;;  %v979_v42 = vpop.f32.mrf.mxu3  ;;  %1658 = vmatpush.bf16.msra.mxu1 %v5327_v38  ;;  %1671 = vmatpush.bf16.msra.mxu2 %v5330_v50 }
 0x520   :  { %v4428_v43 = vpop.eup %4427  ;;  %v1257_v14 = vpop.f32.mrf.mxu1 }
 0x521   :  { %v998_v52 = vmul.f32 %v992_v23, %v5305_v19  ;;  %v999_v54 = vmul.f32 %v4428_v43, %v988_v10 }
 0x522   :  { %v4430_v4 = vpop.eup %4429  ;;  %1685 = vmatpush.bf16.msra.mxu3 %v5351_v13 }
 0x523   :  { %v1000_v55 = vadd.f32 %v999_v54, %v998_v52  ;;  %v996_v59 = vmul.f32 0.5, %v4430_v4  ;;  %1659 = vmatpush.bf16.msra.mxu1 %v5339_v24  ;;  %1672 = vmatpush.bf16.msra.mxu2 %v5341_v26 }
 0x525   :  { %4431 = vtanh.f32 %v1000_v55  ;;  %v997_v19 = vadd.f32 0.5, %v996_v59 }
 0x526   :  { %1686 = vmatpush.bf16.msra.mxu3 %v5361_v53 }
 0x527   :  { %1660 = vmatpush.bf16.msra.mxu1 %v5356_v49  ;;  %1673 = vmatpush.bf16.msra.mxu2 %v5358_v0  ;;  %v1286_v18 = vpop.f32.mrf.mxu2  ;;  %v1315_v27 = vpop.f32.mrf.mxu3 }
 0x528   :  { %v5486_v41 = vpop.f32.mrf.mxu1 }
 0x52a   :  { %1687 = vmatpush.bf16.msra.mxu3 %v5372_v17 }
 0x52b   :  { %v4432_v1 = vpop.eup %4431  ;;  %1661 = vmatpush.bf16.msra.mxu1 %v5367_v63  ;;  %1674 = vmatpush.bf16.msra.mxu2 %v5370_v32 }
 0x52c   :  { %v1002_v2 = vmul.f32 %v4432_v1, %v997_v19  ;;  %v1049_v1 = vld [vmem:[#allocation12] sm:$0xf] }
 0x52e   :  { %v1016_v11 = vpack.c.bf16 %v1002_v2, %v5308_v28  ;;  %1688 = vmatpush.bf16.msra.mxu3 %v5384_v40  ;;  %v1228_v28 = vpop.f32.mrf.mxu0 }
 0x52f   :  { %1662 = vmatpush.bf16.msra.mxu1 %v5379_v57  ;;  %1675 = vmatpush.bf16.msra.mxu2 %v5381_v58  ;;  %v5488_v35 = vpop.f32.mrf.mxu2  ;;  %v5490_v3 = vpop.f32.mrf.mxu3 }
 0x530   :  { %1242 = vmatmul.bf16.gmra.mxu0 %v1016_v11  ;;  %1271 = vmatmul.bf16.gmra.mxu1 %v1016_v11  ;;  %v5494_v8 = vpop.f32.mrf.mxu1 }
 0x531   :  { %1300 = vmatmul.bf16.gmra.mxu2 %v1016_v11  ;;  %1329 = vmatmul.bf16.gmra.mxu3 %v1016_v11 }
 0x532   :  { %1689 = vmatpush.bf16.msra.mxu3 %v5396_v6 }
 0x533   :  { %1663 = vmatpush.bf16.msra.mxu1 %v5391_v37  ;;  %1676 = vmatpush.bf16.msra.mxu2 %v5393_v39 }
 0x536   :  { %1690 = vmatpush.bf16.msra.mxu3 %v5408_v46  ;;  %v5484_v30 = vpop.f32.mrf.mxu0 }
 0x537   :  { %1664 = vmatpush.bf16.msra.mxu1 %v5403_v25  ;;  %1677 = vmatpush.bf16.msra.mxu2 %v5405_v60  ;;  %v5496_v21 = vpop.f32.mrf.mxu2  ;;  %v5498_v29 = vpop.f32.mrf.mxu3 }
 0x538   :  { %6321 = vst [vmem:[#allocation25_spill] sm:$0xff] %v5496_v21  ;;  %v5502_v45 = vpop.f32.mrf.mxu1 }
 0x539   :  { %6322 = vst [vmem:[#allocation26_spill] sm:$0xff] %v5498_v29 }
 0x53a   :  { %6324 = vst [vmem:[#allocation28_spill] sm:$0xff] %v5502_v45 }
 0x53e   :  { %v5492_v7 = vpop.f32.mrf.mxu0 }
 0x53f   :  { %v5504_v56 = vpop.f32.mrf.mxu2  ;;  %v5506_v5 = vpop.f32.mrf.mxu3 }
 0x540   :  { %1571 = vmatmul.bf16.vlgmr.msrb.gmra.mxu0 %v6319_v47  ;;  %1584 = vmatmul.bf16.vlgmr.msrb.gmra.mxu1 %v6319_v47  ;;  %6325 = vst [vmem:[#allocation29_spill] sm:$0xff] %v5504_v56  ;;  %v5510_v10 = vpop.f32.mrf.mxu1 }
 0x541   :  { %1597 = vmatmul.bf16.vlgmr.msrb.gmra.mxu2 %v6319_v47  ;;  %1610 = vmatmul.bf16.vlgmr.msrb.gmra.mxu3 %v6319_v47  ;;  %6326 = vst [vmem:[#allocation30_spill] sm:$0xff] %v5506_v5  ;;  %v5536_v47 = vperm.slane %v1049_v1, 0 }
 0x542   :  { %1725 = vmatpush.bf16.msrb.mxu0 %v5314_v48  ;;  %1738 = vmatpush.bf16.msrb.mxu1 %v5316_v12  ;;  %6328 = vst [vmem:[#allocation32_spill] sm:$0xff] %v5510_v10 }
 0x543   :  { %1751 = vmatpush.bf16.msrb.mxu2 %v5318_v16  ;;  %1764 = vmatpush.bf16.msrb.mxu3 %v5321_v51 }
 0x546   :  { %1726 = vmatpush.bf16.msrb.mxu0 %v5325_v34  ;;  %1739 = vmatpush.bf16.msrb.mxu1 %v5327_v38  ;;  %v5500_v33 = vpop.f32.mrf.mxu0 }
 0x547   :  { %1752 = vmatpush.bf16.msrb.mxu2 %v5330_v50  ;;  %1765 = vmatpush.bf16.msrb.mxu3 %v5332_v62  ;;  %6323 = vst [vmem:[#allocation27_spill] sm:$0xff] %v5500_v33  ;;  %v5512_v23 = vpop.f32.mrf.mxu2  ;;  %v5514_v31 = vpop.f32.mrf.mxu3 }
 0x548   :  { %6329 = vst [vmem:[#allocation33_spill] sm:$0xff] %v5512_v23  ;;  %v5518_v43 = vpop.f32.mrf.mxu1  ;;  %v5546_v23 = vperm.slane %v1049_v1, 2 }
 0x549   :  { %6330 = vst [vmem:[#allocation34_spill] sm:$0xff] %v5514_v31 }
 0x54a   :  { %1727 = vmatpush.bf16.msrb.mxu0 %v5335_v15  ;;  %1740 = vmatpush.bf16.msrb.mxu1 %v5339_v24  ;;  %6332 = vst [vmem:[#allocation36_spill] sm:$0xff] %v5518_v43  ;;  %v5538_v43 = vperm.slane %v1049_v1, 1 }
 0x54b   :  { %1753 = vmatpush.bf16.msrb.mxu2 %v5341_v26  ;;  %1766 = vmatpush.bf16.msrb.mxu3 %v5351_v13 }
 0x54e   :  { %1728 = vmatpush.bf16.msrb.mxu0 %v5354_v20  ;;  %1741 = vmatpush.bf16.msrb.mxu1 %v5356_v49  ;;  %v5508_v9 = vpop.f32.mrf.mxu0 }
 0x54f   :  { %1754 = vmatpush.bf16.msrb.mxu2 %v5358_v0  ;;  %1767 = vmatpush.bf16.msrb.mxu3 %v5361_v53  ;;  %6327 = vst [vmem:[#allocation31_spill] sm:$0xff] %v5508_v9  ;;  %v5520_v52 = vpop.f32.mrf.mxu2  ;;  %v5522_v54 = vpop.f32.mrf.mxu3  ;;  %v1287_v9 = vadd.f32 %v1286_v18, %v5546_v23 }
 0x550   :  { %6333 = vst [vmem:[#allocation37_spill] sm:$0xff] %v5520_v52  ;;  %v1229_v52 = vadd.f32 %v1228_v28, %v5536_v47 }
 0x551   :  { %6334 = vst [vmem:[#allocation38_spill] sm:$0xff] %v5522_v54  ;;  %v1258_v54 = vadd.f32 %v1257_v14, %v5538_v43 }
 0x552   :  { %1729 = vmatpush.bf16.msrb.mxu0 %v5365_v22  ;;  %1742 = vmatpush.bf16.msrb.mxu1 %v5367_v63 }
 0x553   :  { %1755 = vmatpush.bf16.msrb.mxu2 %v5370_v32  ;;  %1768 = vmatpush.bf16.msrb.mxu3 %v5372_v17 }
 0x556   :  { %1730 = vmatpush.bf16.msrb.mxu0 %v5375_v44  ;;  %1743 = vmatpush.bf16.msrb.mxu1 %v5379_v57  ;;  %v5516_v42 = vpop.f32.mrf.mxu0 }
 0x557   :  { %1756 = vmatpush.bf16.msrb.mxu2 %v5381_v58  ;;  %1769 = vmatpush.bf16.msrb.mxu3 %v5384_v40  ;;  %6331 = vst [vmem:[#allocation35_spill] sm:$0xff] %v5516_v42 }
 0x55a   :  { %1731 = vmatpush.bf16.msrb.mxu0 %v5387_v61  ;;  %1744 = vmatpush.bf16.msrb.mxu1 %v5391_v37 }
 0x55b   :  { %1757 = vmatpush.bf16.msrb.mxu2 %v5393_v39  ;;  %1770 = vmatpush.bf16.msrb.mxu3 %v5396_v6 }
 0x55e   :  { %1732 = vmatpush.bf16.msrb.mxu0 %v5399_v36  ;;  %1745 = vmatpush.bf16.msrb.mxu1 %v5403_v25 }
 0x55f   :  { %1758 = vmatpush.bf16.msrb.mxu2 %v5405_v60  ;;  %1771 = vmatpush.bf16.msrb.mxu3 %v5408_v46 }
 0x5ad   :  { %v5524_v4 = vpop.f32.mrf.mxu0  ;;  %v5526_v55 = vpop.f32.mrf.mxu1 }
 0x5ae   :  { %6335 = vst [vmem:[#allocation39_spill] sm:$0xff] %v5524_v4 }
 0x5af   :  { %6336 = vst [vmem:[#allocation40_spill] sm:$0xff] %v5526_v55 }
 0x5b4   :  { %v5528_v59 = vpop.f32.mrf.mxu2  ;;  %v5530_v19 = vpop.f32.mrf.mxu3 }
 0x5b5   :  { %6337 = vst [vmem:[#allocation41_spill] sm:$0xff] %v5528_v59  ;;  %v5532_v2 = vpop.f32.mrf.mxu0  ;;  %v5534_v11 = vpop.f32.mrf.mxu1 }
 0x5b6   :  { %6338 = vst [vmem:[#allocation42_spill] sm:$0xff] %v5530_v19 }
 0x5b7   :  { %6339 = vst [vmem:[#allocation43_spill] sm:$0xff] %v5532_v2  ;;  %v5548_v2 = vperm.slane %v1049_v1, 3 }
 0x5b8   :  { %6340 = vst [vmem:[#allocation44_spill] sm:$0xff] %v5534_v11 }
 0x5b9   :  { %v1316_v28 = vadd.f32 %v1315_v27, %v5548_v2 }
 0x5bc   :  { %v5542_v4 = vpop.f32.mrf.mxu2  ;;  %v5544_v55 = vpop.f32.mrf.mxu3 }
 0x5bd   :  { %6341 = vst [vmem:[#allocation45_spill] sm:$0xff] %v5542_v4  ;;  %v1572_v59 = vpop.f32.mrf.mxu0  ;;  %v1585_v42 = vpop.f32.mrf.mxu1 }
 0x5be   :  { %6342 = vst [vmem:[#allocation46_spill] sm:$0xff] %v5544_v55  ;;  %v1615_v19 = vadd.f32 %v1572_v59, %v1229_v52  ;;  %v1616_v31 = vadd.f32 %v1585_v42, %v1258_v54 }
 0x5c0   :  { %v1619_v11 = vmul.f32 0.5, %v1615_v19  ;;  %v1623_v10 = vmul.f32 0.5, %v1616_v31 }
 0x5c2   :  { %4433 = vtanh.f32 %v1619_v11 }
 0x5c3   :  { %4435 = vtanh.f32 %v1623_v10 }
 0x5c4   :  { %v1598_v14 = vpop.f32.mrf.mxu2  ;;  %v1611_v4 = vpop.f32.mrf.mxu3 }
 0x5c5   :  { %v1617_v5 = vadd.f32 %v1598_v14, %v1287_v9  ;;  %v1618_v55 = vadd.f32 %v1611_v4, %v1316_v28  ;;  %v1574_v56 = vpop.f32.mrf.mxu0  ;;  %v1587_v45 = vpop.f32.mrf.mxu1 }
 0x5c7   :  { %4437 = vtanh.f32 %v1617_v5  ;;  %v1628_v42 = vmul.f32 0.5, %v1618_v55 }
 0x5c8   :  { %v4434_v52 = vpop.eup %4433 }
 0x5c9   :  { %v4436_v54 = vpop.eup %4435  ;;  %v1621_v59 = vmul.f32 0.5, %v4434_v52  ;;  %4439 = vtanh.f32 %v1628_v42 }
 0x5ca   :  { %v1625_v1 = vmul.f32 0.5, %v4436_v54 }
 0x5cb   :  { %v1622_v31 = vadd.f32 0.5, %v1621_v59  ;;  %v1289_v59 = vadd.f32 %v5488_v35, %v5546_v23 }
 0x5cc   :  { %v1626_v19 = vadd.f32 0.5, %v1625_v1  ;;  %v1600_v11 = vpop.f32.mrf.mxu2  ;;  %v1613_v18 = vpop.f32.mrf.mxu3  ;;  %v1318_v1 = vadd.f32 %v5490_v3, %v5548_v2 }
 0x5cd   :  { %v4438_v33 = vpop.eup %4437 }
 0x5ce   :  { %v1632_v27 = vmul.f32 0.0, %v1626_v19  ;;  %v1633_v10 = vmul.f32 %v4438_v33, %v1622_v31  ;;  %v1260_v33 = vadd.f32 %v5486_v41, %v5538_v43 }
 0x5cf   :  { %v4440_v29 = vpop.eup %4439 }
 0x5d0   :  { %v5552_v21 = vadd.f32 %v1633_v10, %v1632_v27  ;;  %v1630_v45 = vmul.f32 0.5, %v4440_v29  ;;  %v1231_v29 = vadd.f32 %v5484_v30, %v5536_v47 }
 0x5d2   :  { %4441 = vtanh.f32 %v5552_v21  ;;  %v1631_v56 = vadd.f32 0.5, %v1630_v45 }
 0x5d8   :  { %v4442_v5 = vpop.eup %4441 }
 0x5d9   :  { %v5555_v9 = vmul.f32 %v4442_v5, %v1631_v56 }
 0x5db   :  { %v1643_v4 = vpack.c.bf16 %v5555_v9, %v5555_v9 }
 0x5dd   :  { %1652 = vmatmul.bf16.vlgmr.msra.gmra.mxu0 %v1643_v4  ;;  %1665 = vmatmul.bf16.vlgmr.msra.gmra.mxu1 %v1643_v4 }
 0x5de   :  { %1678 = vmatmul.bf16.vlgmr.msra.gmra.mxu2 %v1643_v4  ;;  %1691 = vmatmul.bf16.vlgmr.msra.gmra.mxu3 %v1643_v4 }
 0x5df   :  { %1806 = vmatpush.bf16.msra.mxu0 %v5314_v48  ;;  %1819 = vmatpush.bf16.msra.mxu1 %v5316_v12 }
 0x5e0   :  { %1832 = vmatpush.bf16.msra.mxu2 %v5318_v16  ;;  %1845 = vmatpush.bf16.msra.mxu3 %v5321_v51 }
 0x5e3   :  { %1807 = vmatpush.bf16.msra.mxu0 %v5325_v34  ;;  %1820 = vmatpush.bf16.msra.mxu1 %v5327_v38 }
 0x5e4   :  { %1833 = vmatpush.bf16.msra.mxu2 %v5330_v50  ;;  %1846 = vmatpush.bf16.msra.mxu3 %v5332_v62 }
 0x5e7   :  { %1808 = vmatpush.bf16.msra.mxu0 %v5335_v15  ;;  %1821 = vmatpush.bf16.msra.mxu1 %v5339_v24 }
 0x5e8   :  { %1834 = vmatpush.bf16.msra.mxu2 %v5341_v26  ;;  %1847 = vmatpush.bf16.msra.mxu3 %v5351_v13 }
 0x5eb   :  { %1809 = vmatpush.bf16.msra.mxu0 %v5354_v20  ;;  %1822 = vmatpush.bf16.msra.mxu1 %v5356_v49 }
 0x5ec   :  { %1835 = vmatpush.bf16.msra.mxu2 %v5358_v0  ;;  %1848 = vmatpush.bf16.msra.mxu3 %v5361_v53 }
 0x5ef   :  { %1810 = vmatpush.bf16.msra.mxu0 %v5365_v22  ;;  %1823 = vmatpush.bf16.msra.mxu1 %v5367_v63 }
 0x5f0   :  { %1836 = vmatpush.bf16.msra.mxu2 %v5370_v32  ;;  %1849 = vmatpush.bf16.msra.mxu3 %v5372_v17 }
 0x5f3   :  { %1811 = vmatpush.bf16.msra.mxu0 %v5375_v44  ;;  %1824 = vmatpush.bf16.msra.mxu1 %v5379_v57 }
 0x5f4   :  { %1837 = vmatpush.bf16.msra.mxu2 %v5381_v58  ;;  %1850 = vmatpush.bf16.msra.mxu3 %v5384_v40 }
 0x5f7   :  { %1812 = vmatpush.bf16.msra.mxu0 %v5387_v61  ;;  %1825 = vmatpush.bf16.msra.mxu1 %v5391_v37 }
 0x5f8   :  { %1838 = vmatpush.bf16.msra.mxu2 %v5393_v39  ;;  %1851 = vmatpush.bf16.msra.mxu3 %v5396_v6 }
 0x5fb   :  { %1813 = vmatpush.bf16.msra.mxu0 %v5399_v36  ;;  %1826 = vmatpush.bf16.msra.mxu1 %v5403_v25 }
 0x5fc   :  { %1839 = vmatpush.bf16.msra.mxu2 %v5405_v60  ;;  %1852 = vmatpush.bf16.msra.mxu3 %v5408_v46 }
 0x65a   :  { %v1653_v55 = vpop.f32.mrf.mxu0  ;;  %v1666_v28 = vpop.f32.mrf.mxu1 }
 0x65b   :  { %v1696_v14 = vadd.f32 %v1653_v55, %v1231_v29  ;;  %v1697_v42 = vadd.f32 %v1666_v28, %v1260_v33 }
 0x65d   :  { %v1700_v52 = vmul.f32 0.5, %v1696_v14  ;;  %v1704_v54 = vmul.f32 0.5, %v1697_v42 }
 0x65f   :  { %4443 = vtanh.f32 %v1700_v52 }
 0x660   :  { %4445 = vtanh.f32 %v1704_v54 }
 0x661   :  { %v1679_v31 = vpop.f32.mrf.mxu2  ;;  %v1692_v19 = vpop.f32.mrf.mxu3 }
 0x662   :  { %v1698_v30 = vadd.f32 %v1679_v31, %v1289_v59  ;;  %v1699_v11 = vadd.f32 %v1692_v19, %v1318_v1  ;;  %v1655_v18 = vpop.f32.mrf.mxu0  ;;  %v1668_v41 = vpop.f32.mrf.mxu1  ;;  %v1263_v19 = vadd.f32 %v5494_v8, %v5538_v43 }
 0x664   :  { %4447 = vtanh.f32 %v1698_v30  ;;  %v1709_v27 = vmul.f32 0.5, %v1699_v11 }
 0x665   :  { %v4444_v10 = vpop.eup %4443 }
 0x666   :  { %v4446_v45 = vpop.eup %4445  ;;  %v1702_v56 = vmul.f32 0.5, %v4444_v10  ;;  %4449 = vtanh.f32 %v1709_v27 }
 0x667   :  { %v1706_v5 = vmul.f32 0.5, %v4446_v45  ;;  %v6343_v45 = vld [vmem:[#allocation25_spill] sm:$0xff] }
 0x668   :  { %v1703_v4 = vadd.f32 0.5, %v1702_v56  ;;  %v1292_v56 = vadd.f32 %v6343_v45, %v5546_v23 }
 0x669   :  { %v1707_v29 = vadd.f32 0.5, %v1706_v5  ;;  %v1681_v35 = vpop.f32.mrf.mxu2  ;;  %v1694_v33 = vpop.f32.mrf.mxu3  ;;  %v6344_v5 = vld [vmem:[#allocation26_spill] sm:$0xff] }
 0x66a   :  { %v4448_v55 = vpop.eup %4447 }
 0x66b   :  { %v1713_v3 = vmul.f32 %v1707_v29, %v5552_v21  ;;  %v1714_v28 = vmul.f32 %v4448_v55, %v1703_v4  ;;  %v1234_v21 = vadd.f32 %v5492_v7, %v5536_v47  ;;  %v1321_v4 = vadd.f32 %v6344_v5, %v5548_v2 }
 0x66c   :  { %v4450_v14 = vpop.eup %4449 }
 0x66d   :  { %v5600_v42 = vadd.f32 %v1714_v28, %v1713_v3  ;;  %v1711_v52 = vmul.f32 0.5, %v4450_v14 }
 0x66f   :  { %4451 = vtanh.f32 %v5600_v42  ;;  %v1712_v54 = vadd.f32 0.5, %v1711_v52 }
 0x675   :  { %v4452_v59 = vpop.eup %4451 }
 0x676   :  { %v5603_v1 = vmul.f32 %v4452_v59, %v1712_v54 }
 0x678   :  { %v1724_v31 = vpack.c.bf16 %v5603_v1, %v5603_v1 }
 0x67a   :  { %1733 = vmatmul.bf16.vlgmr.msrb.gmra.mxu0 %v1724_v31  ;;  %1746 = vmatmul.bf16.vlgmr.msrb.gmra.mxu1 %v1724_v31 }
 0x67b   :  { %1759 = vmatmul.bf16.vlgmr.msrb.gmra.mxu2 %v1724_v31  ;;  %1772 = vmatmul.bf16.vlgmr.msrb.gmra.mxu3 %v1724_v31 }
 0x67c   :  { %1887 = vmatpush.bf16.msrb.mxu0 %v5314_v48  ;;  %1900 = vmatpush.bf16.msrb.mxu1 %v5316_v12 }
 0x67d   :  { %1913 = vmatpush.bf16.msrb.mxu2 %v5318_v16  ;;  %1926 = vmatpush.bf16.msrb.mxu3 %v5321_v51 }
 0x680   :  { %1888 = vmatpush.bf16.msrb.mxu0 %v5325_v34  ;;  %1901 = vmatpush.bf16.msrb.mxu1 %v5327_v38 }
 0x681   :  { %1914 = vmatpush.bf16.msrb.mxu2 %v5330_v50  ;;  %1927 = vmatpush.bf16.msrb.mxu3 %v5332_v62 }
 0x684   :  { %1889 = vmatpush.bf16.msrb.mxu0 %v5335_v15  ;;  %1902 = vmatpush.bf16.msrb.mxu1 %v5339_v24 }
 0x685   :  { %1915 = vmatpush.bf16.msrb.mxu2 %v5341_v26  ;;  %1928 = vmatpush.bf16.msrb.mxu3 %v5351_v13 }
 0x688   :  { %1890 = vmatpush.bf16.msrb.mxu0 %v5354_v20  ;;  %1903 = vmatpush.bf16.msrb.mxu1 %v5356_v49 }
 0x689   :  { %1916 = vmatpush.bf16.msrb.mxu2 %v5358_v0  ;;  %1929 = vmatpush.bf16.msrb.mxu3 %v5361_v53 }
 0x68c   :  { %1891 = vmatpush.bf16.msrb.mxu0 %v5365_v22  ;;  %1904 = vmatpush.bf16.msrb.mxu1 %v5367_v63 }
 0x68d   :  { %1917 = vmatpush.bf16.msrb.mxu2 %v5370_v32  ;;  %1930 = vmatpush.bf16.msrb.mxu3 %v5372_v17 }
 0x690   :  { %1892 = vmatpush.bf16.msrb.mxu0 %v5375_v44  ;;  %1905 = vmatpush.bf16.msrb.mxu1 %v5379_v57 }
 0x691   :  { %1918 = vmatpush.bf16.msrb.mxu2 %v5381_v58  ;;  %1931 = vmatpush.bf16.msrb.mxu3 %v5384_v40 }
 0x694   :  { %1893 = vmatpush.bf16.msrb.mxu0 %v5387_v61  ;;  %1906 = vmatpush.bf16.msrb.mxu1 %v5391_v37 }
 0x695   :  { %1919 = vmatpush.bf16.msrb.mxu2 %v5393_v39  ;;  %1932 = vmatpush.bf16.msrb.mxu3 %v5396_v6 }
 0x698   :  { %1894 = vmatpush.bf16.msrb.mxu0 %v5399_v36  ;;  %1907 = vmatpush.bf16.msrb.mxu1 %v5403_v25 }
 0x699   :  { %1920 = vmatpush.bf16.msrb.mxu2 %v5405_v60  ;;  %1933 = vmatpush.bf16.msrb.mxu3 %v5408_v46 }
 0x6f7   :  { %v1734_v30 = vpop.f32.mrf.mxu0  ;;  %v1747_v11 = vpop.f32.mrf.mxu1 }
 0x6f8   :  { %v1777_v18 = vadd.f32 %v1734_v30, %v1234_v21  ;;  %v1778_v41 = vadd.f32 %v1747_v11, %v1263_v19 }
 0x6fa   :  { %v1781_v27 = vmul.f32 0.5, %v1777_v18  ;;  %v1785_v10 = vmul.f32 0.5, %v1778_v41 }
 0x6fc   :  { %4453 = vtanh.f32 %v1781_v27 }
 0x6fd   :  { %4455 = vtanh.f32 %v1785_v10 }
 0x6fe   :  { %v1760_v29 = vpop.f32.mrf.mxu2  ;;  %v1773_v35 = vpop.f32.mrf.mxu3 }
 0x6ff   :  { %v1779_v7 = vadd.f32 %v1760_v29, %v1292_v56  ;;  %v1780_v33 = vadd.f32 %v1773_v35, %v1321_v4  ;;  %v1736_v55 = vpop.f32.mrf.mxu0  ;;  %v1749_v8 = vpop.f32.mrf.mxu1  ;;  %v6346_v35 = vld [vmem:[#allocation28_spill] sm:$0xff] }
 0x701   :  { %4457 = vtanh.f32 %v1779_v7  ;;  %v1790_v3 = vmul.f32 0.5, %v1780_v33  ;;  %v1265_v7 = vadd.f32 %v6346_v35, %v5538_v43 }
 0x702   :  { %v4454_v28 = vpop.eup %4453 }
 0x703   :  { %v4456_v14 = vpop.eup %4455  ;;  %v1783_v52 = vmul.f32 0.5, %v4454_v28  ;;  %4459 = vtanh.f32 %v1790_v3 }
 0x704   :  { %v1787_v54 = vmul.f32 0.5, %v4456_v14 }
 0x705   :  { %v1784_v59 = vadd.f32 0.5, %v1783_v52  ;;  %v6347_v52 = vld [vmem:[#allocation29_spill] sm:$0xff] }
 0x706   :  { %v1788_v31 = vadd.f32 0.5, %v1787_v54  ;;  %v1762_v21 = vpop.f32.mrf.mxu2  ;;  %v1775_v19 = vpop.f32.mrf.mxu3  ;;  %v1294_v54 = vadd.f32 %v6347_v52, %v5546_v23 }
 0x707   :  { %v4458_v30 = vpop.eup %4457 }
 0x708   :  { %v1794_v11 = vmul.f32 %v1788_v31, %v5600_v42  ;;  %v1795_v18 = vmul.f32 %v4458_v30, %v1784_v59  ;;  %v6345_v42 = vld [vmem:[#allocation27_spill] sm:$0xff]  ;;  %v6348_v59 = vld [vmem:[#allocation30_spill] sm:$0xff] }
 0x709   :  { %v4460_v41 = vpop.eup %4459  ;;  %v1236_v29 = vadd.f32 %v6345_v42, %v5536_v47  ;;  %v1323_v31 = vadd.f32 %v6348_v59, %v5548_v2 }
 0x70a   :  { %v5648_v27 = vadd.f32 %v1795_v18, %v1794_v11  ;;  %v1792_v10 = vmul.f32 0.5, %v4460_v41 }
 0x70c   :  { %4461 = vtanh.f32 %v5648_v27  ;;  %v1793_v45 = vadd.f32 0.5, %v1792_v10 }
 0x712   :  { %v4462_v56 = vpop.eup %4461 }
 0x713   :  { %v5651_v5 = vmul.f32 %v4462_v56, %v1793_v45 }
 0x715   :  { %v1805_v4 = vpack.c.bf16 %v5651_v5, %v5651_v5 }
 0x717   :  { %1814 = vmatmul.bf16.vlgmr.msra.gmra.mxu0 %v1805_v4  ;;  %1827 = vmatmul.bf16.vlgmr.msra.gmra.mxu1 %v1805_v4 }
 0x718   :  { %1840 = vmatmul.bf16.vlgmr.msra.gmra.mxu2 %v1805_v4  ;;  %1853 = vmatmul.bf16.vlgmr.msra.gmra.mxu3 %v1805_v4 }
 0x719   :  { %1968 = vmatpush.bf16.msra.mxu0 %v5314_v48  ;;  %1981 = vmatpush.bf16.msra.mxu1 %v5316_v12 }
 0x71a   :  { %1994 = vmatpush.bf16.msra.mxu2 %v5318_v16  ;;  %2007 = vmatpush.bf16.msra.mxu3 %v5321_v51 }
 0x71d   :  { %1969 = vmatpush.bf16.msra.mxu0 %v5325_v34  ;;  %1982 = vmatpush.bf16.msra.mxu1 %v5327_v38 }
 0x71e   :  { %1995 = vmatpush.bf16.msra.mxu2 %v5330_v50  ;;  %2008 = vmatpush.bf16.msra.mxu3 %v5332_v62 }
 0x721   :  { %1970 = vmatpush.bf16.msra.mxu0 %v5335_v15  ;;  %1983 = vmatpush.bf16.msra.mxu1 %v5339_v24 }
 0x722   :  { %1996 = vmatpush.bf16.msra.mxu2 %v5341_v26  ;;  %2009 = vmatpush.bf16.msra.mxu3 %v5351_v13 }
 0x725   :  { %1971 = vmatpush.bf16.msra.mxu0 %v5354_v20  ;;  %1984 = vmatpush.bf16.msra.mxu1 %v5356_v49 }
 0x726   :  { %1997 = vmatpush.bf16.msra.mxu2 %v5358_v0  ;;  %2010 = vmatpush.bf16.msra.mxu3 %v5361_v53 }
 0x729   :  { %1972 = vmatpush.bf16.msra.mxu0 %v5365_v22  ;;  %1985 = vmatpush.bf16.msra.mxu1 %v5367_v63 }
 0x72a   :  { %1998 = vmatpush.bf16.msra.mxu2 %v5370_v32  ;;  %2011 = vmatpush.bf16.msra.mxu3 %v5372_v17 }
 0x72d   :  { %1973 = vmatpush.bf16.msra.mxu0 %v5375_v44  ;;  %1986 = vmatpush.bf16.msra.mxu1 %v5379_v57 }
 0x72e   :  { %1999 = vmatpush.bf16.msra.mxu2 %v5381_v58  ;;  %2012 = vmatpush.bf16.msra.mxu3 %v5384_v40 }
 0x731   :  { %1974 = vmatpush.bf16.msra.mxu0 %v5387_v61  ;;  %1987 = vmatpush.bf16.msra.mxu1 %v5391_v37 }
 0x732   :  { %2000 = vmatpush.bf16.msra.mxu2 %v5393_v39  ;;  %2013 = vmatpush.bf16.msra.mxu3 %v5396_v6 }
 0x735   :  { %1975 = vmatpush.bf16.msra.mxu0 %v5399_v36  ;;  %1988 = vmatpush.bf16.msra.mxu1 %v5403_v25 }
 0x736   :  { %2001 = vmatpush.bf16.msra.mxu2 %v5405_v60  ;;  %2014 = vmatpush.bf16.msra.mxu3 %v5408_v46 }
 0x794   :  { %v1815_v33 = vpop.f32.mrf.mxu0  ;;  %v1828_v55 = vpop.f32.mrf.mxu1 }
 0x795   :  { %v1858_v8 = vadd.f32 %v1815_v33, %v1236_v29  ;;  %v1859_v3 = vadd.f32 %v1828_v55, %v1265_v7 }
 0x797   :  { %v1862_v28 = vmul.f32 0.5, %v1858_v8  ;;  %v1866_v14 = vmul.f32 0.5, %v1859_v3 }
 0x799   :  { %4463 = vtanh.f32 %v1862_v28 }
 0x79a   :  { %4465 = vtanh.f32 %v1866_v14 }
 0x79b   :  { %v1841_v21 = vpop.f32.mrf.mxu2  ;;  %v1854_v19 = vpop.f32.mrf.mxu3 }
 0x79c   :  { %v1860_v30 = vadd.f32 %v1841_v21, %v1294_v54  ;;  %v1861_v11 = vadd.f32 %v1854_v19, %v1323_v31  ;;  %v1817_v18 = vpop.f32.mrf.mxu0  ;;  %v1830_v41 = vpop.f32.mrf.mxu1 }
 0x79e   :  { %4467 = vtanh.f32 %v1860_v30  ;;  %v1871_v10 = vmul.f32 0.5, %v1861_v11  ;;  %v6350_v30 = vld [vmem:[#allocation32_spill] sm:$0xff] }
 0x79f   :  { %v4464_v45 = vpop.eup %4463  ;;  %v1268_v11 = vadd.f32 %v6350_v30, %v5538_v43 }
 0x7a0   :  { %v4466_v56 = vpop.eup %4465  ;;  %v1864_v4 = vmul.f32 0.5, %v4464_v45  ;;  %4469 = vtanh.f32 %v1871_v10 }
 0x7a1   :  { %v1868_v42 = vmul.f32 0.5, %v4466_v56 }
 0x7a2   :  { %v1865_v29 = vadd.f32 0.5, %v1864_v4 }
 0x7a3   :  { %v1869_v35 = vadd.f32 0.5, %v1868_v42  ;;  %v1843_v7 = vpop.f32.mrf.mxu2  ;;  %v1856_v33 = vpop.f32.mrf.mxu3  ;;  %v6351_v42 = vld [vmem:[#allocation33_spill] sm:$0xff] }
 0x7a4   :  { %v4468_v55 = vpop.eup %4467 }
 0x7a5   :  { %v1875_v8 = vmul.f32 %v1869_v35, %v5648_v27  ;;  %v1876_v3 = vmul.f32 %v4468_v55, %v1865_v29  ;;  %v6349_v27 = vld [vmem:[#allocation31_spill] sm:$0xff]  ;;  %v1297_v29 = vadd.f32 %v6351_v42, %v5546_v23  ;;  %v6352_v35 = vld [vmem:[#allocation34_spill] sm:$0xff] }
 0x7a6   :  { %v4470_v28 = vpop.eup %4469  ;;  %v1239_v19 = vadd.f32 %v6349_v27, %v5536_v47  ;;  %v1326_v7 = vadd.f32 %v6352_v35, %v5548_v2 }
 0x7a7   :  { %v5696_v14 = vadd.f32 %v1876_v3, %v1875_v8  ;;  %v1873_v52 = vmul.f32 0.5, %v4470_v28 }
 0x7a9   :  { %4471 = vtanh.f32 %v5696_v14  ;;  %v1874_v54 = vadd.f32 0.5, %v1873_v52 }
 0x7af   :  { %v4472_v59 = vpop.eup %4471 }
 0x7b0   :  { %v5699_v31 = vmul.f32 %v4472_v59, %v1874_v54 }
 0x7b2   :  { %v1886_v21 = vpack.c.bf16 %v5699_v31, %v5699_v31 }
 0x7b4   :  { %1895 = vmatmul.bf16.vlgmr.msrb.gmra.mxu0 %v1886_v21  ;;  %1908 = vmatmul.bf16.vlgmr.msrb.gmra.mxu1 %v1886_v21 }
 0x7b5   :  { %1921 = vmatmul.bf16.vlgmr.msrb.gmra.mxu2 %v1886_v21  ;;  %1934 = vmatmul.bf16.vlgmr.msrb.gmra.mxu3 %v1886_v21 }
 0x7b6   :  { %2049 = vmatpush.bf16.msrb.mxu0 %v5314_v48  ;;  %2062 = vmatpush.bf16.msrb.mxu1 %v5316_v12 }
 0x7b7   :  { %2075 = vmatpush.bf16.msrb.mxu2 %v5318_v16  ;;  %2088 = vmatpush.bf16.msrb.mxu3 %v5321_v51 }
 0x7ba   :  { %2050 = vmatpush.bf16.msrb.mxu0 %v5325_v34  ;;  %2063 = vmatpush.bf16.msrb.mxu1 %v5327_v38 }
 0x7bb   :  { %2076 = vmatpush.bf16.msrb.mxu2 %v5330_v50  ;;  %2089 = vmatpush.bf16.msrb.mxu3 %v5332_v62 }
 0x7be   :  { %2051 = vmatpush.bf16.msrb.mxu0 %v5335_v15  ;;  %2064 = vmatpush.bf16.msrb.mxu1 %v5339_v24 }
 0x7bf   :  { %2077 = vmatpush.bf16.msrb.mxu2 %v5341_v26  ;;  %2090 = vmatpush.bf16.msrb.mxu3 %v5351_v13 }
 0x7c2   :  { %2052 = vmatpush.bf16.msrb.mxu0 %v5354_v20  ;;  %2065 = vmatpush.bf16.msrb.mxu1 %v5356_v49 }
 0x7c3   :  { %2078 = vmatpush.bf16.msrb.mxu2 %v5358_v0  ;;  %2091 = vmatpush.bf16.msrb.mxu3 %v5361_v53 }
 0x7c6   :  { %2053 = vmatpush.bf16.msrb.mxu0 %v5365_v22  ;;  %2066 = vmatpush.bf16.msrb.mxu1 %v5367_v63 }
 0x7c7   :  { %2079 = vmatpush.bf16.msrb.mxu2 %v5370_v32  ;;  %2092 = vmatpush.bf16.msrb.mxu3 %v5372_v17 }
 0x7ca   :  { %2054 = vmatpush.bf16.msrb.mxu0 %v5375_v44  ;;  %2067 = vmatpush.bf16.msrb.mxu1 %v5379_v57 }
 0x7cb   :  { %2080 = vmatpush.bf16.msrb.mxu2 %v5381_v58  ;;  %2093 = vmatpush.bf16.msrb.mxu3 %v5384_v40 }
 0x7ce   :  { %2055 = vmatpush.bf16.msrb.mxu0 %v5387_v61  ;;  %2068 = vmatpush.bf16.msrb.mxu1 %v5391_v37 }
 0x7cf   :  { %2081 = vmatpush.bf16.msrb.mxu2 %v5393_v39  ;;  %2094 = vmatpush.bf16.msrb.mxu3 %v5396_v6 }
 0x7d2   :  { %2056 = vmatpush.bf16.msrb.mxu0 %v5399_v36  ;;  %2069 = vmatpush.bf16.msrb.mxu1 %v5403_v25 }
 0x7d3   :  { %2082 = vmatpush.bf16.msrb.mxu2 %v5405_v60  ;;  %2095 = vmatpush.bf16.msrb.mxu3 %v5408_v46 }
 0x831   :  { %v1896_v18 = vpop.f32.mrf.mxu0  ;;  %v1909_v41 = vpop.f32.mrf.mxu1 }
 0x832   :  { %v1939_v10 = vadd.f32 %v1896_v18, %v1239_v19  ;;  %v1940_v45 = vadd.f32 %v1909_v41, %v1268_v11 }
 0x834   :  { %v1943_v56 = vmul.f32 0.5, %v1939_v10  ;;  %v1947_v4 = vmul.f32 0.5, %v1940_v45 }
 0x836   :  { %4473 = vtanh.f32 %v1943_v56 }
 0x837   :  { %4475 = vtanh.f32 %v1947_v4 }
 0x838   :  { %v1922_v33 = vpop.f32.mrf.mxu2  ;;  %v1935_v55 = vpop.f32.mrf.mxu3 }
 0x839   :  { %v1941_v8 = vadd.f32 %v1922_v33, %v1297_v29  ;;  %v1942_v3 = vadd.f32 %v1935_v55, %v1326_v7  ;;  %v1898_v28 = vpop.f32.mrf.mxu0  ;;  %v1911_v52 = vpop.f32.mrf.mxu1 }
 0x83b   :  { %4477 = vtanh.f32 %v1941_v8  ;;  %v1952_v54 = vmul.f32 0.5, %v1942_v3 }
 0x83c   :  { %v4474_v59 = vpop.eup %4473 }
 0x83d   :  { %v4476_v21 = vpop.eup %4475  ;;  %v1945_v27 = vmul.f32 0.5, %v4474_v59  ;;  %4479 = vtanh.f32 %v1952_v54 }
 0x83e   :  { %v1949_v19 = vmul.f32 0.5, %v4476_v21  ;;  %v3994_v21 = vld [vmem:[#allocation13 + $0xe0] sm:$0xf] }
 0x83f   :  { %v1946_v30 = vadd.f32 0.5, %v1945_v27  ;;  %v4294_v27 = vld [vmem:[#allocation13 + $0xec] sm:$0xf0] }
 0x840   :  { %v1950_v11 = vadd.f32 0.5, %v1949_v19  ;;  %v1924_v18 = vpop.f32.mrf.mxu2  ;;  %v1937_v41 = vpop.f32.mrf.mxu3  ;;  %v4292_v19 = vld [vmem:[#allocation13 + $0xe4] sm:$0xf] }
 0x841   :  { %v4478_v10 = vpop.eup %4477  ;;  %v4002_v18 = vld [vmem:[#allocation13 + $0xe8] sm:$0xf]  ;;  %v4295_v41 = vld [vmem:[#allocation13 + $0xf4] sm:$0xf0] }
 0x842   :  { %v1956_v45 = vmul.f32 %v1950_v11, %v5696_v14  ;;  %v1957_v56 = vmul.f32 %v4478_v10, %v1946_v30  ;;  %v3995_v30 = vor.u32 %v4294_v27, %v3994_v21  ;;  %v3996_v11 = vld [vmem:[#allocation13 + $0xf0] sm:$0xf0]  ;;  %v4278_v21 = vld [vmem:[#allocation13 + $0x6c] sm:$0xf0]  ;;  %v4276_v27 = vld [vmem:[#allocation13 + $0x64] sm:$0xf] }
 0x843   :  { %v4480_v4 = vpop.eup %4479  ;;  %v3999_v10 = vor.u32 %v4292_v19, %v3996_v11 }
 0x844   :  { %v5744_v42 = vadd.f32 %v1957_v56, %v1956_v45  ;;  %v1954_v29 = vmul.f32 0.5, %v4480_v4  ;;  %v4003_v45 = vor.u32 %v4295_v41, %v4002_v18  ;;  %v4293_v56 = vld [vmem:[#allocation13 + $0xec] sm:$0xf]  ;;  %v4004_v4 = vld [vmem:[#allocation13 + $0xf8] sm:$0xf0] }
 0x845   :  { %v3932_v18 = vld [vmem:[#allocation13 + $0x70] sm:$0xf0]  ;;  %v3938_v41 = vld [vmem:[#allocation13 + $0x68] sm:$0xf] }
 0x846   :  { %4481 = vtanh.f32 %v5744_v42  ;;  %v1955_v35 = vadd.f32 0.5, %v1954_v29  ;;  %v3978_v29 = vld [vmem:[#allocation13 + $0xc0] sm:$0xf] }
 0x84c   :  { %v4482_v7 = vpop.eup %4481 }
 0x84d   :  { %v5747_v33 = vmul.f32 %v4482_v7, %v1955_v35  ;;  %v4290_v35 = vld [vmem:[#allocation13 + $0xcc] sm:$0xf0]  ;;  %v4288_v7 = vld [vmem:[#allocation13 + $0xc4] sm:$0xf] }
 0x84f   :  { %v1967_v55 = vpack.c.bf16 %v5747_v33, %v5747_v33 }
 0x851   :  { %1976 = vmatmul.bf16.vlgmr.msra.gmra.mxu0 %v1967_v55  ;;  %1989 = vmatmul.bf16.vlgmr.msra.gmra.mxu1 %v1967_v55 }
 0x852   :  { %2002 = vmatmul.bf16.vlgmr.msra.gmra.mxu2 %v1967_v55  ;;  %2015 = vmatmul.bf16.vlgmr.msra.gmra.mxu3 %v1967_v55  ;;  %v3979_v55 = vor.u32 %v4290_v35, %v3978_v29  ;;  %v4277_v29 = vld [vmem:[#allocation13 + $0x6c] sm:$0xf]  ;;  %v3940_v35 = vld [vmem:[#allocation13 + $0x78] sm:$0xf0] }
 0x853   :  { %2130 = vmatpush.bf16.msra.mxu0 %v5314_v48  ;;  %2143 = vmatpush.bf16.msra.mxu1 %v5316_v12  ;;  %v6353_v48 = vld [vmem:[#allocation35_spill] sm:$0xff] }
 0x854   :  { %2156 = vmatpush.bf16.msra.mxu2 %v5318_v16  ;;  %2169 = vmatpush.bf16.msra.mxu3 %v5321_v51  ;;  %v1241_v12 = vadd.f32 %v6353_v48, %v5536_v47  ;;  %v6354_v16 = vld [vmem:[#allocation36_spill] sm:$0xff]  ;;  %v3980_v48 = vld [vmem:[#allocation13 + $0xd0] sm:$0xf0] }
 0x855   :  { %v1270_v51 = vadd.f32 %v6354_v16, %v5538_v43  ;;  %v4291_v16 = vld [vmem:[#allocation13 + $0xd4] sm:$0xf0] }
 0x857   :  { %2131 = vmatpush.bf16.msra.mxu0 %v5325_v34  ;;  %2144 = vmatpush.bf16.msra.mxu1 %v5327_v38 }
 0x858   :  { %2157 = vmatpush.bf16.msra.mxu2 %v5330_v50  ;;  %2170 = vmatpush.bf16.msra.mxu3 %v5332_v62 }
 0x85b   :  { %2132 = vmatpush.bf16.msra.mxu0 %v5335_v15  ;;  %2145 = vmatpush.bf16.msra.mxu1 %v5339_v24 }
 0x85c   :  { %2158 = vmatpush.bf16.msra.mxu2 %v5341_v26  ;;  %2171 = vmatpush.bf16.msra.mxu3 %v5351_v13  ;;  %v6355_v26 = vld [vmem:[#allocation37_spill] sm:$0xff] }
 0x85d   :  { %v1299_v13 = vadd.f32 %v6355_v26, %v5546_v23  ;;  %v4284_v26 = vld [vmem:[#allocation13 + $0xa4] sm:$0xf] }
 0x85f   :  { %2133 = vmatpush.bf16.msra.mxu0 %v5354_v20  ;;  %2146 = vmatpush.bf16.msra.mxu1 %v5356_v49  ;;  %v6356_v20 = vld [vmem:[#allocation38_spill] sm:$0xff] }
 0x860   :  { %2159 = vmatpush.bf16.msra.mxu2 %v5358_v0  ;;  %2172 = vmatpush.bf16.msra.mxu3 %v5361_v53  ;;  %v1328_v49 = vadd.f32 %v6356_v20, %v5548_v2  ;;  %v3964_v20 = vld [vmem:[#allocation13 + $0xb0] sm:$0xf0] }
 0x863   :  { %2134 = vmatpush.bf16.msra.mxu0 %v5365_v22  ;;  %2147 = vmatpush.bf16.msra.mxu1 %v5367_v63 }
 0x864   :  { %2160 = vmatpush.bf16.msra.mxu2 %v5370_v32  ;;  %2173 = vmatpush.bf16.msra.mxu3 %v5372_v17 }
 0x867   :  { %2135 = vmatpush.bf16.msra.mxu0 %v5375_v44  ;;  %2148 = vmatpush.bf16.msra.mxu1 %v5379_v57 }
 0x868   :  { %2161 = vmatpush.bf16.msra.mxu2 %v5381_v58  ;;  %2174 = vmatpush.bf16.msra.mxu3 %v5384_v40 }
 0x86b   :  { %2136 = vmatpush.bf16.msra.mxu0 %v5387_v61  ;;  %2149 = vmatpush.bf16.msra.mxu1 %v5391_v37 }
 0x86c   :  { %2162 = vmatpush.bf16.msra.mxu2 %v5393_v39  ;;  %2175 = vmatpush.bf16.msra.mxu3 %v5396_v6 }
 0x86f   :  { %2137 = vmatpush.bf16.msra.mxu0 %v5399_v36  ;;  %2150 = vmatpush.bf16.msra.mxu1 %v5403_v25 }
 0x870   :  { %2163 = vmatpush.bf16.msra.mxu2 %v5405_v60  ;;  %2176 = vmatpush.bf16.msra.mxu3 %v5408_v46 }
 0x8ce   :  { %v1977_v34 = vpop.f32.mrf.mxu0  ;;  %v1990_v38 = vpop.f32.mrf.mxu1 }
 0x8cf   :  { %v2020_v50 = vadd.f32 %v1977_v34, %v1241_v12  ;;  %v2021_v62 = vadd.f32 %v1990_v38, %v1270_v51  ;;  %v3986_v12 = vld [vmem:[#allocation13 + $0xc8] sm:$0xf]  ;;  %v3983_v51 = vor.u32 %v4288_v7, %v3980_v48  ;;  %v4289_v38 = vld [vmem:[#allocation13 + $0xcc] sm:$0xf]  ;;  %v3914_v7 = vld [vmem:[#allocation13 + $0x40] sm:$0xf] }
 0x8d0   :  { %v3987_v34 = vor.u32 %v4291_v16, %v3986_v12  ;;  %v4274_v48 = vld [vmem:[#allocation13 + $0x4c] sm:$0xf0]  ;;  %v4272_v12 = vld [vmem:[#allocation13 + $0x44] sm:$0xf]  ;;  %v3916_v16 = vld [vmem:[#allocation13 + $0x50] sm:$0xf0] }
 0x8d1   :  { %v2024_v15 = vmul.f32 0.5, %v2020_v50  ;;  %v2028_v24 = vmul.f32 0.5, %v2021_v62  ;;  %v3988_v50 = vld [vmem:[#allocation13 + $0xd8] sm:$0xf0] }
 0x8d2   :  { %v3991_v62 = vor.u32 %v4289_v38, %v3988_v50  ;;  %v3915_v38 = vor.u32 %v4274_v48, %v3914_v7  ;;  %v3919_v50 = vor.u32 %v4272_v12, %v3916_v16 }
 0x8d3   :  { %4483 = vtanh.f32 %v2024_v15  ;;  %v3962_v15 = vld [vmem:[#allocation13 + $0xa0] sm:$0xf] }
 0x8d4   :  { %4485 = vtanh.f32 %v2028_v24  ;;  %v4286_v24 = vld [vmem:[#allocation13 + $0xac] sm:$0xf0] }
 0x8d5   :  { %v2003_v0 = vpop.f32.mrf.mxu2  ;;  %v2016_v53 = vpop.f32.mrf.mxu3 }
 0x8d6   :  { %v2022_v22 = vadd.f32 %v2003_v0, %v1299_v13  ;;  %v2023_v63 = vadd.f32 %v2016_v53, %v1328_v49  ;;  %v1979_v32 = vpop.f32.mrf.mxu0  ;;  %v1992_v17 = vpop.f32.mrf.mxu1  ;;  %v3963_v13 = vor.u32 %v4286_v24, %v3962_v15  ;;  %v3970_v49 = vld [vmem:[#allocation13 + $0xa8] sm:$0xf]  ;;  %v4287_v0 = vld [vmem:[#allocation13 + $0xb4] sm:$0xf0]  ;;  %v3967_v53 = vor.u32 %v4284_v26, %v3964_v20  ;;  %v4273_v26 = vld [vmem:[#allocation13 + $0x4c] sm:$0xf] }
 0x8d7   :  { %v3972_v32 = vld [vmem:[#allocation13 + $0xb8] sm:$0xf0]  ;;  %v4275_v15 = vld [vmem:[#allocation13 + $0x54] sm:$0xf0]  ;;  %v3898_v20 = vld [vmem:[#allocation13 + $0x20] sm:$0xf] }
 0x8d8   :  { %4487 = vtanh.f32 %v2022_v22  ;;  %v2033_v44 = vmul.f32 0.5, %v2023_v63  ;;  %v3971_v22 = vor.u32 %v4287_v0, %v3970_v49  ;;  %v4285_v63 = vld [vmem:[#allocation13 + $0xac] sm:$0xf]  ;;  %v4270_v0 = vld [vmem:[#allocation13 + $0x2c] sm:$0xf0] }
 0x8d9   :  { %v4484_v57 = vpop.eup %4483  ;;  %v3975_v17 = vor.u32 %v4285_v63, %v3972_v32  ;;  %v6359_v63 = vld [vmem:[#allocation41_spill] sm:$0xff] }
 0x8da   :  { %v4486_v58 = vpop.eup %4485  ;;  %v2026_v40 = vmul.f32 0.5, %v4484_v57  ;;  %4489 = vtanh.f32 %v2033_v44  ;;  %v3946_v44 = vld [vmem:[#allocation13 + $0x80] sm:$0xf]  ;;  %v4282_v57 = vld [vmem:[#allocation13 + $0x8c] sm:$0xf0]  ;;  %v1302_v32 = vadd.f32 %v6359_v63, %v5546_v23 }
 0x8db   :  { %v2030_v61 = vmul.f32 0.5, %v4486_v58  ;;  %v4280_v58 = vld [vmem:[#allocation13 + $0x84] sm:$0xf]  ;;  %v4124_v63 = vld [vmem:[#allocation15 + $0xf0] sm:$0xf0] }
 0x8dc   :  { %v2027_v37 = vadd.f32 0.5, %v2026_v40  ;;  %v3947_v40 = vor.u32 %v4282_v57, %v3946_v44  ;;  %v3899_v57 = vor.u32 %v4270_v0, %v3898_v20  ;;  %v4326_v0 = vld [vmem:[#allocation15 + $0xec] sm:$0xf0] }
 0x8dd   :  { %v2031_v39 = vadd.f32 0.5, %v2030_v61  ;;  %v2005_v6 = vpop.f32.mrf.mxu2  ;;  %v2018_v36 = vpop.f32.mrf.mxu3  ;;  %v3948_v61 = vld [vmem:[#allocation13 + $0x90] sm:$0xf0] }
 0x8de   :  { %v4488_v25 = vpop.eup %4487  ;;  %v3951_v6 = vor.u32 %v4280_v58, %v3948_v61  ;;  %v3906_v58 = vld [vmem:[#allocation13 + $0x28] sm:$0xf]  ;;  %v4269_v61 = vld [vmem:[#allocation13 + $0x2c] sm:$0xf] }
 0x8df   :  { %v2037_v60 = vmul.f32 %v2031_v39, %v5744_v42  ;;  %v2038_v46 = vmul.f32 %v4488_v25, %v2027_v37  ;;  %v4007_v42 = vor.u32 %v4293_v56, %v4004_v4  ;;  %v3954_v37 = vld [vmem:[#allocation13 + $0x88] sm:$0xf]  ;;  %v4283_v39 = vld [vmem:[#allocation13 + $0x94] sm:$0xf0]  ;;  %v4281_v25 = vld [vmem:[#allocation13 + $0x8c] sm:$0xf]  ;;  %v3935_v4 = vor.u32 %v4276_v27, %v3932_v18 }
 0x8e0   :  { %v4490_v14 = vpop.eup %4489  ;;  %v3955_v36 = vor.u32 %v4283_v39, %v3954_v37  ;;  %v3884_v27 = vld [vmem:[#allocation13 + $0x10] sm:$0xf0]  ;;  %v3892_v18 = vld [vmem:[#allocation13 + $0x18] sm:$0xf0] }
 0x8e1   :  { %v5792_v8 = vadd.f32 %v2038_v46, %v2037_v60  ;;  %v2035_v3 = vmul.f32 0.5, %v4490_v14  ;;  %v3956_v60 = vld [vmem:[#allocation13 + $0x98] sm:$0xf0] }
 0x8e2   :  { %v3959_v46 = vor.u32 %v4281_v25, %v3956_v60  ;;  %v6357_v14 = vld [vmem:[#allocation39_spill] sm:$0xff]  ;;  %v3882_v60 = vld [vmem:[#allocation13] sm:$0xf] }
 0x8e3   :  { %4491 = vtanh.f32 %v5792_v8  ;;  %v2036_v28 = vadd.f32 0.5, %v2035_v3  ;;  %v1244_v3 = vadd.f32 %v6357_v14, %v5536_v47  ;;  %v3908_v25 = vld [vmem:[#allocation13 + $0x38] sm:$0xf0] }
 0x8e9   :  { %v4492_v52 = vpop.eup %4491 }
 0x8ea   :  { %v5795_v54 = vmul.f32 %v4492_v52, %v2036_v28  ;;  %v6358_v28 = vld [vmem:[#allocation40_spill] sm:$0xff] }
 0x8eb   :  { %v1273_v52 = vadd.f32 %v6358_v28, %v5538_v43 }
 0x8ec   :  { %v2048_v59 = vpack.c.bf16 %v5795_v54, %v5795_v54 }
 0x8ee   :  { %2057 = vmatmul.bf16.vlgmr.msrb.gmra.mxu0 %v2048_v59  ;;  %2070 = vmatmul.bf16.vlgmr.msrb.gmra.mxu1 %v2048_v59 }
 0x8ef   :  { %2083 = vmatmul.bf16.vlgmr.msrb.gmra.mxu2 %v2048_v59  ;;  %2096 = vmatmul.bf16.vlgmr.msrb.gmra.mxu3 %v2048_v59  ;;  %v3930_v59 = vld [vmem:[#allocation13 + $0x60] sm:$0xf] }
 0x8f0   :  { %2419 = vmatpush.bf16.msrb.mxu0 %v3995_v30  ;;  %2448 = vmatpush.bf16.msrb.mxu1 %v3999_v10  ;;  %v3931_v11 = vor.u32 %v4278_v21, %v3930_v59  ;;  %v4279_v10 = vld [vmem:[#allocation13 + $0x74] sm:$0xf0]  ;;  %v3911_v59 = vor.u32 %v4269_v61, %v3908_v25  ;;  %v4264_v21 = vld [vmem:[#allocation13 + $0x4] sm:$0xf]  ;;  %v4106_v61 = vld [vmem:[#allocation15 + $0xc0] sm:$0xf] }
 0x8f1   :  { %2477 = vmatpush.bf16.msrb.mxu2 %v4003_v45  ;;  %2506 = vmatpush.bf16.msrb.mxu3 %v4007_v42  ;;  %v3939_v42 = vor.u32 %v4279_v10, %v3938_v41  ;;  %v4114_v25 = vld [vmem:[#allocation15 + $0xc8] sm:$0xf] }
 0x8f4   :  { %2420 = vmatpush.bf16.msrb.mxu0 %v3979_v55  ;;  %2449 = vmatpush.bf16.msrb.mxu1 %v3983_v51  ;;  %v3943_v55 = vor.u32 %v4277_v29, %v3940_v35 }
 0x8f5   :  { %2478 = vmatpush.bf16.msrb.mxu2 %v3987_v34  ;;  %2507 = vmatpush.bf16.msrb.mxu3 %v3991_v62  ;;  %v3922_v62 = vld [vmem:[#allocation13 + $0x48] sm:$0xf] }
 0x8f6   :  { %v3923_v24 = vor.u32 %v4275_v15, %v3922_v62 }
 0x8f8   :  { %2421 = vmatpush.bf16.msrb.mxu0 %v3963_v13  ;;  %2450 = vmatpush.bf16.msrb.mxu1 %v3967_v53  ;;  %v3924_v13 = vld [vmem:[#allocation13 + $0x58] sm:$0xf0]  ;;  %v4268_v53 = vld [vmem:[#allocation13 + $0x24] sm:$0xf] }
 0x8f9   :  { %2479 = vmatpush.bf16.msrb.mxu2 %v3971_v22  ;;  %2508 = vmatpush.bf16.msrb.mxu3 %v3975_v17  ;;  %v3927_v49 = vor.u32 %v4273_v26, %v3924_v13  ;;  %v3900_v22 = vld [vmem:[#allocation13 + $0x30] sm:$0xf0] }
 0x8fa   :  { %v6360_v17 = vld [vmem:[#allocation42_spill] sm:$0xff] }
 0x8fb   :  { %v1331_v44 = vadd.f32 %v6360_v17, %v5548_v2  ;;  %v4327_v17 = vld [vmem:[#allocation15 + $0xf4] sm:$0xf0] }
 0x8fc   :  { %2422 = vmatpush.bf16.msrb.mxu0 %v3947_v40  ;;  %2451 = vmatpush.bf16.msrb.mxu1 %v3951_v6  ;;  %v4271_v40 = vld [vmem:[#allocation13 + $0x34] sm:$0xf0]  ;;  %v3903_v6 = vor.u32 %v4268_v53, %v3900_v22  ;;  %v4324_v53 = vld [vmem:[#allocation15 + $0xe4] sm:$0xf] }
 0x8fd   :  { %2480 = vmatpush.bf16.msrb.mxu2 %v3955_v36  ;;  %2509 = vmatpush.bf16.msrb.mxu3 %v3959_v46  ;;  %v3907_v36 = vor.u32 %v4271_v40, %v3906_v58  ;;  %v4266_v46 = vld [vmem:[#allocation13 + $0xc] sm:$0xf0]  ;;  %v4325_v58 = vld [vmem:[#allocation15 + $0xec] sm:$0xf]  ;;  %v4132_v40 = vld [vmem:[#allocation15 + $0xf8] sm:$0xf0] }
 0x8fe   :  { %v3883_v10 = vor.u32 %v4266_v46, %v3882_v60  ;;  %v4323_v60 = vld [vmem:[#allocation15 + $0xd4] sm:$0xf0]  ;;  %v4321_v46 = vld [vmem:[#allocation15 + $0xcc] sm:$0xf] }
 0x900   :  { %2423 = vmatpush.bf16.msrb.mxu0 %v3931_v11  ;;  %2452 = vmatpush.bf16.msrb.mxu1 %v3935_v4  ;;  %v4265_v11 = vld [vmem:[#allocation13 + $0xc] sm:$0xf] }
 0x901   :  { %2481 = vmatpush.bf16.msrb.mxu2 %v3939_v42  ;;  %2510 = vmatpush.bf16.msrb.mxu3 %v3943_v55  ;;  %v3895_v35 = vor.u32 %v4265_v11, %v3892_v18  ;;  %v4319_v11 = vld [vmem:[#allocation15 + $0xb4] sm:$0xf0] }
 0x904   :  { %2424 = vmatpush.bf16.msrb.mxu0 %v3915_v38  ;;  %2453 = vmatpush.bf16.msrb.mxu1 %v3919_v50 }
 0x905   :  { %2482 = vmatpush.bf16.msrb.mxu2 %v3923_v24  ;;  %2511 = vmatpush.bf16.msrb.mxu3 %v3927_v49  ;;  %v4122_v49 = vld [vmem:[#allocation15 + $0xe0] sm:$0xf] }
 0x906   :  { %v5817_v22 = vor.u32 %v4326_v0, %v4122_v49  ;;  %v4309_v49 = vld [vmem:[#allocation15 + $0x6c] sm:$0xf]  ;;  %v6361_v0 = vld [vmem:[#allocation43_spill] sm:$0xff] }
 0x908   :  { %2425 = vmatpush.bf16.msrb.mxu0 %v3899_v57  ;;  %2454 = vmatpush.bf16.msrb.mxu1 %v3903_v6 }
 0x909   :  { %2483 = vmatpush.bf16.msrb.mxu2 %v3907_v36  ;;  %2512 = vmatpush.bf16.msrb.mxu3 %v3911_v59 }
 0x90c   :  { %2426 = vmatpush.bf16.msrb.mxu0 %v3883_v10  ;;  %v2214_v10 = vpack.c.bf16 %v5699_v31, %v5651_v5  ;;  %v4312_v5 = vld [vmem:[#allocation15 + $0x84] sm:$0xf] }
 0x90d   :  { %2513 = vmatpush.bf16.msrb.mxu3 %v3895_v35  ;;  %v4314_v35 = vld [vmem:[#allocation15 + $0x8c] sm:$0xf0] }
 0x96b   :  { %v2058_v19 = vpop.f32.mrf.mxu0  ;;  %v2071_v30 = vpop.f32.mrf.mxu1 }
 0x96c   :  { %v2101_v45 = vadd.f32 %v2058_v19, %v1244_v3  ;;  %v2102_v56 = vadd.f32 %v2071_v30, %v1273_v52  ;;  %v3890_v19 = vld [vmem:[#allocation13 + $0x8] sm:$0xf]  ;;  %v4267_v30 = vld [vmem:[#allocation13 + $0x14] sm:$0xf0] }
 0x96d   :  { %v3891_v4 = vor.u32 %v4267_v30, %v3890_v19  ;;  %v4098_v19 = vld [vmem:[#allocation15 + $0xa8] sm:$0xf] }
 0x96e   :  { %v2105_v51 = vmul.f32 0.5, %v2101_v45  ;;  %v2109_v34 = vmul.f32 0.5, %v2102_v56  ;;  %v3887_v56 = vor.u32 %v4264_v21, %v3884_v27  ;;  %v4316_v21 = vld [vmem:[#allocation15 + $0xa4] sm:$0xf]  ;;  %v4092_v27 = vld [vmem:[#allocation15 + $0xb0] sm:$0xf0] }
 0x96f   :  { %2484 = vmatpush.bf16.msrb.mxu2 %v3891_v4  ;;  %v5842_v18 = vor.u32 %v4316_v21, %v4092_v27  ;;  %v4100_v4 = vld [vmem:[#allocation15 + $0xb8] sm:$0xf0] }
 0x970   :  { %4493 = vtanh.f32 %v2105_v51  ;;  %2455 = vmatpush.bf16.msrb.mxu1 %v3887_v56  ;;  %v4317_v56 = vld [vmem:[#allocation15 + $0xac] sm:$0xf]  ;;  %v4052_v21 = vld [vmem:[#allocation15 + $0x58] sm:$0xf0] }
 0x971   :  { %4495 = vtanh.f32 %v2109_v34 }
 0x972   :  { %v2084_v37 = vpop.f32.mrf.mxu2  ;;  %v2097_v39 = vpop.f32.mrf.mxu3 }
 0x973   :  { %v2103_v14 = vadd.f32 %v2084_v37, %v1302_v32  ;;  %v2104_v3 = vadd.f32 %v2097_v39, %v1331_v44  ;;  %v2060_v28 = vpop.f32.mrf.mxu0  ;;  %v2073_v52 = vpop.f32.mrf.mxu1  ;;  %v4130_v32 = vld [vmem:[#allocation15 + $0xe8] sm:$0xf]  ;;  %v5819_v44 = vor.u32 %v4324_v53, %v4124_v63  ;;  %v4320_v37 = vld [vmem:[#allocation15 + $0xc4] sm:$0xf]  ;;  %v4108_v39 = vld [vmem:[#allocation15 + $0xd0] sm:$0xf0]  ;;  %v1246_v53 = vadd.f32 %v6361_v0, %v5536_v47 }
 0x974   :  { %v5821_v57 = vor.u32 %v4327_v17, %v4130_v32  ;;  %v5830_v36 = vor.u32 %v4320_v37, %v4108_v39  ;;  %v4090_v28 = vld [vmem:[#allocation15 + $0xa0] sm:$0xf]  ;;  %v4318_v52 = vld [vmem:[#allocation15 + $0xac] sm:$0xf0] }
 0x975   :  { %4497 = vtanh.f32 %v2103_v14  ;;  %v2114_v41 = vmul.f32 0.5, %v2104_v3  ;;  %v5833_v14 = vor.u32 %v4323_v60, %v4114_v25  ;;  %v4116_v3 = vld [vmem:[#allocation15 + $0xd8] sm:$0xf0]  ;;  %v5838_v30 = vor.u32 %v4318_v52, %v4090_v28  ;;  %v6362_v63 = vld [vmem:[#allocation44_spill] sm:$0xff]  ;;  %v4044_v60 = vld [vmem:[#allocation15 + $0x50] sm:$0xf0] }
 0x976   :  { %v4494_v45 = vpop.eup %4493  ;;  %v5835_v59 = vor.u32 %v4321_v46, %v4116_v3  ;;  %v1275_v32 = vadd.f32 %v6362_v63, %v5538_v43  ;;  %v4304_v25 = vld [vmem:[#allocation15 + $0x44] sm:$0xf]  ;;  %v4050_v46 = vld [vmem:[#allocation15 + $0x48] sm:$0xf]  ;;  %v4307_v43 = vld [vmem:[#allocation15 + $0x54] sm:$0xf0] }
 0x977   :  { %v4496_v42 = vpop.eup %4495  ;;  %v2107_v29 = vmul.f32 0.5, %v4494_v45  ;;  %4499 = vtanh.f32 %v2114_v41  ;;  %v5844_v41 = vor.u32 %v4319_v11, %v4098_v19  ;;  %v2215_v45 = vpack.c.bf16 %v5795_v54, %v5747_v33  ;;  %v4313_v54 = vld [vmem:[#allocation15 + $0x8c] sm:$0xf]  ;;  %v4026_v11 = vld [vmem:[#allocation15 + $0x20] sm:$0xf] }
 0x978   :  { %v2111_v7 = vmul.f32 0.5, %v4496_v42  ;;  %v5854_v42 = vor.u32 %v4317_v56, %v4100_v4  ;;  %v4305_v52 = vld [vmem:[#allocation15 + $0x4c] sm:$0xf]  ;;  %v5886_v27 = vor.u32 %v4304_v25, %v4044_v60  ;;  %v5888_v19 = vor.u32 %v4307_v43, %v4050_v46  ;;  %v4299_v25 = vld [vmem:[#allocation15 + $0x14] sm:$0xf0] }
 0x979   :  { %v2108_v55 = vadd.f32 0.5, %v2107_v29  ;;  %v4074_v29 = vld [vmem:[#allocation15 + $0x80] sm:$0xf]  ;;  %v4020_v43 = vld [vmem:[#allocation15 + $0x18] sm:$0xf0] }
 0x97a   :  { %v2112_v48 = vadd.f32 0.5, %v2111_v7  ;;  %v2086_v12 = vpop.f32.mrf.mxu2  ;;  %v2099_v16 = vpop.f32.mrf.mxu3  ;;  %v5857_v31 = vor.u32 %v4314_v35, %v4074_v29  ;;  %v4076_v7 = vld [vmem:[#allocation15 + $0x90] sm:$0xf0]  ;;  %v5891_v29 = vor.u32 %v4305_v52, %v4052_v21 }
 0x97b   :  { %v4498_v51 = vpop.eup %4497  ;;  %v5859_v12 = vor.u32 %v4312_v5, %v4076_v7  ;;  %v4084_v16 = vld [vmem:[#allocation15 + $0x98] sm:$0xf0]  ;;  %v4028_v35 = vld [vmem:[#allocation15 + $0x30] sm:$0xf0]  ;;  %v4034_v5 = vld [vmem:[#allocation15 + $0x28] sm:$0xf] }
 0x97c   :  { %v2118_v34 = vmul.f32 %v2112_v48, %v5792_v8  ;;  %v2119_v38 = vmul.f32 %v4498_v51, %v2108_v55  ;;  %v2213_v8 = vpack.c.bf16 %v5603_v1, %v5555_v9  ;;  %v5824_v9 = vor.u32 %v4325_v58, %v4132_v40  ;;  %v4322_v1 = vld [vmem:[#allocation15 + $0xcc] sm:$0xf0]  ;;  %v4082_v55 = vld [vmem:[#allocation15 + $0x88] sm:$0xf]  ;;  %v4315_v48 = vld [vmem:[#allocation15 + $0x94] sm:$0xf0] }
 0x97d   :  { %v4500_v50 = vpop.eup %4499  ;;  %v5828_v6 = vor.u32 %v4322_v1, %v4106_v61  ;;  %v5861_v33 = vor.u32 %v4315_v48, %v4082_v55  ;;  %v4058_v51 = vld [vmem:[#allocation15 + $0x60] sm:$0xf]  ;;  %v4068_v58 = vld [vmem:[#allocation15 + $0x78] sm:$0xf0]  ;;  %v4306_v61 = vld [vmem:[#allocation15 + $0x4c] sm:$0xf0] }
 0x97e   :  { %v5808_v62 = vadd.f32 %v2119_v38, %v2118_v34  ;;  %v2116_v15 = vmul.f32 0.5, %v4500_v50  ;;  %v5864_v34 = vor.u32 %v4313_v54, %v4084_v16  ;;  %v4310_v38 = vld [vmem:[#allocation15 + $0x6c] sm:$0xf0]  ;;  %v4308_v50 = vld [vmem:[#allocation15 + $0x64] sm:$0xf]  ;;  %v5879_v39 = vor.u32 %v4309_v49, %v4068_v58  ;;  %v6363_v54 = vld [vmem:[#allocation45_spill] sm:$0xff] }
 0x97f   :  { %v4042_v40 = vld [vmem:[#allocation15 + $0x40] sm:$0xf]  ;;  %v4303_v7 = vld [vmem:[#allocation15 + $0x34] sm:$0xf0]  ;;  %v4301_v55 = vld [vmem:[#allocation15 + $0x2c] sm:$0xf]  ;;  %v1304_v16 = vadd.f32 %v6363_v54, %v5546_v23 }
 0x980   :  { %4501 = vtanh.f32 %v5808_v62  ;;  %v2117_v24 = vadd.f32 0.5, %v2116_v15  ;;  %v4060_v15 = vld [vmem:[#allocation15 + $0x70] sm:$0xf0]  ;;  %v5882_v47 = vor.u32 %v4306_v61, %v4042_v40  ;;  %v4036_v48 = vld [vmem:[#allocation15 + $0x38] sm:$0xf0] }
 0x981   :  { %v5907_v23 = vor.u32 %v4301_v55, %v4036_v48  ;;  %v4298_v58 = vld [vmem:[#allocation15 + $0xc] sm:$0xf0]  ;;  %v4296_v40 = vld [vmem:[#allocation15 + $0x4] sm:$0xf] }
 0x986   :  { %v4502_v26 = vpop.eup %4501 }
 0x987   :  { %v5811_v13 = vmul.f32 %v4502_v26, %v2117_v24  ;;  %v5868_v24 = vor.u32 %v4310_v38, %v4058_v51  ;;  %v5870_v26 = vor.u32 %v4308_v50, %v4060_v15  ;;  %v6364_v38 = vld [vmem:[#allocation46_spill] sm:$0xff] }
 0x988   :  { %v1333_v50 = vadd.f32 %v6364_v38, %v5548_v2  ;;  %v4010_v2 = vld [vmem:[#allocation15] sm:$0xf] }
 0x989   :  { %v2129_v20 = vpack.c.bf16 %v5811_v13, %v5811_v13  ;;  %v5910_v61 = vor.u32 %v4298_v58, %v4010_v2 }
 0x98b   :  { %2138 = vmatmul.bf16.vlgmr.msra.gmra.mxu0 %v2129_v20  ;;  %2151 = vmatmul.bf16.vlgmr.msra.gmra.mxu1 %v2129_v20 }
 0x98c   :  { %2164 = vmatmul.bf16.vlgmr.msra.gmra.mxu2 %v2129_v20  ;;  %2177 = vmatmul.bf16.vlgmr.msra.gmra.mxu3 %v2129_v20  ;;  %v4066_v20 = vld [vmem:[#allocation15 + $0x68] sm:$0xf] }
 0x98d   :  { %2763 = vmatpush.bf16.msra.mxu0 %v5817_v22  ;;  %2776 = vmatpush.bf16.msra.mxu1 %v5819_v44 }
 0x98e   :  { %2789 = vmatpush.bf16.msra.mxu2 %v5821_v57  ;;  %2802 = vmatpush.bf16.msra.mxu3 %v5824_v9 }
 0x991   :  { %2764 = vmatpush.bf16.msra.mxu0 %v5828_v6  ;;  %2777 = vmatpush.bf16.msra.mxu1 %v5830_v36 }
 0x992   :  { %2790 = vmatpush.bf16.msra.mxu2 %v5833_v14  ;;  %2803 = vmatpush.bf16.msra.mxu3 %v5835_v59 }
 0x995   :  { %2765 = vmatpush.bf16.msra.mxu0 %v5838_v30  ;;  %2778 = vmatpush.bf16.msra.mxu1 %v5842_v18 }
 0x996   :  { %2791 = vmatpush.bf16.msra.mxu2 %v5844_v41  ;;  %2804 = vmatpush.bf16.msra.mxu3 %v5854_v42 }
 0x999   :  { %2766 = vmatpush.bf16.msra.mxu0 %v5857_v31  ;;  %2779 = vmatpush.bf16.msra.mxu1 %v5859_v12 }
 0x99a   :  { %2792 = vmatpush.bf16.msra.mxu2 %v5861_v33  ;;  %2805 = vmatpush.bf16.msra.mxu3 %v5864_v34 }
 0x99b   :  { %2427 = vmatmul.bf16.vlgmr.msrb.gmra.mxu0 %v2213_v8  ;;  %2456 = vmatmul.bf16.vlgmr.msrb.gmra.mxu1 %v2213_v8 }
 0x99c   :  { %2485 = vmatmul.bf16.vlgmr.msrb.gmra.mxu2 %v2213_v8  ;;  %2514 = vmatmul.bf16.vlgmr.msrb.gmra.mxu3 %v2213_v8  ;;  %v4311_v8 = vld [vmem:[#allocation15 + $0x74] sm:$0xf0] }
 0x99d   :  { %v5877_v17 = vor.u32 %v4311_v8, %v4066_v20  ;;  %2767 = vmatpush.bf16.msra.mxu0 %v5868_v24  ;;  %2780 = vmatpush.bf16.msra.mxu1 %v5870_v26  ;;  %v5904_v20 = vor.u32 %v4303_v7, %v4034_v5 }
 0x99e   :  { %2806 = vmatpush.bf16.msra.mxu3 %v5879_v39 }
 0x99f   :  { %2793 = vmatpush.bf16.msra.mxu2 %v5877_v17 }
 0x9a1   :  { %2768 = vmatpush.bf16.msra.mxu0 %v5882_v47  ;;  %2781 = vmatpush.bf16.msra.mxu1 %v5886_v27 }
 0x9a2   :  { %2807 = vmatpush.bf16.msra.mxu3 %v5891_v29 }
 0x9a3   :  { %2794 = vmatpush.bf16.msra.mxu2 %v5888_v19 }
 0x9a6   :  { %2808 = vmatpush.bf16.msra.mxu3 %v5907_v23 }
 0x9a7   :  { %2795 = vmatpush.bf16.msra.mxu2 %v5904_v20 }
 0x9ab   :  { %2432 = vmatmul.bf16.gmra.mxu0 %v2214_v10  ;;  %2461 = vmatmul.bf16.gmra.mxu1 %v2214_v10 }
 0x9ac   :  { %2490 = vmatmul.bf16.gmra.mxu2 %v2214_v10  ;;  %2519 = vmatmul.bf16.gmra.mxu3 %v2214_v10  ;;  %v4302_v10 = vld [vmem:[#allocation15 + $0x2c] sm:$0xf0] }
 0x9ad   :  { %v5896_v51 = vor.u32 %v4302_v10, %v4026_v11 }
 0x9af   :  { %2769 = vmatpush.bf16.msra.mxu0 %v5896_v51 }
 0x9b3   :  { %2770 = vmatpush.bf16.msra.mxu0 %v5910_v61 }
 0x9b7   :  { %2842 = vmatpush.bf16.msrb.mxu0 %v5817_v22 }
 0x9bb   :  { %2437 = vmatmul.bf16.gmra.mxu0 %v2215_v45  ;;  %2466 = vmatmul.bf16.gmra.mxu1 %v2215_v45 }
 0x9bc   :  { %2495 = vmatmul.bf16.gmra.mxu2 %v2215_v45  ;;  %2524 = vmatmul.bf16.gmra.mxu3 %v2215_v45  ;;  %v4300_v45 = vld [vmem:[#allocation15 + $0x24] sm:$0xf] }
 0x9bd   :  { %v5902_v15 = vor.u32 %v4300_v45, %v4028_v35  ;;  %2843 = vmatpush.bf16.msrb.mxu0 %v5828_v6 }
 0x9bf   :  { %2782 = vmatpush.bf16.msra.mxu1 %v5902_v15 }
 0x9c1   :  { %2844 = vmatpush.bf16.msrb.mxu0 %v5838_v30 }
 0x9c5   :  { %2845 = vmatpush.bf16.msrb.mxu0 %v5857_v31 }
 0x9c9   :  { %2846 = vmatpush.bf16.msrb.mxu0 %v5868_v24 }
 0x9cd   :  { %2847 = vmatpush.bf16.msrb.mxu0 %v5882_v47 }
 0x9d1   :  { %2848 = vmatpush.bf16.msrb.mxu0 %v5896_v51 }
 0x9d5   :  { %2849 = vmatpush.bf16.msrb.mxu0 %v5910_v61 }
 0xa08   :  { %v2139_v1 = vpop.f32.mrf.mxu0  ;;  %v2152_v37 = vpop.f32.mrf.mxu1 }
 0xa09   :  { %v2182_v3 = vadd.f32 %v2139_v1, %v1246_v53  ;;  %v2183_v28 = vadd.f32 %v2152_v37, %v1275_v32  ;;  %v4012_v1 = vld [vmem:[#allocation15 + $0x10] sm:$0xf0]  ;;  %v4018_v37 = vld [vmem:[#allocation15 + $0x8] sm:$0xf] }
 0xa0a   :  { %v5914_v46 = vor.u32 %v4296_v40, %v4012_v1 }
 0xa0b   :  { %v2186_v56 = vmul.f32 0.5, %v2182_v3  ;;  %v2190_v4 = vmul.f32 0.5, %v2183_v28  ;;  %v5916_v3 = vor.u32 %v4299_v25, %v4018_v37  ;;  %v4297_v28 = vld [vmem:[#allocation15 + $0xc] sm:$0xf] }
 0xa0c   :  { %v5919_v21 = vor.u32 %v4297_v28, %v4020_v43  ;;  %2783 = vmatpush.bf16.msra.mxu1 %v5914_v46 }
 0xa0d   :  { %4503 = vtanh.f32 %v2186_v56  ;;  %2796 = vmatpush.bf16.msra.mxu2 %v5916_v3 }
 0xa0e   :  { %4505 = vtanh.f32 %v2190_v4  ;;  %2809 = vmatpush.bf16.msra.mxu3 %v5919_v21 }
 0xa0f   :  { %v2165_v8 = vpop.f32.mrf.mxu2  ;;  %v2178_v49 = vpop.f32.mrf.mxu3 }
 0xa10   :  { %v2184_v0 = vadd.f32 %v2165_v8, %v1304_v16  ;;  %v2185_v53 = vadd.f32 %v2178_v49, %v1333_v50  ;;  %v2141_v63 = vpop.f32.mrf.mxu0  ;;  %v2154_v32 = vpop.f32.mrf.mxu1  ;;  %2855 = vmatpush.bf16.msrb.mxu1 %v5819_v44 }
 0xa11   :  { %2868 = vmatpush.bf16.msrb.mxu2 %v5821_v57 }
 0xa12   :  { %4507 = vtanh.f32 %v2184_v0  ;;  %v2195_v60 = vmul.f32 0.5, %v2185_v53  ;;  %2881 = vmatpush.bf16.msrb.mxu3 %v5824_v9 }
 0xa13   :  { %v4504_v52 = vpop.eup %4503 }
 0xa14   :  { %v4506_v11 = vpop.eup %4505  ;;  %v2188_v10 = vmul.f32 0.5, %v4504_v52  ;;  %4509 = vtanh.f32 %v2195_v60  ;;  %2856 = vmatpush.bf16.msrb.mxu1 %v5830_v36 }
 0xa15   :  { %v2192_v45 = vmul.f32 0.5, %v4506_v11  ;;  %2869 = vmatpush.bf16.msrb.mxu2 %v5833_v14 }
 0xa16   :  { %v2189_v56 = vadd.f32 0.5, %v2188_v10  ;;  %2882 = vmatpush.bf16.msrb.mxu3 %v5835_v59 }
 0xa17   :  { %v2193_v4 = vadd.f32 0.5, %v2192_v45  ;;  %v2167_v35 = vpop.f32.mrf.mxu2  ;;  %v2180_v5 = vpop.f32.mrf.mxu3 }
 0xa18   :  { %v4508_v7 = vpop.eup %4507  ;;  %2857 = vmatpush.bf16.msrb.mxu1 %v5842_v18  ;;  %v2428_v0 = vpop.f32.mrf.mxu0 }
 0xa19   :  { %v2199_v55 = vmul.f32 %v2193_v4, %v5808_v62  ;;  %v2200_v48 = vmul.f32 %v4508_v7, %v2189_v56  ;;  %2870 = vmatpush.bf16.msrb.mxu2 %v5844_v41  ;;  %v2457_v53 = vpop.f32.mrf.mxu1 }
 0xa1a   :  { %v4510_v54 = vpop.eup %4509  ;;  %2883 = vmatpush.bf16.msrb.mxu3 %v5854_v42 }
 0xa1b   :  { %v2201_v16 = vadd.f32 %v2200_v48, %v2199_v55  ;;  %v2197_v38 = vmul.f32 0.5, %v4510_v54 }
 0xa1c   :  { %2858 = vmatpush.bf16.msrb.mxu1 %v5859_v12 }
 0xa1d   :  { %4511 = vtanh.f32 %v2201_v16  ;;  %v2198_v62 = vadd.f32 0.5, %v2197_v38  ;;  %2871 = vmatpush.bf16.msrb.mxu2 %v5861_v33 }
 0xa1e   :  { %2884 = vmatpush.bf16.msrb.mxu3 %v5864_v34 }
 0xa1f   :  { %v2486_v63 = vpop.f32.mrf.mxu2  ;;  %v2515_v32 = vpop.f32.mrf.mxu3 }
 0xa20   :  { %2859 = vmatpush.bf16.msrb.mxu1 %v5870_v26  ;;  %v5995_v2 = vpop.f32.mrf.mxu0 }
 0xa21   :  { %2872 = vmatpush.bf16.msrb.mxu2 %v5877_v17  ;;  %v5997_v58 = vpop.f32.mrf.mxu1 }
 0xa22   :  { %2885 = vmatpush.bf16.msrb.mxu3 %v5879_v39 }
 0xa23   :  { %v4512_v50 = vpop.eup %4511 }
 0xa24   :  { %v2203_v8 = vmul.f32 %v4512_v50, %v2198_v62  ;;  %2860 = vmatpush.bf16.msrb.mxu1 %v5886_v27  ;;  %v2249_v50 = vld [vmem:[%s6315_s7] sm:$0xf] }
 0xa25   :  { %2873 = vmatpush.bf16.msrb.mxu2 %v5888_v19 }
 0xa26   :  { %v2216_v49 = vpack.c.bf16 %v2203_v8, %v5811_v13  ;;  %2886 = vmatpush.bf16.msrb.mxu3 %v5891_v29  ;;  %v6365_v13 = vmov 0  }
 0xa27   :  { %v5999_v40 = vpop.f32.mrf.mxu2  ;;  %v6001_v1 = vpop.f32.mrf.mxu3 }
 0xa28   :  { %2442 = vmatmul.bf16.gmra.mxu0 %v2216_v49  ;;  %2471 = vmatmul.bf16.gmra.mxu1 %v2216_v49  ;;  %v6003_v37 = vpop.f32.mrf.mxu0 }
 0xa29   :  { %2500 = vmatmul.bf16.gmra.mxu2 %v2216_v49  ;;  %2529 = vmatmul.bf16.gmra.mxu3 %v2216_v49  ;;  %v6005_v25 = vpop.f32.mrf.mxu1 }
 0xa2a   :  { %2861 = vmatpush.bf16.msrb.mxu1 %v5902_v15  ;;  %2874 = vmatpush.bf16.msrb.mxu2 %v5904_v20 }
 0xa2b   :  { %2887 = vmatpush.bf16.msrb.mxu3 %v5907_v23 }
 0xa2e   :  { %2862 = vmatpush.bf16.msrb.mxu1 %v5914_v46  ;;  %2875 = vmatpush.bf16.msrb.mxu2 %v5916_v3 }
 0xa2f   :  { %2888 = vmatpush.bf16.msrb.mxu3 %v5919_v21  ;;  %v6007_v60 = vpop.f32.mrf.mxu2  ;;  %v6009_v28 = vpop.f32.mrf.mxu3 }
 0xa30   :  { %6366 = vst [vmem:[#allocation25_spill] sm:$0xff] %v6007_v60  ;;  %v6011_v43 = vpop.f32.mrf.mxu0 }
 0xa31   :  { %6367 = vst [vmem:[#allocation26_spill] sm:$0xff] %v6009_v28  ;;  %v6013_v52 = vpop.f32.mrf.mxu1 }
 0xa32   :  { %6368 = vst [vmem:[#allocation27_spill] sm:$0xff] %v6011_v43 }
 0xa33   :  { %6369 = vst [vmem:[#allocation28_spill] sm:$0xff] %v6013_v52 }
 0xa37   :  { %v6015_v11 = vpop.f32.mrf.mxu2  ;;  %v6017_v10 = vpop.f32.mrf.mxu3 }
 0xa38   :  { %2771 = vmatmul.bf16.vlgmr.msra.gmra.mxu0 %v6365_v13  ;;  %2784 = vmatmul.bf16.vlgmr.msra.gmra.mxu1 %v6365_v13  ;;  %6370 = vst [vmem:[#allocation29_spill] sm:$0xff] %v6015_v11  ;;  %v6019_v45 = vpop.f32.mrf.mxu0 }
 0xa39   :  { %2797 = vmatmul.bf16.vlgmr.msra.gmra.mxu2 %v6365_v13  ;;  %2810 = vmatmul.bf16.vlgmr.msra.gmra.mxu3 %v6365_v13  ;;  %6371 = vst [vmem:[#allocation30_spill] sm:$0xff] %v6017_v10  ;;  %v6021_v56 = vpop.f32.mrf.mxu1  ;;  %v6050_v13 = vperm.slane %v2249_v50, 0 }
 0xa3a   :  { %2921 = vmatpush.bf16.msra.mxu0 %v5817_v22  ;;  %2934 = vmatpush.bf16.msra.mxu1 %v5819_v44  ;;  %6372 = vst [vmem:[#allocation31_spill] sm:$0xff] %v6019_v45 }
 0xa3b   :  { %2947 = vmatpush.bf16.msra.mxu2 %v5821_v57  ;;  %2960 = vmatpush.bf16.msra.mxu3 %v5824_v9  ;;  %6373 = vst [vmem:[#allocation32_spill] sm:$0xff] %v6021_v56 }
 0xa3e   :  { %2922 = vmatpush.bf16.msra.mxu0 %v5828_v6  ;;  %2935 = vmatpush.bf16.msra.mxu1 %v5830_v36 }
 0xa3f   :  { %2948 = vmatpush.bf16.msra.mxu2 %v5833_v14  ;;  %2961 = vmatpush.bf16.msra.mxu3 %v5835_v59  ;;  %v6023_v4 = vpop.f32.mrf.mxu2  ;;  %v6025_v35 = vpop.f32.mrf.mxu3 }
 0xa40   :  { %6374 = vst [vmem:[#allocation33_spill] sm:$0xff] %v6023_v4  ;;  %v6027_v5 = vpop.f32.mrf.mxu0  ;;  %v6060_v4 = vperm.slane %v2249_v50, 2 }
 0xa41   :  { %6375 = vst [vmem:[#allocation34_spill] sm:$0xff] %v6025_v35  ;;  %v6029_v7 = vpop.f32.mrf.mxu1 }
 0xa42   :  { %2923 = vmatpush.bf16.msra.mxu0 %v5838_v30  ;;  %2936 = vmatpush.bf16.msra.mxu1 %v5842_v18  ;;  %6376 = vst [vmem:[#allocation35_spill] sm:$0xff] %v6027_v5  ;;  %v2487_v45 = vadd.f32 %v2486_v63, %v6060_v4 }
 0xa43   :  { %2949 = vmatpush.bf16.msra.mxu2 %v5844_v41  ;;  %2962 = vmatpush.bf16.msra.mxu3 %v5854_v42  ;;  %6377 = vst [vmem:[#allocation36_spill] sm:$0xff] %v6029_v7 }
 0xa46   :  { %2924 = vmatpush.bf16.msra.mxu0 %v5857_v31  ;;  %2937 = vmatpush.bf16.msra.mxu1 %v5859_v12 }
 0xa47   :  { %2950 = vmatpush.bf16.msra.mxu2 %v5861_v33  ;;  %2963 = vmatpush.bf16.msra.mxu3 %v5864_v34  ;;  %v6031_v55 = vpop.f32.mrf.mxu2  ;;  %v6033_v48 = vpop.f32.mrf.mxu3 }
 0xa48   :  { %6378 = vst [vmem:[#allocation37_spill] sm:$0xff] %v6031_v55  ;;  %v6052_v55 = vperm.slane %v2249_v50, 1 }
 0xa49   :  { %6379 = vst [vmem:[#allocation38_spill] sm:$0xff] %v6033_v48 }
 0xa4a   :  { %2925 = vmatpush.bf16.msra.mxu0 %v5868_v24  ;;  %2938 = vmatpush.bf16.msra.mxu1 %v5870_v26 }
 0xa4b   :  { %2951 = vmatpush.bf16.msra.mxu2 %v5877_v17  ;;  %2964 = vmatpush.bf16.msra.mxu3 %v5879_v39 }
 0xa4e   :  { %2926 = vmatpush.bf16.msra.mxu0 %v5882_v47  ;;  %2939 = vmatpush.bf16.msra.mxu1 %v5886_v27 }
 0xa4f   :  { %2952 = vmatpush.bf16.msra.mxu2 %v5888_v19  ;;  %2965 = vmatpush.bf16.msra.mxu3 %v5891_v29 }
 0xa52   :  { %2927 = vmatpush.bf16.msra.mxu0 %v5896_v51  ;;  %2940 = vmatpush.bf16.msra.mxu1 %v5902_v15 }
 0xa53   :  { %2953 = vmatpush.bf16.msra.mxu2 %v5904_v20  ;;  %2966 = vmatpush.bf16.msra.mxu3 %v5907_v23 }
 0xa56   :  { %2928 = vmatpush.bf16.msra.mxu0 %v5910_v61  ;;  %2941 = vmatpush.bf16.msra.mxu1 %v5914_v46 }
 0xa57   :  { %2954 = vmatpush.bf16.msra.mxu2 %v5916_v3  ;;  %2967 = vmatpush.bf16.msra.mxu3 %v5919_v21 }
 0xaa5   :  { %v6035_v54 = vpop.f32.mrf.mxu0  ;;  %v6037_v16 = vpop.f32.mrf.mxu1 }
 0xaa6   :  { %6380 = vst [vmem:[#allocation39_spill] sm:$0xff] %v6035_v54  ;;  %v2429_v54 = vadd.f32 %v2428_v0, %v6050_v13 }
 0xaa7   :  { %6381 = vst [vmem:[#allocation40_spill] sm:$0xff] %v6037_v16  ;;  %v2458_v16 = vadd.f32 %v2457_v53, %v6052_v55 }
 0xaac   :  { %v6039_v38 = vpop.f32.mrf.mxu2  ;;  %v6041_v62 = vpop.f32.mrf.mxu3 }
 0xaad   :  { %6382 = vst [vmem:[#allocation41_spill] sm:$0xff] %v6039_v38  ;;  %v6046_v8 = vpop.f32.mrf.mxu0  ;;  %v6048_v49 = vpop.f32.mrf.mxu1 }
 0xaae   :  { %6383 = vst [vmem:[#allocation42_spill] sm:$0xff] %v6041_v62 }
 0xaaf   :  { %6384 = vst [vmem:[#allocation43_spill] sm:$0xff] %v6046_v8  ;;  %v6062_v8 = vperm.slane %v2249_v50, 3 }
 0xab0   :  { %6385 = vst [vmem:[#allocation44_spill] sm:$0xff] %v6048_v49 }
 0xab1   :  { %v2516_v0 = vadd.f32 %v2515_v32, %v6062_v8 }
 0xab4   :  { %v6056_v48 = vpop.f32.mrf.mxu2  ;;  %v6058_v38 = vpop.f32.mrf.mxu3 }
 0xab5   :  { %6386 = vst [vmem:[#allocation45_spill] sm:$0xff] %v6056_v48  ;;  %v2772_v62 = vpop.f32.mrf.mxu0  ;;  %v2785_v7 = vpop.f32.mrf.mxu1 }
 0xab6   :  { %6387 = vst [vmem:[#allocation46_spill] sm:$0xff] %v6058_v38  ;;  %v2815_v5 = vadd.f32 %v2772_v62, %v2429_v54  ;;  %v2816_v35 = vadd.f32 %v2785_v7, %v2458_v16 }
 0xab8   :  { %v2819_v49 = vmul.f32 0.5, %v2815_v5  ;;  %v2823_v56 = vmul.f32 0.5, %v2816_v35 }
 0xaba   :  { %4513 = vtanh.f32 %v2819_v49 }
 0xabb   :  { %4515 = vtanh.f32 %v2823_v56 }
 0xabc   :  { %v2798_v53 = vpop.f32.mrf.mxu2  ;;  %v2811_v48 = vpop.f32.mrf.mxu3 }
 0xabd   :  { %v2817_v10 = vadd.f32 %v2798_v53, %v2487_v45  ;;  %v2818_v38 = vadd.f32 %v2811_v48, %v2516_v0  ;;  %v2774_v11 = vpop.f32.mrf.mxu0  ;;  %v2787_v52 = vpop.f32.mrf.mxu1 }
 0xabf   :  { %4517 = vtanh.f32 %v2817_v10  ;;  %v2828_v7 = vmul.f32 0.5, %v2818_v38 }
 0xac0   :  { %v4514_v54 = vpop.eup %4513 }
 0xac1   :  { %v4516_v16 = vpop.eup %4515  ;;  %v2821_v62 = vmul.f32 0.5, %v4514_v54  ;;  %4519 = vtanh.f32 %v2828_v7 }
 0xac2   :  { %v2825_v50 = vmul.f32 0.5, %v4516_v16 }
 0xac3   :  { %v2822_v35 = vadd.f32 0.5, %v2821_v62  ;;  %v2489_v62 = vadd.f32 %v5999_v40, %v6060_v4 }
 0xac4   :  { %v2826_v5 = vadd.f32 0.5, %v2825_v50  ;;  %v2800_v49 = vpop.f32.mrf.mxu2  ;;  %v2813_v63 = vpop.f32.mrf.mxu3  ;;  %v2518_v50 = vadd.f32 %v6001_v1, %v6062_v8 }
 0xac5   :  { %v4518_v43 = vpop.eup %4517 }
 0xac6   :  { %v2832_v32 = vmul.f32 0.0, %v2826_v5  ;;  %v2833_v56 = vmul.f32 %v4518_v43, %v2822_v35  ;;  %v2460_v43 = vadd.f32 %v5997_v58, %v6052_v55 }
 0xac7   :  { %v4520_v28 = vpop.eup %4519 }
 0xac8   :  { %v6066_v60 = vadd.f32 %v2833_v56, %v2832_v32  ;;  %v2830_v52 = vmul.f32 0.5, %v4520_v28  ;;  %v2431_v28 = vadd.f32 %v5995_v2, %v6050_v13 }
 0xaca   :  { %4521 = vtanh.f32 %v6066_v60  ;;  %v2831_v11 = vadd.f32 0.5, %v2830_v52 }
 0xad0   :  { %v4522_v10 = vpop.eup %4521 }
 0xad1   :  { %v2836_v45 = vmul.f32 %v4522_v10, %v2831_v11 }
 0xad3   :  { %v2841_v48 = vpack.c.bf16 %v2836_v45, %v2836_v45 }
 0xad5   :  { %2850 = vmatmul.bf16.vlgmr.msrb.gmra.mxu0 %v2841_v48  ;;  %2863 = vmatmul.bf16.vlgmr.msrb.gmra.mxu1 %v2841_v48 }
 0xad6   :  { %2876 = vmatmul.bf16.vlgmr.msrb.gmra.mxu2 %v2841_v48  ;;  %2889 = vmatmul.bf16.vlgmr.msrb.gmra.mxu3 %v2841_v48 }
 0xad7   :  { %3000 = vmatpush.bf16.msrb.mxu0 %v5817_v22  ;;  %3013 = vmatpush.bf16.msrb.mxu1 %v5819_v44 }
 0xad8   :  { %3026 = vmatpush.bf16.msrb.mxu2 %v5821_v57  ;;  %3039 = vmatpush.bf16.msrb.mxu3 %v5824_v9 }
 0xadb   :  { %3001 = vmatpush.bf16.msrb.mxu0 %v5828_v6  ;;  %3014 = vmatpush.bf16.msrb.mxu1 %v5830_v36 }
 0xadc   :  { %3027 = vmatpush.bf16.msrb.mxu2 %v5833_v14  ;;  %3040 = vmatpush.bf16.msrb.mxu3 %v5835_v59 }
 0xadf   :  { %3002 = vmatpush.bf16.msrb.mxu0 %v5838_v30  ;;  %3015 = vmatpush.bf16.msrb.mxu1 %v5842_v18 }
 0xae0   :  { %3028 = vmatpush.bf16.msrb.mxu2 %v5844_v41  ;;  %3041 = vmatpush.bf16.msrb.mxu3 %v5854_v42 }
 0xae3   :  { %3003 = vmatpush.bf16.msrb.mxu0 %v5857_v31  ;;  %3016 = vmatpush.bf16.msrb.mxu1 %v5859_v12 }
 0xae4   :  { %3029 = vmatpush.bf16.msrb.mxu2 %v5861_v33  ;;  %3042 = vmatpush.bf16.msrb.mxu3 %v5864_v34 }
 0xae7   :  { %3004 = vmatpush.bf16.msrb.mxu0 %v5868_v24  ;;  %3017 = vmatpush.bf16.msrb.mxu1 %v5870_v26 }
 0xae8   :  { %3030 = vmatpush.bf16.msrb.mxu2 %v5877_v17  ;;  %3043 = vmatpush.bf16.msrb.mxu3 %v5879_v39 }
 0xaeb   :  { %3005 = vmatpush.bf16.msrb.mxu0 %v5882_v47  ;;  %3018 = vmatpush.bf16.msrb.mxu1 %v5886_v27 }
 0xaec   :  { %3031 = vmatpush.bf16.msrb.mxu2 %v5888_v19  ;;  %3044 = vmatpush.bf16.msrb.mxu3 %v5891_v29 }
 0xaef   :  { %3006 = vmatpush.bf16.msrb.mxu0 %v5896_v51  ;;  %3019 = vmatpush.bf16.msrb.mxu1 %v5902_v15 }
 0xaf0   :  { %3032 = vmatpush.bf16.msrb.mxu2 %v5904_v20  ;;  %3045 = vmatpush.bf16.msrb.mxu3 %v5907_v23 }
 0xaf3   :  { %3007 = vmatpush.bf16.msrb.mxu0 %v5910_v61  ;;  %3020 = vmatpush.bf16.msrb.mxu1 %v5914_v46 }
 0xaf4   :  { %3033 = vmatpush.bf16.msrb.mxu2 %v5916_v3  ;;  %3046 = vmatpush.bf16.msrb.mxu3 %v5919_v21 }
 0xb52   :  { %v2851_v38 = vpop.f32.mrf.mxu0  ;;  %v2864_v0 = vpop.f32.mrf.mxu1 }
 0xb53   :  { %v2894_v53 = vadd.f32 %v2851_v38, %v2431_v28  ;;  %v2895_v7 = vadd.f32 %v2864_v0, %v2460_v43 }
 0xb55   :  { %v2898_v54 = vmul.f32 0.5, %v2894_v53  ;;  %v2902_v16 = vmul.f32 0.5, %v2895_v7 }
 0xb57   :  { %4523 = vtanh.f32 %v2898_v54 }
 0xb58   :  { %4525 = vtanh.f32 %v2902_v16 }
 0xb59   :  { %v2877_v35 = vpop.f32.mrf.mxu2  ;;  %v2890_v5 = vpop.f32.mrf.mxu3 }
 0xb5a   :  { %v2896_v2 = vadd.f32 %v2877_v35, %v2489_v62  ;;  %v2897_v49 = vadd.f32 %v2890_v5, %v2518_v50  ;;  %v2853_v63 = vpop.f32.mrf.mxu0  ;;  %v2866_v58 = vpop.f32.mrf.mxu1  ;;  %v2463_v35 = vadd.f32 %v6005_v25, %v6052_v55 }
 0xb5c   :  { %4527 = vtanh.f32 %v2896_v2  ;;  %v2907_v32 = vmul.f32 0.5, %v2897_v49 }
 0xb5d   :  { %v4524_v56 = vpop.eup %4523 }
 0xb5e   :  { %v4526_v52 = vpop.eup %4525  ;;  %v2900_v11 = vmul.f32 0.5, %v4524_v56  ;;  %4529 = vtanh.f32 %v2907_v32  ;;  %v6388_v56 = vld [vmem:[#allocation25_spill] sm:$0xff] }
 0xb5f   :  { %v2904_v10 = vmul.f32 0.5, %v4526_v52  ;;  %v2492_v52 = vadd.f32 %v6388_v56, %v6060_v4 }
 0xb60   :  { %v2901_v45 = vadd.f32 0.5, %v2900_v11  ;;  %v6389_v11 = vld [vmem:[#allocation26_spill] sm:$0xff] }
 0xb61   :  { %v2905_v48 = vadd.f32 0.5, %v2904_v10  ;;  %v2879_v40 = vpop.f32.mrf.mxu2  ;;  %v2892_v28 = vpop.f32.mrf.mxu3  ;;  %v2521_v10 = vadd.f32 %v6389_v11, %v6062_v8 }
 0xb62   :  { %v4528_v43 = vpop.eup %4527 }
 0xb63   :  { %v2911_v1 = vmul.f32 %v2905_v48, %v6066_v60  ;;  %v2912_v38 = vmul.f32 %v4528_v43, %v2901_v45  ;;  %v2434_v60 = vadd.f32 %v6003_v37, %v6050_v13 }
 0xb64   :  { %v4530_v0 = vpop.eup %4529 }
 0xb65   :  { %v6110_v53 = vadd.f32 %v2912_v38, %v2911_v1  ;;  %v2909_v7 = vmul.f32 0.5, %v4530_v0 }
 0xb67   :  { %4531 = vtanh.f32 %v6110_v53  ;;  %v2910_v54 = vadd.f32 0.5, %v2909_v7 }
 0xb6d   :  { %v4532_v16 = vpop.eup %4531 }
 0xb6e   :  { %v2915_v62 = vmul.f32 %v4532_v16, %v2910_v54 }
 0xb70   :  { %v2920_v50 = vpack.c.bf16 %v2915_v62, %v2915_v62 }
 0xb72   :  { %2929 = vmatmul.bf16.vlgmr.msra.gmra.mxu0 %v2920_v50  ;;  %2942 = vmatmul.bf16.vlgmr.msra.gmra.mxu1 %v2920_v50 }
 0xb73   :  { %2955 = vmatmul.bf16.vlgmr.msra.gmra.mxu2 %v2920_v50  ;;  %2968 = vmatmul.bf16.vlgmr.msra.gmra.mxu3 %v2920_v50 }
 0xb74   :  { %3079 = vmatpush.bf16.msra.mxu0 %v5817_v22  ;;  %3092 = vmatpush.bf16.msra.mxu1 %v5819_v44 }
 0xb75   :  { %3105 = vmatpush.bf16.msra.mxu2 %v5821_v57  ;;  %3118 = vmatpush.bf16.msra.mxu3 %v5824_v9 }
 0xb78   :  { %3080 = vmatpush.bf16.msra.mxu0 %v5828_v6  ;;  %3093 = vmatpush.bf16.msra.mxu1 %v5830_v36 }
 0xb79   :  { %3106 = vmatpush.bf16.msra.mxu2 %v5833_v14  ;;  %3119 = vmatpush.bf16.msra.mxu3 %v5835_v59 }
 0xb7c   :  { %3081 = vmatpush.bf16.msra.mxu0 %v5838_v30  ;;  %3094 = vmatpush.bf16.msra.mxu1 %v5842_v18 }
 0xb7d   :  { %3107 = vmatpush.bf16.msra.mxu2 %v5844_v41  ;;  %3120 = vmatpush.bf16.msra.mxu3 %v5854_v42 }
 0xb80   :  { %3082 = vmatpush.bf16.msra.mxu0 %v5857_v31  ;;  %3095 = vmatpush.bf16.msra.mxu1 %v5859_v12 }
 0xb81   :  { %3108 = vmatpush.bf16.msra.mxu2 %v5861_v33  ;;  %3121 = vmatpush.bf16.msra.mxu3 %v5864_v34 }
 0xb84   :  { %3083 = vmatpush.bf16.msra.mxu0 %v5868_v24  ;;  %3096 = vmatpush.bf16.msra.mxu1 %v5870_v26 }
 0xb85   :  { %3109 = vmatpush.bf16.msra.mxu2 %v5877_v17  ;;  %3122 = vmatpush.bf16.msra.mxu3 %v5879_v39 }
 0xb88   :  { %3084 = vmatpush.bf16.msra.mxu0 %v5882_v47  ;;  %3097 = vmatpush.bf16.msra.mxu1 %v5886_v27 }
 0xb89   :  { %3110 = vmatpush.bf16.msra.mxu2 %v5888_v19  ;;  %3123 = vmatpush.bf16.msra.mxu3 %v5891_v29 }
 0xb8c   :  { %3085 = vmatpush.bf16.msra.mxu0 %v5896_v51  ;;  %3098 = vmatpush.bf16.msra.mxu1 %v5902_v15 }
 0xb8d   :  { %3111 = vmatpush.bf16.msra.mxu2 %v5904_v20  ;;  %3124 = vmatpush.bf16.msra.mxu3 %v5907_v23 }
 0xb90   :  { %3086 = vmatpush.bf16.msra.mxu0 %v5910_v61  ;;  %3099 = vmatpush.bf16.msra.mxu1 %v5914_v46 }
 0xb91   :  { %3112 = vmatpush.bf16.msra.mxu2 %v5916_v3  ;;  %3125 = vmatpush.bf16.msra.mxu3 %v5919_v21 }
 0xbef   :  { %v2930_v5 = vpop.f32.mrf.mxu0  ;;  %v2943_v2 = vpop.f32.mrf.mxu1 }
 0xbf0   :  { %v2973_v49 = vadd.f32 %v2930_v5, %v2434_v60  ;;  %v2974_v63 = vadd.f32 %v2943_v2, %v2463_v35 }
 0xbf2   :  { %v2977_v58 = vmul.f32 0.5, %v2973_v49  ;;  %v2981_v32 = vmul.f32 0.5, %v2974_v63 }
 0xbf4   :  { %4533 = vtanh.f32 %v2977_v58 }
 0xbf5   :  { %4535 = vtanh.f32 %v2981_v32 }
 0xbf6   :  { %v2956_v45 = vpop.f32.mrf.mxu2  ;;  %v2969_v48 = vpop.f32.mrf.mxu3 }
 0xbf7   :  { %v2975_v37 = vadd.f32 %v2956_v45, %v2492_v52  ;;  %v2976_v40 = vadd.f32 %v2969_v48, %v2521_v10  ;;  %v2932_v28 = vpop.f32.mrf.mxu0  ;;  %v2945_v25 = vpop.f32.mrf.mxu1  ;;  %v6391_v10 = vld [vmem:[#allocation28_spill] sm:$0xff] }
 0xbf8   :  { %v2465_v45 = vadd.f32 %v6391_v10, %v6052_v55 }
 0xbf9   :  { %4537 = vtanh.f32 %v2975_v37  ;;  %v2986_v43 = vmul.f32 0.5, %v2976_v40 }
 0xbfa   :  { %v4534_v1 = vpop.eup %4533 }
 0xbfb   :  { %v4536_v38 = vpop.eup %4535  ;;  %v2979_v0 = vmul.f32 0.5, %v4534_v1  ;;  %4539 = vtanh.f32 %v2986_v43  ;;  %v6392_v1 = vld [vmem:[#allocation29_spill] sm:$0xff] }
 0xbfc   :  { %v2983_v7 = vmul.f32 0.5, %v4536_v38  ;;  %v2494_v38 = vadd.f32 %v6392_v1, %v6060_v4 }
 0xbfd   :  { %v2980_v54 = vadd.f32 0.5, %v2979_v0  ;;  %v6393_v0 = vld [vmem:[#allocation30_spill] sm:$0xff] }
 0xbfe   :  { %v2984_v16 = vadd.f32 0.5, %v2983_v7  ;;  %v2958_v62 = vpop.f32.mrf.mxu2  ;;  %v2971_v50 = vpop.f32.mrf.mxu3  ;;  %v2523_v7 = vadd.f32 %v6393_v0, %v6062_v8 }
 0xbff   :  { %v4538_v60 = vpop.eup %4537 }
 0xc00   :  { %v2990_v35 = vmul.f32 %v2984_v16, %v6110_v53  ;;  %v2991_v5 = vmul.f32 %v4538_v60, %v2980_v54  ;;  %v6390_v53 = vld [vmem:[#allocation27_spill] sm:$0xff] }
 0xc01   :  { %v4540_v2 = vpop.eup %4539  ;;  %v2436_v11 = vadd.f32 %v6390_v53, %v6050_v13 }
 0xc02   :  { %v6154_v49 = vadd.f32 %v2991_v5, %v2990_v35  ;;  %v2988_v63 = vmul.f32 0.5, %v4540_v2 }
 0xc04   :  { %4541 = vtanh.f32 %v6154_v49  ;;  %v2989_v58 = vadd.f32 0.5, %v2988_v63 }
 0xc0a   :  { %v4542_v32 = vpop.eup %4541 }
 0xc0b   :  { %v2994_v56 = vmul.f32 %v4542_v32, %v2989_v58 }
 0xc0d   :  { %v2999_v52 = vpack.c.bf16 %v2994_v56, %v2994_v56 }
 0xc0f   :  { %3008 = vmatmul.bf16.vlgmr.msrb.gmra.mxu0 %v2999_v52  ;;  %3021 = vmatmul.bf16.vlgmr.msrb.gmra.mxu1 %v2999_v52 }
 0xc10   :  { %3034 = vmatmul.bf16.vlgmr.msrb.gmra.mxu2 %v2999_v52  ;;  %3047 = vmatmul.bf16.vlgmr.msrb.gmra.mxu3 %v2999_v52 }
 0xc11   :  { %3158 = vmatpush.bf16.msrb.mxu0 %v5817_v22  ;;  %3171 = vmatpush.bf16.msrb.mxu1 %v5819_v44 }
 0xc12   :  { %3184 = vmatpush.bf16.msrb.mxu2 %v5821_v57  ;;  %3197 = vmatpush.bf16.msrb.mxu3 %v5824_v9 }
 0xc15   :  { %3159 = vmatpush.bf16.msrb.mxu0 %v5828_v6  ;;  %3172 = vmatpush.bf16.msrb.mxu1 %v5830_v36 }
 0xc16   :  { %3185 = vmatpush.bf16.msrb.mxu2 %v5833_v14  ;;  %3198 = vmatpush.bf16.msrb.mxu3 %v5835_v59 }
 0xc19   :  { %3160 = vmatpush.bf16.msrb.mxu0 %v5838_v30  ;;  %3173 = vmatpush.bf16.msrb.mxu1 %v5842_v18 }
 0xc1a   :  { %3186 = vmatpush.bf16.msrb.mxu2 %v5844_v41  ;;  %3199 = vmatpush.bf16.msrb.mxu3 %v5854_v42 }
 0xc1d   :  { %3161 = vmatpush.bf16.msrb.mxu0 %v5857_v31  ;;  %3174 = vmatpush.bf16.msrb.mxu1 %v5859_v12 }
 0xc1e   :  { %3187 = vmatpush.bf16.msrb.mxu2 %v5861_v33  ;;  %3200 = vmatpush.bf16.msrb.mxu3 %v5864_v34 }
 0xc21   :  { %3162 = vmatpush.bf16.msrb.mxu0 %v5868_v24  ;;  %3175 = vmatpush.bf16.msrb.mxu1 %v5870_v26 }
 0xc22   :  { %3188 = vmatpush.bf16.msrb.mxu2 %v5877_v17  ;;  %3201 = vmatpush.bf16.msrb.mxu3 %v5879_v39 }
 0xc25   :  { %3163 = vmatpush.bf16.msrb.mxu0 %v5882_v47  ;;  %3176 = vmatpush.bf16.msrb.mxu1 %v5886_v27 }
 0xc26   :  { %3189 = vmatpush.bf16.msrb.mxu2 %v5888_v19  ;;  %3202 = vmatpush.bf16.msrb.mxu3 %v5891_v29 }
 0xc29   :  { %3164 = vmatpush.bf16.msrb.mxu0 %v5896_v51  ;;  %3177 = vmatpush.bf16.msrb.mxu1 %v5902_v15 }
 0xc2a   :  { %3190 = vmatpush.bf16.msrb.mxu2 %v5904_v20  ;;  %3203 = vmatpush.bf16.msrb.mxu3 %v5907_v23 }
 0xc2d   :  { %3165 = vmatpush.bf16.msrb.mxu0 %v5910_v61  ;;  %3178 = vmatpush.bf16.msrb.mxu1 %v5914_v46 }
 0xc2e   :  { %3191 = vmatpush.bf16.msrb.mxu2 %v5916_v3  ;;  %3204 = vmatpush.bf16.msrb.mxu3 %v5919_v21 }
 0xc8c   :  { %v3009_v48 = vpop.f32.mrf.mxu0  ;;  %v3022_v37 = vpop.f32.mrf.mxu1 }
 0xc8d   :  { %v3052_v40 = vadd.f32 %v3009_v48, %v2436_v11  ;;  %v3053_v28 = vadd.f32 %v3022_v37, %v2465_v45 }
 0xc8f   :  { %v3056_v25 = vmul.f32 0.5, %v3052_v40  ;;  %v3060_v43 = vmul.f32 0.5, %v3053_v28 }
 0xc91   :  { %4543 = vtanh.f32 %v3056_v25 }
 0xc92   :  { %4545 = vtanh.f32 %v3060_v43 }
 0xc93   :  { %v3035_v54 = vpop.f32.mrf.mxu2  ;;  %v3048_v16 = vpop.f32.mrf.mxu3 }
 0xc94   :  { %v3054_v62 = vadd.f32 %v3035_v54, %v2494_v38  ;;  %v3055_v50 = vadd.f32 %v3048_v16, %v2523_v7  ;;  %v3011_v60 = vpop.f32.mrf.mxu0  ;;  %v3024_v35 = vpop.f32.mrf.mxu1  ;;  %v6395_v7 = vld [vmem:[#allocation32_spill] sm:$0xff] }
 0xc95   :  { %v2468_v54 = vadd.f32 %v6395_v7, %v6052_v55 }
 0xc96   :  { %4547 = vtanh.f32 %v3054_v62  ;;  %v3065_v5 = vmul.f32 0.5, %v3055_v50 }
 0xc97   :  { %v4544_v2 = vpop.eup %4543 }
 0xc98   :  { %v4546_v63 = vpop.eup %4545  ;;  %v3058_v58 = vmul.f32 0.5, %v4544_v2  ;;  %4549 = vtanh.f32 %v3065_v5  ;;  %v6396_v2 = vld [vmem:[#allocation33_spill] sm:$0xff] }
 0xc99   :  { %v3062_v32 = vmul.f32 0.5, %v4546_v63  ;;  %v2497_v63 = vadd.f32 %v6396_v2, %v6060_v4 }
 0xc9a   :  { %v3059_v56 = vadd.f32 0.5, %v3058_v58  ;;  %v6397_v58 = vld [vmem:[#allocation34_spill] sm:$0xff] }
 0xc9b   :  { %v3063_v52 = vadd.f32 0.5, %v3062_v32  ;;  %v3037_v53 = vpop.f32.mrf.mxu2  ;;  %v3050_v11 = vpop.f32.mrf.mxu3  ;;  %v2526_v32 = vadd.f32 %v6397_v58, %v6062_v8 }
 0xc9c   :  { %v4548_v10 = vpop.eup %4547 }
 0xc9d   :  { %v3069_v45 = vmul.f32 %v3063_v52, %v6154_v49  ;;  %v3070_v48 = vmul.f32 %v4548_v10, %v3059_v56  ;;  %v6394_v49 = vld [vmem:[#allocation31_spill] sm:$0xff] }
 0xc9e   :  { %v4550_v37 = vpop.eup %4549  ;;  %v2439_v0 = vadd.f32 %v6394_v49, %v6050_v13 }
 0xc9f   :  { %v6198_v40 = vadd.f32 %v3070_v48, %v3069_v45  ;;  %v3067_v28 = vmul.f32 0.5, %v4550_v37 }
 0xca1   :  { %4551 = vtanh.f32 %v6198_v40  ;;  %v3068_v25 = vadd.f32 0.5, %v3067_v28 }
 0xca7   :  { %v4552_v43 = vpop.eup %4551 }
 0xca8   :  { %v3073_v1 = vmul.f32 %v4552_v43, %v3068_v25 }
 0xcaa   :  { %v3078_v38 = vpack.c.bf16 %v3073_v1, %v3073_v1 }
 0xcac   :  { %3087 = vmatmul.bf16.vlgmr.msra.gmra.mxu0 %v3078_v38  ;;  %3100 = vmatmul.bf16.vlgmr.msra.gmra.mxu1 %v3078_v38 }
 0xcad   :  { %3113 = vmatmul.bf16.vlgmr.msra.gmra.mxu2 %v3078_v38  ;;  %3126 = vmatmul.bf16.vlgmr.msra.gmra.mxu3 %v3078_v38 }
 0xcae   :  { %3237 = vmatpush.bf16.msra.mxu0 %v5817_v22  ;;  %3250 = vmatpush.bf16.msra.mxu1 %v5819_v44 }
 0xcaf   :  { %3263 = vmatpush.bf16.msra.mxu2 %v5821_v57  ;;  %3276 = vmatpush.bf16.msra.mxu3 %v5824_v9 }
 0xcb2   :  { %3238 = vmatpush.bf16.msra.mxu0 %v5828_v6  ;;  %3251 = vmatpush.bf16.msra.mxu1 %v5830_v36 }
 0xcb3   :  { %3264 = vmatpush.bf16.msra.mxu2 %v5833_v14  ;;  %3277 = vmatpush.bf16.msra.mxu3 %v5835_v59 }
 0xcb6   :  { %3239 = vmatpush.bf16.msra.mxu0 %v5838_v30  ;;  %3252 = vmatpush.bf16.msra.mxu1 %v5842_v18 }
 0xcb7   :  { %3265 = vmatpush.bf16.msra.mxu2 %v5844_v41  ;;  %3278 = vmatpush.bf16.msra.mxu3 %v5854_v42 }
 0xcba   :  { %3240 = vmatpush.bf16.msra.mxu0 %v5857_v31  ;;  %3253 = vmatpush.bf16.msra.mxu1 %v5859_v12 }
 0xcbb   :  { %3266 = vmatpush.bf16.msra.mxu2 %v5861_v33  ;;  %3279 = vmatpush.bf16.msra.mxu3 %v5864_v34 }
 0xcbe   :  { %3241 = vmatpush.bf16.msra.mxu0 %v5868_v24  ;;  %3254 = vmatpush.bf16.msra.mxu1 %v5870_v26 }
 0xcbf   :  { %3267 = vmatpush.bf16.msra.mxu2 %v5877_v17  ;;  %3280 = vmatpush.bf16.msra.mxu3 %v5879_v39 }
 0xcc2   :  { %3242 = vmatpush.bf16.msra.mxu0 %v5882_v47  ;;  %3255 = vmatpush.bf16.msra.mxu1 %v5886_v27 }
 0xcc3   :  { %3268 = vmatpush.bf16.msra.mxu2 %v5888_v19  ;;  %3281 = vmatpush.bf16.msra.mxu3 %v5891_v29 }
 0xcc6   :  { %3243 = vmatpush.bf16.msra.mxu0 %v5896_v51  ;;  %3256 = vmatpush.bf16.msra.mxu1 %v5902_v15 }
 0xcc7   :  { %3269 = vmatpush.bf16.msra.mxu2 %v5904_v20  ;;  %3282 = vmatpush.bf16.msra.mxu3 %v5907_v23 }
 0xcca   :  { %3244 = vmatpush.bf16.msra.mxu0 %v5910_v61  ;;  %3257 = vmatpush.bf16.msra.mxu1 %v5914_v46 }
 0xccb   :  { %3270 = vmatpush.bf16.msra.mxu2 %v5916_v3  ;;  %3283 = vmatpush.bf16.msra.mxu3 %v5919_v21 }
 0xd29   :  { %v3088_v16 = vpop.f32.mrf.mxu0  ;;  %v3101_v62 = vpop.f32.mrf.mxu1 }
 0xd2a   :  { %v3131_v50 = vadd.f32 %v3088_v16, %v2439_v0  ;;  %v3132_v60 = vadd.f32 %v3101_v62, %v2468_v54 }
 0xd2c   :  { %v3135_v35 = vmul.f32 0.5, %v3131_v50  ;;  %v3139_v5 = vmul.f32 0.5, %v3132_v60 }
 0xd2e   :  { %4553 = vtanh.f32 %v3135_v35 }
 0xd2f   :  { %4555 = vtanh.f32 %v3139_v5 }
 0xd30   :  { %v3114_v56 = vpop.f32.mrf.mxu2  ;;  %v3127_v52 = vpop.f32.mrf.mxu3 }
 0xd31   :  { %v3133_v53 = vadd.f32 %v3114_v56, %v2497_v63  ;;  %v3134_v11 = vadd.f32 %v3127_v52, %v2526_v32  ;;  %v3090_v10 = vpop.f32.mrf.mxu0  ;;  %v3103_v45 = vpop.f32.mrf.mxu1 }
 0xd32   :  { %v6402_v10 = vld [vmem:[#allocation39_spill] sm:$0xff] }
 0xd33   :  { %4557 = vtanh.f32 %v3133_v53  ;;  %v3144_v48 = vmul.f32 0.5, %v3134_v11  ;;  %v2444_v45 = vadd.f32 %v6402_v10, %v6050_v13 }
 0xd34   :  { %v4554_v37 = vpop.eup %4553 }
 0xd35   :  { %v4556_v28 = vpop.eup %4555  ;;  %v3137_v25 = vmul.f32 0.5, %v4554_v37  ;;  %4559 = vtanh.f32 %v3144_v48  ;;  %v6403_v48 = vld [vmem:[#allocation40_spill] sm:$0xff] }
 0xd36   :  { %v3141_v43 = vmul.f32 0.5, %v4556_v28  ;;  %v2473_v37 = vadd.f32 %v6403_v48, %v6052_v55 }
 0xd37   :  { %v3138_v1 = vadd.f32 0.5, %v3137_v25 }
 0xd38   :  { %v3142_v38 = vadd.f32 0.5, %v3141_v43  ;;  %v3116_v49 = vpop.f32.mrf.mxu2  ;;  %v3129_v0 = vpop.f32.mrf.mxu3 }
 0xd39   :  { %v4558_v7 = vpop.eup %4557  ;;  %v6404_v0 = vld [vmem:[#allocation41_spill] sm:$0xff] }
 0xd3a   :  { %v3148_v54 = vmul.f32 %v3142_v38, %v6198_v40  ;;  %v3149_v16 = vmul.f32 %v4558_v7, %v3138_v1  ;;  %v2502_v7 = vadd.f32 %v6404_v0, %v6060_v4 }
 0xd3b   :  { %v4560_v62 = vpop.eup %4559 }
 0xd3c   :  { %v6242_v50 = vadd.f32 %v3149_v16, %v3148_v54  ;;  %v3146_v60 = vmul.f32 0.5, %v4560_v62  ;;  %v6405_v54 = vld [vmem:[#allocation42_spill] sm:$0xff] }
 0xd3d   :  { %v2531_v16 = vadd.f32 %v6405_v54, %v6062_v8 }
 0xd3e   :  { %4561 = vtanh.f32 %v6242_v50  ;;  %v3147_v35 = vadd.f32 0.5, %v3146_v60 }
 0xd44   :  { %v4562_v5 = vpop.eup %4561 }
 0xd45   :  { %v3152_v2 = vmul.f32 %v4562_v5, %v3147_v35 }
 0xd47   :  { %v3157_v63 = vpack.c.bf16 %v3152_v2, %v3152_v2 }
 0xd49   :  { %3166 = vmatmul.bf16.vlgmr.msrb.gmra.mxu0 %v3157_v63  ;;  %3179 = vmatmul.bf16.vlgmr.msrb.gmra.mxu1 %v3157_v63 }
 0xd4a   :  { %3192 = vmatmul.bf16.vlgmr.msrb.gmra.mxu2 %v3157_v63  ;;  %3205 = vmatmul.bf16.vlgmr.msrb.gmra.mxu3 %v3157_v63 }
 0xd4b   :  { %3316 = vmatpush.bf16.msrb.mxu0 %v5817_v22  ;;  %3329 = vmatpush.bf16.msrb.mxu1 %v5819_v44  ;;  %v6398_v22 = vld [vmem:[#allocation35_spill] sm:$0xff] }
 0xd4c   :  { %3342 = vmatpush.bf16.msrb.mxu2 %v5821_v57  ;;  %3355 = vmatpush.bf16.msrb.mxu3 %v5824_v9  ;;  %v2441_v44 = vadd.f32 %v6398_v22, %v6050_v13  ;;  %v6399_v57 = vld [vmem:[#allocation36_spill] sm:$0xff] }
 0xd4d   :  { %v2470_v9 = vadd.f32 %v6399_v57, %v6052_v55 }
 0xd4f   :  { %3317 = vmatpush.bf16.msrb.mxu0 %v5828_v6  ;;  %3330 = vmatpush.bf16.msrb.mxu1 %v5830_v36 }
 0xd50   :  { %3343 = vmatpush.bf16.msrb.mxu2 %v5833_v14  ;;  %3356 = vmatpush.bf16.msrb.mxu3 %v5835_v59 }
 0xd53   :  { %3318 = vmatpush.bf16.msrb.mxu0 %v5838_v30  ;;  %3331 = vmatpush.bf16.msrb.mxu1 %v5842_v18 }
 0xd54   :  { %3344 = vmatpush.bf16.msrb.mxu2 %v5844_v41  ;;  %3357 = vmatpush.bf16.msrb.mxu3 %v5854_v42  ;;  %v6400_v41 = vld [vmem:[#allocation37_spill] sm:$0xff] }
 0xd55   :  { %v2499_v42 = vadd.f32 %v6400_v41, %v6060_v4 }
 0xd57   :  { %3319 = vmatpush.bf16.msrb.mxu0 %v5857_v31  ;;  %3332 = vmatpush.bf16.msrb.mxu1 %v5859_v12  ;;  %v6401_v31 = vld [vmem:[#allocation38_spill] sm:$0xff] }
 0xd58   :  { %3345 = vmatpush.bf16.msrb.mxu2 %v5861_v33  ;;  %3358 = vmatpush.bf16.msrb.mxu3 %v5864_v34  ;;  %v2528_v12 = vadd.f32 %v6401_v31, %v6062_v8 }
 0xd5b   :  { %3320 = vmatpush.bf16.msrb.mxu0 %v5868_v24  ;;  %3333 = vmatpush.bf16.msrb.mxu1 %v5870_v26 }
 0xd5c   :  { %3346 = vmatpush.bf16.msrb.mxu2 %v5877_v17  ;;  %3359 = vmatpush.bf16.msrb.mxu3 %v5879_v39 }
 0xd5f   :  { %3321 = vmatpush.bf16.msrb.mxu0 %v5882_v47  ;;  %3334 = vmatpush.bf16.msrb.mxu1 %v5886_v27 }
 0xd60   :  { %3347 = vmatpush.bf16.msrb.mxu2 %v5888_v19  ;;  %3360 = vmatpush.bf16.msrb.mxu3 %v5891_v29 }
 0xd63   :  { %3322 = vmatpush.bf16.msrb.mxu0 %v5896_v51  ;;  %3335 = vmatpush.bf16.msrb.mxu1 %v5902_v15 }
 0xd64   :  { %3348 = vmatpush.bf16.msrb.mxu2 %v5904_v20  ;;  %3361 = vmatpush.bf16.msrb.mxu3 %v5907_v23 }
 0xd67   :  { %3323 = vmatpush.bf16.msrb.mxu0 %v5910_v61  ;;  %3336 = vmatpush.bf16.msrb.mxu1 %v5914_v46 }
 0xd68   :  { %3349 = vmatpush.bf16.msrb.mxu2 %v5916_v3  ;;  %3362 = vmatpush.bf16.msrb.mxu3 %v5919_v21 }
 0xdc6   :  { %v3167_v6 = vpop.f32.mrf.mxu0  ;;  %v3180_v36 = vpop.f32.mrf.mxu1 }
 0xdc7   :  { %v3210_v14 = vadd.f32 %v3167_v6, %v2441_v44  ;;  %v3211_v59 = vadd.f32 %v3180_v36, %v2470_v9 }
 0xdc9   :  { %v3214_v30 = vmul.f32 0.5, %v3210_v14  ;;  %v3218_v18 = vmul.f32 0.5, %v3211_v59 }
 0xdcb   :  { %4563 = vtanh.f32 %v3214_v30 }
 0xdcc   :  { %4565 = vtanh.f32 %v3218_v18 }
 0xdcd   :  { %v3193_v33 = vpop.f32.mrf.mxu2  ;;  %v3206_v34 = vpop.f32.mrf.mxu3 }
 0xdce   :  { %v3212_v24 = vadd.f32 %v3193_v33, %v2499_v42  ;;  %v3213_v26 = vadd.f32 %v3206_v34, %v2528_v12  ;;  %v3169_v17 = vpop.f32.mrf.mxu0  ;;  %v3182_v39 = vpop.f32.mrf.mxu1 }
 0xdcf   :  { %v4335_v17 = vld [vmem:[#allocation16 + $0x38] sm:$0xff]  ;;  %v4334_v39 = vld [vmem:[#allocation16 + $0x30] sm:$0xff] }
 0xdd0   :  { %4567 = vtanh.f32 %v3212_v24  ;;  %v3223_v47 = vmul.f32 0.5, %v3213_v26 }
 0xdd1   :  { %v4564_v27 = vpop.eup %4563 }
 0xdd2   :  { %v4566_v19 = vpop.eup %4565  ;;  %v3216_v29 = vmul.f32 0.5, %v4564_v27  ;;  %4569 = vtanh.f32 %v3223_v47  ;;  %v4333_v47 = vld [vmem:[#allocation16 + $0x28] sm:$0xff]  ;;  %v4332_v27 = vld [vmem:[#allocation16 + $0x20] sm:$0xff] }
 0xdd3   :  { %v3220_v51 = vmul.f32 0.5, %v4566_v19  ;;  %v4331_v19 = vld [vmem:[#allocation16 + $0x18] sm:$0xff] }
 0xdd4   :  { %v3217_v15 = vadd.f32 0.5, %v3216_v29  ;;  %v4330_v29 = vld [vmem:[#allocation16 + $0x10] sm:$0xff] }
 0xdd5   :  { %v3221_v20 = vadd.f32 0.5, %v3220_v51  ;;  %v3195_v23 = vpop.f32.mrf.mxu2  ;;  %v3208_v61 = vpop.f32.mrf.mxu3  ;;  %v4329_v51 = vld [vmem:[#allocation16 + $0x8] sm:$0xff] }
 0xdd6   :  { %v4568_v46 = vpop.eup %4567  ;;  %v6407_v61 = vld [vmem:[#allocation44_spill] sm:$0xff] }
 0xdd7   :  { %v3227_v3 = vmul.f32 %v3221_v20, %v6242_v50  ;;  %v3228_v21 = vmul.f32 %v4568_v46, %v3217_v15  ;;  %v4328_v15 = vld [vmem:[#allocation16] sm:$0xff]  ;;  %v6406_v20 = vld [vmem:[#allocation43_spill] sm:$0xff]  ;;  %v2475_v46 = vadd.f32 %v6407_v61, %v6052_v55 }
 0xdd8   :  { %v4570_v40 = vpop.eup %4569  ;;  %v2446_v23 = vadd.f32 %v6406_v20, %v6050_v13 }
 0xdd9   :  { %v3229_v58 = vadd.f32 %v3228_v21, %v3227_v3  ;;  %v3225_v32 = vmul.f32 0.5, %v4570_v40 }
 0xddb   :  { %4571 = vtanh.f32 %v3229_v58  ;;  %v3226_v56 = vadd.f32 0.5, %v3225_v32 }
 0xde1   :  { %v4572_v52 = vpop.eup %4571 }
 0xde2   :  { %v3231_v53 = vmul.f32 %v4572_v52, %v3226_v56  ;;  %v6408_v52 = vld [vmem:[#allocation45_spill] sm:$0xff] }
 0xde4   :  { %v3236_v11 = vpack.c.bf16 %v3231_v53, %v3231_v53  ;;  %v2504_v53 = vadd.f32 %v6408_v52, %v6060_v4 }
 0xde6   :  { %3245 = vmatmul.bf16.vlgmr.msra.gmra.mxu0 %v3236_v11  ;;  %3258 = vmatmul.bf16.vlgmr.msra.gmra.mxu1 %v3236_v11 }
 0xde7   :  { %3271 = vmatmul.bf16.vlgmr.msra.gmra.mxu2 %v3236_v11  ;;  %3284 = vmatmul.bf16.vlgmr.msra.gmra.mxu3 %v3236_v11  ;;  %v6409_v11 = vld [vmem:[#allocation46_spill] sm:$0xff] }
 0xde8   :  { %3459 = vmatpush.bf16.msra.mxu0 %v4335_v17  ;;  %v2533_v10 = vadd.f32 %v6409_v11, %v6062_v8 }
 0xdec   :  { %3460 = vmatpush.bf16.msra.mxu0 %v4334_v39 }
 0xdf0   :  { %3461 = vmatpush.bf16.msra.mxu0 %v4333_v47 }
 0xdf4   :  { %3462 = vmatpush.bf16.msra.mxu0 %v4332_v27 }
 0xdf8   :  { %3463 = vmatpush.bf16.msra.mxu0 %v4331_v19 }
 0xdfc   :  { %3464 = vmatpush.bf16.msra.mxu0 %v4330_v29 }
 0xe00   :  { %3465 = vmatpush.bf16.msra.mxu0 %v4329_v51 }
 0xe04   :  { %3466 = vmatpush.bf16.msra.mxu0 %v4328_v15 }
 0xe63   :  { %v3246_v28 = vpop.f32.mrf.mxu0  ;;  %v3259_v25 = vpop.f32.mrf.mxu1 }
 0xe64   :  { %v3289_v43 = vadd.f32 %v3246_v28, %v2444_v45  ;;  %v3290_v1 = vadd.f32 %v3259_v25, %v2473_v37 }
 0xe66   :  { %v3293_v38 = vmul.f32 0.5, %v3289_v43  ;;  %v3297_v49 = vmul.f32 0.5, %v3290_v1 }
 0xe68   :  { %4573 = vtanh.f32 %v3293_v38 }
 0xe69   :  { %4575 = vtanh.f32 %v3297_v49 }
 0xe6a   :  { %v3272_v62 = vpop.f32.mrf.mxu2  ;;  %v3285_v50 = vpop.f32.mrf.mxu3 }
 0xe6b   :  { %v3291_v60 = vadd.f32 %v3272_v62, %v2502_v7  ;;  %v3292_v35 = vadd.f32 %v3285_v50, %v2531_v16  ;;  %v3248_v5 = vpop.f32.mrf.mxu0  ;;  %v3261_v2 = vpop.f32.mrf.mxu1 }
 0xe6d   :  { %4577 = vtanh.f32 %v3291_v60  ;;  %v3302_v63 = vmul.f32 0.5, %v3292_v35 }
 0xe6e   :  { %v4574_v22 = vpop.eup %4573 }
 0xe6f   :  { %v4576_v44 = vpop.eup %4575  ;;  %v3295_v57 = vmul.f32 0.5, %v4574_v22  ;;  %4579 = vtanh.f32 %v3302_v63 }
 0xe70   :  { %v3299_v9 = vmul.f32 0.5, %v4576_v44  ;;  %v4352_v44 = vld [vmem:[%s6317_s9] ss:$0 sm:$0xff] }
 0xe71   :  { %v3296_v6 = vadd.f32 0.5, %v3295_v57 }
 0xe72   :  { %v3300_v36 = vadd.f32 0.5, %v3299_v9  ;;  %v3274_v14 = vpop.f32.mrf.mxu2  ;;  %v3287_v59 = vpop.f32.mrf.mxu3 }
 0xe73   :  { %v4578_v30 = vpop.eup %4577 }
 0xe74   :  { %v3306_v18 = vmul.f32 %v3300_v36, %v3229_v58  ;;  %v3307_v41 = vmul.f32 %v4578_v30, %v3296_v6 }
 0xe75   :  { %v4580_v42 = vpop.eup %4579 }
 0xe76   :  { %v3308_v31 = vadd.f32 %v3307_v41, %v3306_v18  ;;  %v3304_v12 = vmul.f32 0.5, %v4580_v42 }
 0xe78   :  { %4581 = vtanh.f32 %v3308_v31  ;;  %v3305_v33 = vadd.f32 0.5, %v3304_v12 }
 0xe7e   :  { %v4582_v34 = vpop.eup %4581 }
 0xe7f   :  { %v3310_v24 = vmul.f32 %v4582_v34, %v3305_v33 }
 0xe81   :  { %v3315_v26 = vpack.c.bf16 %v3310_v24, %v3310_v24 }
 0xe83   :  { %3324 = vmatmul.bf16.vlgmr.msrb.gmra.mxu0 %v3315_v26  ;;  %3337 = vmatmul.bf16.vlgmr.msrb.gmra.mxu1 %v3315_v26 }
 0xe84   :  { %3350 = vmatmul.bf16.vlgmr.msrb.gmra.mxu2 %v3315_v26  ;;  %3363 = vmatmul.bf16.vlgmr.msrb.gmra.mxu3 %v3315_v26 }
 0xf00   :  { %v3325_v3 = vpop.f32.mrf.mxu0  ;;  %v3338_v21 = vpop.f32.mrf.mxu1 }
 0xf01   :  { %v3368_v40 = vadd.f32 %v3325_v3, %v2446_v23  ;;  %v3369_v58 = vadd.f32 %v3338_v21, %v2475_v46 }
 0xf03   :  { %v3372_v32 = vmul.f32 0.5, %v3368_v40  ;;  %v3376_v56 = vmul.f32 0.5, %v3369_v58 }
 0xf05   :  { %4583 = vtanh.f32 %v3372_v32 }
 0xf06   :  { %4585 = vtanh.f32 %v3376_v56 }
 0xf07   :  { %v3351_v45 = vpop.f32.mrf.mxu2  ;;  %v3364_v48 = vpop.f32.mrf.mxu3 }
 0xf08   :  { %v3370_v13 = vadd.f32 %v3351_v45, %v2504_v53  ;;  %v3371_v37 = vadd.f32 %v3364_v48, %v2533_v10  ;;  %v3327_v28 = vpop.f32.mrf.mxu0  ;;  %v3340_v55 = vpop.f32.mrf.mxu1 }
 0xf0a   :  { %4587 = vtanh.f32 %v3370_v13  ;;  %v3381_v25 = vmul.f32 0.5, %v3371_v37 }
 0xf0b   :  { %v4584_v43 = vpop.eup %4583 }
 0xf0c   :  { %v4586_v1 = vpop.eup %4585  ;;  %v3374_v38 = vmul.f32 0.5, %v4584_v43  ;;  %4589 = vtanh.f32 %v3381_v25 }
 0xf0d   :  { %v3378_v49 = vmul.f32 0.5, %v4586_v1 }
 0xf0e   :  { %v3375_v0 = vadd.f32 0.5, %v3374_v38 }
 0xf0f   :  { %v3379_v7 = vadd.f32 0.5, %v3378_v49  ;;  %v3353_v4 = vpop.f32.mrf.mxu2  ;;  %v3366_v54 = vpop.f32.mrf.mxu3 }
 0xf10   :  { %v4588_v16 = vpop.eup %4587 }
 0xf11   :  { %v3385_v8 = vmul.f32 %v3379_v7, %v3308_v31  ;;  %v3386_v62 = vmul.f32 %v4588_v16, %v3375_v0 }
 0xf12   :  { %v4590_v50 = vpop.eup %4589 }
 0xf13   :  { %v3387_v60 = vadd.f32 %v3386_v62, %v3385_v8  ;;  %v3383_v35 = vmul.f32 0.5, %v4590_v50 }
 0xf15   :  { %4591 = vtanh.f32 %v3387_v60  ;;  %v3384_v5 = vadd.f32 0.5, %v3383_v35 }
 0xf1b   :  { %v4592_v2 = vpop.eup %4591 }
 0xf1c   :  { %v3389_v63 = vmul.f32 %v4592_v2, %v3384_v5 }
 0xf1e   :  { %v3390_v22 = vpack.c.bf16 %v3389_v63, %v3389_v63 }
 0xf20   :  { %3467 = vmatmul.bf16.vlgmr.msra.gmra.mxu0 %v3390_v22 }
 0xf9d   :  { %v3468_v57 = vpop.f32.mrf.mxu0 }
 0xf9e   :  { %v3469_v9 = vadd.f32 %v4352_v44, %v3468_v57 }
 0xfa0   :  { %4593 = vtanh.f32 %v3469_v9 }
 0xfa5   :  { %v3470_v6 = vpop.f32.mrf.mxu0 }
 0xfa6   :  { %v4594_v36 = vpop.eup %4593 }
 0xfa7   :  { %v3473_v14 = vadd.f32 1.0, %v4594_v36 }
 0xfa9   :  { %3474 = vst [vmem:[#allocation18] sm:$0xff] %v3473_v14 }
 0xfaa   :  { %3485 = dma.vmem_to_hbm [thread:$0]  %s3481_s12, 128, %s3483_s15, [#allocation6]  }
 0xfab   :  { %4821 = dma.done.wait [#allocation6], 128  }
 0xfac   :  { %4822 = vsyncadd [#allocation6], 4294967168 }
 0xfad   :  { %3490 = vsyncpa [#allocation5], 1 }
 0xfae   :  { %3491 = vsyncpa [#allocation8], 1 }
 0xfaf   :  { %3492 = vsyncpa [#allocation11], 1 }
 0xfb0   :  { %3493 = vsyncpa [#allocation14], 1 }
 0xfb1   :  { %3494 = vsyncpa [#allocation17], 1 }
 0xfb2   :  { %3495 = vsyncpa [#allocation6], 1 }

</bundles_post_ra>
